<compile_context>
chip_gen: v7x
topology: tpu7x:2x2x1
jax: 0.10.0
libtpu: 0.0.40
codegen_flags: <defaults>
</compile_context>

<pallas_src>
import functools

import jax
import jax.numpy as jnp
from jax import lax
from jax.experimental import pallas as pl
from jax.experimental.pallas import tpu as pltpu

IN_FEATURES = 3072
OUT_FEATURES = 768
_INV_SQRT2 = 0.7071067811865476


def gelu_linear_kernel(x_ref, w_ref, b_ref, o_ref):
    """Fused exact-GELU + matmul + bias.

    Grid = (N_blocks, K_blocks); K (reduction) is the last, "arbitrary" axis.
    x_ref: (M, tk)  f32 activations tile
    w_ref: (tk, tn) bf16 W^T tile
    b_ref: (1, tn)  f32 bias tile
    o_ref: (M, tn)  f32 output block, resident across the K axis
    """
    k = pl.program_id(1)

    # Seed the resident output block with the bias on the first K step
    # (folds the bias add into the init; no scratch accumulator needed).
    @pl.when(k == 0)
    def _():
        o_ref[...] = jnp.broadcast_to(
            b_ref[...].astype(jnp.float32), o_ref.shape
        )

    # Exact GELU in f32: 0.5 * x * (1 + erf(x / sqrt(2))).
    x = x_ref[...].astype(jnp.float32)
    g = 0.5 * x * (1.0 + lax.erf(x * _INV_SQRT2))

    # bf16 x bf16 MXU matmul with f32 accumulation directly into o_ref.
    o_ref[...] += jnp.dot(
        g.astype(jnp.bfloat16),
        w_ref[...],
        preferred_element_type=jnp.float32,
    )


def _pick_tiles():
    """Per-generation tiling (decided once, outside the jitted call path)."""
    try:
        kind = jax.devices()[0].device_kind.lower()
    except Exception:  # pragma: no cover - defensive default
        kind = ""
    if "7" in kind:
        # v7x: 2 TensorCores. Split N across cores (tn=384 keeps stores
        # lane-dense) and collapse K to a single step per core (tk=3072):
        # per-TC weight tile is 3072x384 bf16 = 2.25 MiB, double-buffered
        # ~4.5 MiB -> trivially fits v7x's 32 MiB scoped VMEM.
        return 3072, 384
    # Single-TC v5e/v6e: one lane-dense 768-wide N block avoids duplicate
    # activation DMAs / GELU recompute; tk=1536 gives 2 pipelined K steps
    # with a contiguous 2.25 MiB weight DMA each (safe under v5e's 16 MiB
    # default scoped VMEM even when double-buffered).
    return 1536, 768


@functools.partial(jax.jit, static_argnames=("tk", "tn"))
def gelu_linear(x, w_bf16, b, *, tk, tn):
    """x: (B, H, W, Cin) f32; w_bf16: (Cin, Cout) bf16; b: (Cout,).

    Returns (B, H, W, Cout) f32.
    """
    B, H, W, Cin = x.shape
    Cout = w_bf16.shape[1]
    M = B * H * W

    assert Cin % tk == 0
    assert Cout % tn == 0

    x2d = x.reshape(M, Cin)
    b2d = b.reshape(1, Cout).astype(jnp.float32)

    grid = (Cout // tn, Cin // tk)  # (parallel N blocks, arbitrary K blocks)

    out2d = pl.pallas_call(
        gelu_linear_kernel,
        out_shape=jax.ShapeDtypeStruct((M, Cout), jnp.float32),
        grid_spec=pltpu.PrefetchScalarGridSpec(
            num_scalar_prefetch=0,
            grid=grid,
            in_specs=[
                pl.BlockSpec((M, tk), lambda j, k: (0, k)),    # activations tile
                pl.BlockSpec((tk, tn), lambda j, k: (k, j)),   # W^T tile (bf16)
                pl.BlockSpec((1, tn), lambda j, k: (0, j)),    # bias tile
            ],
            out_specs=pl.BlockSpec((M, tn), lambda j, k: (0, j)),
        ),
        compiler_params=pltpu.CompilerParams(
            dimension_semantics=("parallel", "arbitrary"),
        ),
    )(x2d, w_bf16, b2d)

    return out2d.reshape(B, H, W, Cout)


if __name__ == "__main__":
    key = jax.random.PRNGKey(0)
    kx, kw, kb = jax.random.split(key, 3)

    # Input exactly as the module implies: (1, 7, 7, 3072)
    x = jax.random.normal(kx, (1, 7, 7, IN_FEATURES), dtype=jnp.float32)

    # Deterministic parameter init (PyTorch Linear weight is (out, in); we
    # store its transpose so the kernel computes x @ W^T directly).
    bound = 1.0 / (IN_FEATURES ** 0.5)
    w = jax.random.uniform(
        kw, (OUT_FEATURES, IN_FEATURES), dtype=jnp.float32, minval=-bound, maxval=bound
    )
    b = jax.random.uniform(
        kb, (OUT_FEATURES,), dtype=jnp.float32, minval=-bound, maxval=bound
    )
    w_t = w.T  # (3072, 768), f32 master copy

    # One-time weight downcast, cached as a device array (NOT per call).
    w_bf16 = jax.device_put(w_t.astype(jnp.bfloat16))

    tk, tn = _pick_tiles()

    out = gelu_linear(x, w_bf16, b, tk=tk, tn=tn)
    out = jax.block_until_ready(out)

    # Silent correctness check against plain-JAX f32 reference.
    # Tolerance loosened vs. an all-f32 version because W is streamed in bf16
    # (f32 accumulation keeps the error ~1e-3 absolute at these scales).
    ref = jnp.dot(jax.nn.gelu(x, approximate=False), w_t) + b
    assert out.shape == (1, 7, 7, OUT_FEATURES)
    assert jnp.allclose(out, ref, atol=2e-2, rtol=2e-2)

    print("KERNEL_OK")
</pallas_src>

<mosaic_0001>
module attributes {stable_mosaic.version = 11 : i64} {
  func.func @gelu_linear_kernel(%arg0: i32, %arg1: i32, %arg2: memref<49x1536xf32, #tpu.memory_space<vmem>>, %arg3: memref<1536x768xbf16, #tpu.memory_space<vmem>>, %arg4: memref<1x768xf32, #tpu.memory_space<vmem>>, %arg5: memref<49x768xf32, #tpu.memory_space<vmem>>) attributes {dimension_semantics = [#tpu.dimension_semantics<parallel>, #tpu.dimension_semantics<arbitrary>], iteration_bounds = array<i64: 1, 2>, scalar_prefetch = 0 : i64, scratch_operands = 0 : i64, tpu.core_type = #tpu.core_type<tc>, window_params = [{transform_indices = @transform_0, window_bounds = array<i64: 49, 1536>}, {transform_indices = @transform_1, window_bounds = array<i64: 1536, 768>}, {transform_indices = @transform_2, window_bounds = array<i64: 1, 768>}, {transform_indices = @transform_3, window_bounds = array<i64: 49, 768>}]} {
    %c0_i32 = arith.constant 0 : i32
    %0 = arith.cmpi eq, %arg1, %c0_i32 : i32
    %1 = arith.extui %0 : i1 to i32
    %c0_i32_0 = arith.constant 0 : i32
    %2 = arith.cmpi ne, %1, %c0_i32_0 : i32
    scf.if %2 {
      %c0_11 = arith.constant 0 : index
      %c0_12 = arith.constant 0 : index
      %18 = vector.load %arg4[%c0_11, %c0_12] : memref<1x768xf32, #tpu.memory_space<vmem>>, vector<1x768xf32>
      %19 = vector.shape_cast %18 : vector<1x768xf32> to vector<1x768xf32>
      %20 = vector.broadcast %19 : vector<1x768xf32> to vector<49x768xf32>
      %c0_13 = arith.constant 0 : index
      %c0_14 = arith.constant 0 : index
      %21 = vector.load %arg5[%c0_13, %c0_14] : memref<49x768xf32, #tpu.memory_space<vmem>>, vector<49x768xf32>
      tpu.vector_store %arg5[%c0_13, %c0_14], %20 {strides = array<i32>} : memref<49x768xf32, #tpu.memory_space<vmem>>, vector<49x768xf32>,
    } else {
    }
    %c0 = arith.constant 0 : index
    %c0_1 = arith.constant 0 : index
    %3 = vector.load %arg2[%c0, %c0_1] : memref<49x1536xf32, #tpu.memory_space<vmem>>, vector<49x1536xf32>
    %cst = arith.constant 5.000000e-01 : f32
    %4 = vector.broadcast %cst : f32 to vector<49x1536xf32>
    %5 = arith.mulf %4, %3 : vector<49x1536xf32>
    %cst_2 = arith.constant 0.707106769 : f32
    %6 = vector.broadcast %cst_2 : f32 to vector<49x1536xf32>
    %7 = arith.mulf %3, %6 : vector<49x1536xf32>
    %8 = math.erf %7 : vector<49x1536xf32>
    %cst_3 = arith.constant 1.000000e+00 : f32
    %9 = vector.broadcast %cst_3 : f32 to vector<49x1536xf32>
    %10 = arith.addf %9, %8 : vector<49x1536xf32>
    %11 = arith.mulf %5, %10 : vector<49x1536xf32>
    %c0_4 = arith.constant 0 : index
    %c0_5 = arith.constant 0 : index
    %12 = vector.load %arg5[%c0_4, %c0_5] : memref<49x768xf32, #tpu.memory_space<vmem>>, vector<49x768xf32>
    %13 = arith.truncf %11 : vector<49x1536xf32> to vector<49x1536xbf16>
    %c0_6 = arith.constant 0 : index
    %c0_7 = arith.constant 0 : index
    %14 = vector.load %arg3[%c0_6, %c0_7] : memref<1536x768xbf16, #tpu.memory_space<vmem>>, vector<1536x768xbf16>
    %cst_8 = arith.constant dense<0.000000e+00> : vector<49x768xf32>
    %15 = tpu.matmul %13, %14, %cst_8 {dimension_numbers = #tpu.dot_dimension_numbers<[1], [0], [0], [1], [0, 0, 1, 1], [], []>} : vector<49x1536xbf16>, vector<1536x768xbf16>, vector<49x768xf32> -> vector<49x768xf32>
    %16 = arith.addf %12, %15 : vector<49x768xf32>
    %c0_9 = arith.constant 0 : index
    %c0_10 = arith.constant 0 : index
    %17 = vector.load %arg5[%c0_9, %c0_10] : memref<49x768xf32, #tpu.memory_space<vmem>>, vector<49x768xf32>
    tpu.vector_store %arg5[%c0_9, %c0_10], %16 {strides = array<i32>} : memref<49x768xf32, #tpu.memory_space<vmem>>, vector<49x768xf32>,
    return
  }
  func.func @transform_0(%arg0: i32, %arg1: i32) -> (i32, i32) {
    %c0_i32 = arith.constant 0 : i32
    %c0_i32_0 = arith.constant 0 : i32
    return %c0_i32, %arg1 : i32, i32
  }
  func.func @transform_1(%arg0: i32, %arg1: i32) -> (i32, i32) {
    %c0_i32 = arith.constant 0 : i32
    return %arg1, %arg0 : i32, i32
  }
  func.func @transform_2(%arg0: i32, %arg1: i32) -> (i32, i32) {
    %c0_i32 = arith.constant 0 : i32
    %c0_i32_0 = arith.constant 0 : i32
    return %c0_i32, %arg0 : i32, i32
  }
  func.func @transform_3(%arg0: i32, %arg1: i32) -> (i32, i32) {
    %c0_i32 = arith.constant 0 : i32
    %c0_i32_0 = arith.constant 0 : i32
    return %c0_i32, %arg0 : i32, i32
  }
}

</mosaic_0001>

<bundles_post_ra>
// kernel: gelu_linear.1
= control target key start
LH: loop header
LB: loop body
LE: loop exit
PB: predicated region body
PF: predicated region fallthrough
CT: control target
= control target key end

     0   :  { %8 = vsyncpa [#allocation4], 0  ;;  %s9876_s0 = inlined_call_operand.vmem [shape: f32[49,3072], index: 0, kind: input, shape index: {}]   ;;  %s9877_s1 = inlined_call_operand.hbm [shape: bf16[3072,768], index: 1, kind: input, shape index: {}]   ;;  %s9878_s2 = inlined_call_operand.vmem [shape: f32[1,768], index: 2, kind: input, shape index: {}]   ;;  %s9879_s3 = inlined_call_operand.vmem [shape: f32[49,768], index: 3, kind: output, shape index: {}]  }
   0x1   :  { %10 = vsyncpa [#allocation4 + $0x1], 0  ;;  %s7995_s12 = smov 0   ;;  %s7997_s13 = smov 0  }
   0x2   :  { %s7999_s14 = smov 0   ;;  %s8001_s15 = smov 0  }
   0x3   :  { %s8003_s16 = smov 0   ;;  %s8005_s17 = smov 0  }
   0x4 LB: > { %s6033_s18 = sadd.s32 4294967295, %s7970_s17   ;;  %s25_s19 = sadd.s32 1, %s7966_s16  ;;  %s7970_s17 = sphi %s8005_s17, %s16_s17   ;;  %s7966_s16 = sphi %s8003_s16, %s9922_s16   ;;  %s7962_s15 = sphi %s8001_s15, %s9921_s15   ;;  %s7958_s14 = sphi %s7999_s14, %s9920_s14   ;;  %s7954_s13 = sphi %s7997_s13, %s9919_s13   ;;  %s7950_s12 = sphi %s7995_s12, %s9918_s12  }
   0x5   : > { %p26_p0 = scmp.ge.s32.totalorder %s25_s19, 2  ;;  %s35_s20 = sadd.s32 1, %s7958_s14 }
   0x6   : > { %p42_p1 = scmp.ne.s32.totalorder %s7958_s14, %s7954_s13  ;;  %p43_p2 = scmp.eq.s32.totalorder %s7970_s17, 0 }
   0x7   : > { %s9924_s19 = smov (%p26_p0, %s25_s19), 0  ;;  %p76_p4 = scmp.ne.s32.totalorder %s7954_s13, %s7950_s12 }
   0x8   : > { %p8031_p3 = por %p43_p2, %p42_p1  ;;  %s32_s22 = ssub.s32 %s7966_s16, %s9924_s19 }
   0x9   : > { %p77_p5 = scmp.eq.s32.totalorder %s6033_s18, 0  ;;  %p33_p6 = scmp.eq.s32.totalorder %s32_s22, 0 }
   0xa   : > { %p6036_p8 = scmp.ge.s32.totalorder %s7970_s17, 2 }
   0xb   : > { %p8038_p7 = por %p77_p5, %p76_p4 }
   0xc   : > { %s8043_s24 = scalar_select %p33_p6, %s7958_s14, %s35_s20  }
   0xd   : > { %156 = sbr.rel (%p6036_p8) target bundleno = 93 (0x5d), region = 20 }
  0x14   : > { %159 = sbr.rel (!%p8031_p3) target bundleno = 67 (0x43), region = 24  ;;  %s161_s25 = sand.u32 (%p8031_p3), 1, %s7958_s14  }
  0x15   : > { %s6621_s26 = smul.u32 (%p8031_p3), 96, %s7966_s16 }
  0x16   : > { %s6802_s27 = smul.u32 (%p8031_p3), 672, %s161_s25 }
  0x17   : > { %s8053_s30 = scalar_lea.vmem (%p8031_p3), %s9876_s0, %s6621_s26 }
  0x18   : > { %v179_v0 = vld [vmem:[%s8053_s30] sm:$0xff] (%p8031_p3)  ;;  %v181_v1 = vld [vmem:[%s8053_s30 + $0x8] sm:$0xff] (%p8031_p3)  ;;  %v183_v2 = vld [vmem:[%s8053_s30 + $0x10] sm:$0xff] (%p8031_p3)  ;;  %s8058_s4 = scalar_lea.vmem (%p8031_p3), [#allocation2], %s6802_s27 }
  0x19   : > { %180 = vst [vmem:[%s8058_s4] sm:$0xff] (%p8031_p3), %v179_v0  ;;  %182 = vst [vmem:[%s8058_s4 + $0x8] sm:$0xff] (%p8031_p3), %v181_v1  ;;  %v185_v3 = vld [vmem:[%s8053_s30 + $0x18] sm:$0xff] (%p8031_p3)  ;;  %v187_v4 = vld [vmem:[%s8053_s30 + $0x20] sm:$0xff] (%p8031_p3) }
  0x1a   : > { %184 = vst [vmem:[%s8058_s4 + $0x10] sm:$0xff] (%p8031_p3), %v183_v2  ;;  %v189_v5 = vld [vmem:[%s8053_s30 + $0x28] sm:$0xff] (%p8031_p3)  ;;  %186 = vst [vmem:[%s8058_s4 + $0x18] sm:$0xff] (%p8031_p3), %v185_v3  ;;  %v191_v6 = vld [vmem:[%s8053_s30 + $0x30] sm:$0xff] (%p8031_p3) }
  0x1b   : > { %188 = vst [vmem:[%s8058_s4 + $0x20] sm:$0xff] %v187_v4  ;;  %190 = vst [vmem:[%s8058_s4 + $0x28] sm:$0xff] %v189_v5  ;;  %v193_v7 = vld [vmem:[%s8053_s30 + $0x38] sm:$0xff]  ;;  %v195_v8 = vld [vmem:[%s8053_s30 + $0x40] sm:$0xff] }
  0x1c   : > { %192 = vst [vmem:[%s8058_s4 + $0x30] sm:$0xff] %v191_v6  ;;  %194 = vst [vmem:[%s8058_s4 + $0x38] sm:$0xff] %v193_v7  ;;  %v197_v9 = vld [vmem:[%s8053_s30 + $0x48] sm:$0xff]  ;;  %v199_v10 = vld [vmem:[%s8053_s30 + $0x50] sm:$0xff] }
  0x1d   : > { %196 = vst [vmem:[%s8058_s4 + $0x40] sm:$0xff] %v195_v8  ;;  %v201_v11 = vld [vmem:[%s8053_s30 + $0x58] sm:$0xff]  ;;  %198 = vst [vmem:[%s8058_s4 + $0x48] sm:$0xff] %v197_v9  ;;  %v203_v12 = vld [vmem:[%s8053_s30 + $0xc0] sm:$0xff] }
  0x1e   : > { %200 = vst [vmem:[%s8058_s4 + $0x50] sm:$0xff] %v199_v10  ;;  %202 = vst [vmem:[%s8058_s4 + $0x58] sm:$0xff] %v201_v11  ;;  %v205_v13 = vld [vmem:[%s8053_s30 + $0xc8] sm:$0xff]  ;;  %v207_v14 = vld [vmem:[%s8053_s30 + $0xd0] sm:$0xff] }
  0x1f   : > { %204 = vst [vmem:[%s8058_s4 + $0x60] sm:$0xff] %v203_v12  ;;  %206 = vst [vmem:[%s8058_s4 + $0x68] sm:$0xff] %v205_v13  ;;  %v209_v15 = vld [vmem:[%s8053_s30 + $0xd8] sm:$0xff]  ;;  %v211_v16 = vld [vmem:[%s8053_s30 + $0xe0] sm:$0xff] }
  0x20   : > { %208 = vst [vmem:[%s8058_s4 + $0x70] sm:$0xff] %v207_v14  ;;  %v213_v17 = vld [vmem:[%s8053_s30 + $0xe8] sm:$0xff]  ;;  %210 = vst [vmem:[%s8058_s4 + $0x78] sm:$0xff] %v209_v15  ;;  %v215_v18 = vld [vmem:[%s8053_s30 + $0xf0] sm:$0xff] }
  0x21   : > { %212 = vst [vmem:[%s8058_s4 + $0x80] sm:$0xff] %v211_v16  ;;  %214 = vst [vmem:[%s8058_s4 + $0x88] sm:$0xff] %v213_v17  ;;  %v217_v19 = vld [vmem:[%s8053_s30 + $0xf8] sm:$0xff]  ;;  %v219_v20 = vld [vmem:[%s8053_s30 + $0x100] sm:$0xff] }
  0x22   : > { %216 = vst [vmem:[%s8058_s4 + $0x90] sm:$0xff] %v215_v18  ;;  %218 = vst [vmem:[%s8058_s4 + $0x98] sm:$0xff] %v217_v19  ;;  %v221_v21 = vld [vmem:[%s8053_s30 + $0x108] sm:$0xff]  ;;  %v223_v22 = vld [vmem:[%s8053_s30 + $0x110] sm:$0xff] }
  0x23   : > { %220 = vst [vmem:[%s8058_s4 + $0xa0] sm:$0xff] %v219_v20  ;;  %v225_v23 = vld [vmem:[%s8053_s30 + $0x118] sm:$0xff]  ;;  %222 = vst [vmem:[%s8058_s4 + $0xa8] sm:$0xff] %v221_v21  ;;  %v227_v24 = vld [vmem:[%s8053_s30 + $0x180] sm:$0xff] }
  0x24   : > { %224 = vst [vmem:[%s8058_s4 + $0xb0] sm:$0xff] %v223_v22  ;;  %226 = vst [vmem:[%s8058_s4 + $0xb8] sm:$0xff] %v225_v23  ;;  %v229_v25 = vld [vmem:[%s8053_s30 + $0x188] sm:$0xff]  ;;  %v231_v26 = vld [vmem:[%s8053_s30 + $0x190] sm:$0xff] }
  0x25   : > { %228 = vst [vmem:[%s8058_s4 + $0xc0] sm:$0xff] %v227_v24  ;;  %230 = vst [vmem:[%s8058_s4 + $0xc8] sm:$0xff] %v229_v25  ;;  %v233_v27 = vld [vmem:[%s8053_s30 + $0x198] sm:$0xff]  ;;  %v235_v28 = vld [vmem:[%s8053_s30 + $0x1a0] sm:$0xff] }
  0x26   : > { %232 = vst [vmem:[%s8058_s4 + $0xd0] sm:$0xff] %v231_v26  ;;  %v237_v29 = vld [vmem:[%s8053_s30 + $0x1a8] sm:$0xff]  ;;  %234 = vst [vmem:[%s8058_s4 + $0xd8] sm:$0xff] %v233_v27  ;;  %v239_v30 = vld [vmem:[%s8053_s30 + $0x1b0] sm:$0xff] }
  0x27   : > { %236 = vst [vmem:[%s8058_s4 + $0xe0] sm:$0xff] %v235_v28  ;;  %238 = vst [vmem:[%s8058_s4 + $0xe8] sm:$0xff] %v237_v29  ;;  %v241_v31 = vld [vmem:[%s8053_s30 + $0x1b8] sm:$0xff]  ;;  %v243_v32 = vld [vmem:[%s8053_s30 + $0x1c0] sm:$0xff] }
  0x28   : > { %240 = vst [vmem:[%s8058_s4 + $0xf0] sm:$0xff] %v239_v30  ;;  %242 = vst [vmem:[%s8058_s4 + $0xf8] sm:$0xff] %v241_v31  ;;  %v245_v33 = vld [vmem:[%s8053_s30 + $0x1c8] sm:$0xff]  ;;  %v247_v34 = vld [vmem:[%s8053_s30 + $0x1d0] sm:$0xff] }
  0x29   : > { %244 = vst [vmem:[%s8058_s4 + $0x100] sm:$0xff] %v243_v32  ;;  %v249_v35 = vld [vmem:[%s8053_s30 + $0x1d8] sm:$0xff]  ;;  %246 = vst [vmem:[%s8058_s4 + $0x108] sm:$0xff] %v245_v33  ;;  %v251_v36 = vld [vmem:[%s8053_s30 + $0x240] sm:$0xff] }
  0x2a   : > { %248 = vst [vmem:[%s8058_s4 + $0x110] sm:$0xff] %v247_v34  ;;  %250 = vst [vmem:[%s8058_s4 + $0x118] sm:$0xff] %v249_v35  ;;  %v253_v37 = vld [vmem:[%s8053_s30 + $0x248] sm:$0xff]  ;;  %v255_v38 = vld [vmem:[%s8053_s30 + $0x250] sm:$0xff] }
  0x2b   : > { %252 = vst [vmem:[%s8058_s4 + $0x120] sm:$0xff] %v251_v36  ;;  %254 = vst [vmem:[%s8058_s4 + $0x128] sm:$0xff] %v253_v37  ;;  %v257_v39 = vld [vmem:[%s8053_s30 + $0x258] sm:$0xff]  ;;  %v259_v40 = vld [vmem:[%s8053_s30 + $0x260] sm:$0xff] }
  0x2c   : > { %256 = vst [vmem:[%s8058_s4 + $0x130] sm:$0xff] %v255_v38  ;;  %v261_v41 = vld [vmem:[%s8053_s30 + $0x268] sm:$0xff]  ;;  %258 = vst [vmem:[%s8058_s4 + $0x138] sm:$0xff] %v257_v39  ;;  %v263_v42 = vld [vmem:[%s8053_s30 + $0x270] sm:$0xff] }
  0x2d   : > { %260 = vst [vmem:[%s8058_s4 + $0x140] sm:$0xff] %v259_v40  ;;  %262 = vst [vmem:[%s8058_s4 + $0x148] sm:$0xff] %v261_v41  ;;  %v265_v43 = vld [vmem:[%s8053_s30 + $0x278] sm:$0xff]  ;;  %v267_v44 = vld [vmem:[%s8053_s30 + $0x280] sm:$0xff] }
  0x2e   : > { %264 = vst [vmem:[%s8058_s4 + $0x150] sm:$0xff] %v263_v42  ;;  %266 = vst [vmem:[%s8058_s4 + $0x158] sm:$0xff] %v265_v43  ;;  %v269_v45 = vld [vmem:[%s8053_s30 + $0x288] sm:$0xff]  ;;  %v271_v46 = vld [vmem:[%s8053_s30 + $0x290] sm:$0xff] }
  0x2f   : > { %268 = vst [vmem:[%s8058_s4 + $0x160] sm:$0xff] %v267_v44  ;;  %v273_v47 = vld [vmem:[%s8053_s30 + $0x298] sm:$0xff]  ;;  %270 = vst [vmem:[%s8058_s4 + $0x168] sm:$0xff] %v269_v45  ;;  %v275_v48 = vld [vmem:[%s8053_s30 + $0x300] sm:$0xff] }
  0x30   : > { %272 = vst [vmem:[%s8058_s4 + $0x170] sm:$0xff] %v271_v46  ;;  %274 = vst [vmem:[%s8058_s4 + $0x178] sm:$0xff] %v273_v47  ;;  %v277_v49 = vld [vmem:[%s8053_s30 + $0x308] sm:$0xff]  ;;  %v279_v50 = vld [vmem:[%s8053_s30 + $0x310] sm:$0xff] }
  0x31   : > { %276 = vst [vmem:[%s8058_s4 + $0x180] sm:$0xff] %v275_v48  ;;  %278 = vst [vmem:[%s8058_s4 + $0x188] sm:$0xff] %v277_v49  ;;  %v281_v51 = vld [vmem:[%s8053_s30 + $0x318] sm:$0xff]  ;;  %v283_v52 = vld [vmem:[%s8053_s30 + $0x320] sm:$0xff] }
  0x32   : > { %280 = vst [vmem:[%s8058_s4 + $0x190] sm:$0xff] %v279_v50  ;;  %v285_v53 = vld [vmem:[%s8053_s30 + $0x328] sm:$0xff]  ;;  %282 = vst [vmem:[%s8058_s4 + $0x198] sm:$0xff] %v281_v51  ;;  %v287_v54 = vld [vmem:[%s8053_s30 + $0x330] sm:$0xff] }
  0x33   : > { %284 = vst [vmem:[%s8058_s4 + $0x1a0] sm:$0xff] %v283_v52  ;;  %286 = vst [vmem:[%s8058_s4 + $0x1a8] sm:$0xff] %v285_v53  ;;  %v289_v55 = vld [vmem:[%s8053_s30 + $0x338] sm:$0xff]  ;;  %v291_v56 = vld [vmem:[%s8053_s30 + $0x340] sm:$0xff] }
  0x34   : > { %288 = vst [vmem:[%s8058_s4 + $0x1b0] sm:$0xff] %v287_v54  ;;  %290 = vst [vmem:[%s8058_s4 + $0x1b8] sm:$0xff] %v289_v55  ;;  %v293_v57 = vld [vmem:[%s8053_s30 + $0x348] sm:$0xff]  ;;  %v295_v58 = vld [vmem:[%s8053_s30 + $0x350] sm:$0xff] }
  0x35   : > { %292 = vst [vmem:[%s8058_s4 + $0x1c0] sm:$0xff] %v291_v56  ;;  %v297_v59 = vld [vmem:[%s8053_s30 + $0x358] sm:$0xff]  ;;  %294 = vst [vmem:[%s8058_s4 + $0x1c8] sm:$0xff] %v293_v57  ;;  %v299_v60 = vld [vmem:[%s8053_s30 + $0x3c0] sm:$0xff] }
  0x36   : > { %296 = vst [vmem:[%s8058_s4 + $0x1d0] sm:$0xff] %v295_v58  ;;  %298 = vst [vmem:[%s8058_s4 + $0x1d8] sm:$0xff] %v297_v59  ;;  %v301_v61 = vld [vmem:[%s8053_s30 + $0x3c8] sm:$0xff]  ;;  %v303_v62 = vld [vmem:[%s8053_s30 + $0x3d0] sm:$0xff] }
  0x37   : > { %300 = vst [vmem:[%s8058_s4 + $0x1e0] sm:$0xff] %v299_v60  ;;  %302 = vst [vmem:[%s8058_s4 + $0x1e8] sm:$0xff] %v301_v61  ;;  %v305_v63 = vld [vmem:[%s8053_s30 + $0x3d8] sm:$0xff]  ;;  %v307_v0 = vld [vmem:[%s8053_s30 + $0x3e0] sm:$0xff] }
  0x38   : > { %304 = vst [vmem:[%s8058_s4 + $0x1f0] sm:$0xff] %v303_v62  ;;  %v309_v1 = vld [vmem:[%s8053_s30 + $0x3e8] sm:$0xff]  ;;  %306 = vst [vmem:[%s8058_s4 + $0x1f8] sm:$0xff] %v305_v63  ;;  %v311_v2 = vld [vmem:[%s8053_s30 + $0x3f0] sm:$0xff] }
  0x39   : > { %308 = vst [vmem:[%s8058_s4 + $0x200] sm:$0xff] %v307_v0  ;;  %310 = vst [vmem:[%s8058_s4 + $0x208] sm:$0xff] %v309_v1  ;;  %v313_v3 = vld [vmem:[%s8053_s30 + $0x3f8] sm:$0xff]  ;;  %v315_v4 = vld [vmem:[%s8053_s30 + $0x400] sm:$0xff] }
  0x3a   : > { %312 = vst [vmem:[%s8058_s4 + $0x210] sm:$0xff] %v311_v2  ;;  %314 = vst [vmem:[%s8058_s4 + $0x218] sm:$0xff] %v313_v3  ;;  %v317_v5 = vld [vmem:[%s8053_s30 + $0x408] sm:$0xff]  ;;  %v319_v6 = vld [vmem:[%s8053_s30 + $0x410] sm:$0xff] }
  0x3b   : > { %316 = vst [vmem:[%s8058_s4 + $0x220] sm:$0xff] %v315_v4  ;;  %v321_v7 = vld [vmem:[%s8053_s30 + $0x418] sm:$0xff]  ;;  %318 = vst [vmem:[%s8058_s4 + $0x228] sm:$0xff] %v317_v5  ;;  %v323_v8 = vld [vmem:[%s8053_s30 + $0x480] sm:$0xff] }
  0x3c   : > { %320 = vst [vmem:[%s8058_s4 + $0x230] sm:$0xff] %v319_v6  ;;  %322 = vst [vmem:[%s8058_s4 + $0x238] sm:$0xff] %v321_v7  ;;  %v325_v9 = vld [vmem:[%s8053_s30 + $0x488] sm:$0xff]  ;;  %v327_v10 = vld [vmem:[%s8053_s30 + $0x490] sm:$0xff] }
  0x3d   : > { %324 = vst [vmem:[%s8058_s4 + $0x240] sm:$0xff] %v323_v8  ;;  %326 = vst [vmem:[%s8058_s4 + $0x248] sm:$0xff] %v325_v9  ;;  %v329_v11 = vld [vmem:[%s8053_s30 + $0x498] sm:$0xff]  ;;  %v331_v12 = vld [vmem:[%s8053_s30 + $0x4a0] sm:$0xff] }
  0x3e   : > { %328 = vst [vmem:[%s8058_s4 + $0x250] sm:$0xff] %v327_v10  ;;  %v333_v13 = vld [vmem:[%s8053_s30 + $0x4a8] sm:$0xff]  ;;  %330 = vst [vmem:[%s8058_s4 + $0x258] sm:$0xff] %v329_v11  ;;  %v335_v14 = vld [vmem:[%s8053_s30 + $0x4b0] sm:$0xff] }
  0x3f   : > { %332 = vst [vmem:[%s8058_s4 + $0x260] sm:$0xff] %v331_v12  ;;  %334 = vst [vmem:[%s8058_s4 + $0x268] sm:$0xff] %v333_v13  ;;  %v337_v15 = vld [vmem:[%s8053_s30 + $0x4b8] sm:$0xff]  ;;  %v339_v16 = vld [vmem:[%s8053_s30 + $0x4c0] sm:$0xff] }
  0x40   : > { %336 = vst [vmem:[%s8058_s4 + $0x270] sm:$0xff] %v335_v14  ;;  %338 = vst [vmem:[%s8058_s4 + $0x278] sm:$0xff] %v337_v15  ;;  %v341_v17 = vld [vmem:[%s8053_s30 + $0x4c8] sm:$0xff]  ;;  %v343_v18 = vld [vmem:[%s8053_s30 + $0x4d0] sm:$0xff] }
  0x41   : > { %340 = vst [vmem:[%s8058_s4 + $0x280] sm:$0xff] %v339_v16  ;;  %v345_v19 = vld [vmem:[%s8053_s30 + $0x4d8] sm:$0xff]  ;;  %342 = vst [vmem:[%s8058_s4 + $0x288] sm:$0xff] %v341_v17 }
  0x42   : > { %344 = vst [vmem:[%s8058_s4 + $0x290] sm:$0xff] %v343_v18  ;;  %346 = vst [vmem:[%s8058_s4 + $0x298] sm:$0xff] %v345_v19 }
  0x43 PF: > { %s353_s5 = sand.u32 1, %s7958_s14   ;;  %s6809_s7 = smul.u32 73728, %s7966_s16 }
  0x44   : > { %s6803_s6 = smul.u32 4608, %s353_s5  ;;  %s8234_s18 = scalar_lea.sflag [#allocation4], %s353_s5 }
  0x45   : > { %s8230_s10 = scalar_lea.hbm %s9877_s1, %s6809_s7  ;;  %s7896_s26 = scalar_lea.hbm %s9877_s1, 147456 }
  0x46   : > { %s357_s11 = scalar_lea.vmem [#allocation3], %s6803_s6  ;;  %s7892_s20 = scalar_lea.hbm %s8230_s10, 73728 }
  0x47   : > { %s367_s12 = sshll.u32 %s357_s11, 4  ;;  %p7893_p9 = scmp.ne.s32.totalorder %s8230_s10, %s7892_s20  ;;  %s8232_s12 = int_to_ptr.vmem [resolvable:$true] %s367_s12 }
  0x48   : > { %p7897_p12 = scmp.lt.u32.totalorder %s8230_s10, %s9877_s1  ;;  %p7898_p13 = scmp.lt.u32.totalorder %s7896_s26, %s7892_s20 }
  0x49   : > { %p7894_p10 = pnand %p7893_p9, %p8031_p3  ;;  %p7900_p1 = scmp.lt.u32.totalorder %s7892_s20, %s8230_s10 }
  0x4a   : > { %p7899_p0 = por %p7898_p13, %p7897_p12 }
  0x4b   : > { %p7895_p11 = pneg %p7894_p10 }
  0x4c   : > { %p7901_p2 = por %p7900_p1, %p7899_p0 }
  0x4e   : > { %p7902_p4 = pnand %p7901_p2, %p7895_p11 }
  0x50   : > { %7905 = shalt.err (!%p7902_p4)
}
  0x51   : > { %s7906_s29 = scalar_lea.vmem %s8232_s12, 73728  ;;  %s7972_s30 = smov [#allocation3]  }
  0x52   : > { %p7907_p5 = scmp.ne.s32.totalorder %s8232_s12, %s7906_s29  ;;  %s7910_s4 = sshll.u32 %s7972_s30, 4  ;;  %s7911_s4 = int_to_ptr.vmem [resolvable:$false] %s7910_s4 }
  0x53   : > { %s7912_s5 = scalar_lea.vmem %s7911_s4, 147456  ;;  %p7913_p9 = scmp.lt.s32.totalorder %s8232_s12, %s7911_s4 }
  0x54   : > { %p7908_p6 = pnand %p7907_p5, %p8031_p3  ;;  %p7914_p10 = scmp.lt.s32.totalorder %s7912_s5, %s7906_s29 }
  0x56   : > { %p7909_p8 = pneg %p7908_p6  ;;  %p7915_p12 = por %p7914_p10, %p7913_p9 }
  0x58   : > { %p7916_p13 = pnand %p7915_p12, %p7909_p8 }
  0x5a   : > { %7919 = shalt.err (!%p7916_p13)
}
  0x5b   : > { %s7973_s6 = smov 384   ;;  %s7974_s7 = smov 24  }
  0x5c   : > { %6807 = dma.hbm_to_vmem [thread:$0]  (%p8031_p3), %s8230_s10, 73728, %s8232_s12, %s8234_s18, %s7973_s6, %s7973_s6, %s7974_s7  }
  0x5d PF: > { %p6039_p11 = scmp.ge.s32.totalorder %s7970_s17, 1  ;;  %p375_p0 = scmp.lt.s32.totalorder %s7970_s17, 3 }
  0x5f   : > { %p376_p1 = pnand %p6039_p11, %p375_p0 }
  0x61   : > { %379 = sbr.rel (%p376_p1) target bundleno = 961 (0x3c1), region = 51 }
  0x68   : > { %s382_s8 = sand.u32 1, %s7954_s13  }
  0x69   : > { %s6805_s9 = smul.u32 672, %s382_s8  ;;  %s389_s22 = scalar_lea.sflag [#allocation4], %s382_s8 }
  0x6a   : > { %s6806_s11 = smul.u32 4608, %s382_s8 }
  0x6b   : > { %s8261_s20 = scalar_lea.vmem [#allocation2], %s6805_s9 }
  0x6c   : > { %s8263_s25 = scalar_lea.vmem [#allocation3], %s6806_s11 }
  0x6d   : > { %7945 = dma.done.wait (%p8038_p7), %s389_s22, 73728  }
  0x6e   : > { %7947 = vsyncadd (%p8038_p7), %s389_s22, 4294893568  ;;  %p6040_p3 = scmp.ne.s32.totalorder %s7962_s15, 0 }
  0x6f   : > { %v443_v20 = vlaneseq (!%p6040_p3)  ;;  %v441_v22 = vld [vmem:[%s9878_s2] sm:$0x3f] (!%p6040_p3) }
  0x70   : > { %440 = sbr.rel (%p6040_p3) target bundleno = 140 (0x8c), region = 63 }
  0x71   : > { %v444_v21 = vshrl.u32 (!%p6040_p3), %v443_v20, 7 }
  0x73   : > { %v445_v23 = vsub.s32 (!%p6040_p3), 0, %v444_v21  ;;  %v449_v24 = vsub.s32 (!%p6040_p3), 1, %v444_v21  ;;  %v453_v25 = vsub.s32 (!%p6040_p3), 2, %v444_v21  ;;  %v457_v26 = vsub.s32 (!%p6040_p3), 3, %v444_v21 }
  0x74   : > { %v461_v27 = vsub.s32 (!%p6040_p3), 4, %v444_v21  ;;  %v465_v28 = vsub.s32 (!%p6040_p3), 5, %v444_v21 }
  0x75   : > { %v446_v29 = vrot.slane (!%p6040_p3), %v441_v22, %v445_v23  ;;  %v450_v30 = vrot.slane (!%p6040_p3), %v441_v22, %v449_v24  ;;  %v454_v31 = vrot.slane (!%p6040_p3), %v441_v22, %v453_v25  ;;  %v458_v32 = vrot.slane (!%p6040_p3), %v441_v22, %v457_v26 }
  0x76   : > { %v462_v33 = vrot.slane (!%p6040_p3), %v441_v22, %v461_v27  ;;  %v466_v34 = vrot.slane (!%p6040_p3), %v441_v22, %v465_v28 }
  0x77   : > { %473 = vst [vmem:[%s9879_s3] sm:$0xff] %v446_v29  ;;  %479 = vst [vmem:[%s9879_s3 + $0x30] sm:$0xff] %v446_v29 }
  0x78   : > { %485 = vst [vmem:[%s9879_s3 + $0x60] sm:$0xff] %v446_v29  ;;  %491 = vst [vmem:[%s9879_s3 + $0x90] sm:$0xff] %v446_v29 }
  0x79   : > { %497 = vst [vmem:[%s9879_s3 + $0xc0] sm:$0xff] %v446_v29  ;;  %503 = vst [vmem:[%s9879_s3 + $0xf0] sm:$0xff] %v446_v29 }
  0x7a   : > { %509 = vst [vmem:[%s9879_s3 + $0x120] sm:$0x1] %v446_v29  ;;  %474 = vst [vmem:[%s9879_s3 + $0x8] sm:$0xff] %v450_v30 }
  0x7b   : > { %480 = vst [vmem:[%s9879_s3 + $0x38] sm:$0xff] %v450_v30  ;;  %486 = vst [vmem:[%s9879_s3 + $0x68] sm:$0xff] %v450_v30 }
  0x7c   : > { %492 = vst [vmem:[%s9879_s3 + $0x98] sm:$0xff] %v450_v30  ;;  %498 = vst [vmem:[%s9879_s3 + $0xc8] sm:$0xff] %v450_v30 }
  0x7d   : > { %504 = vst [vmem:[%s9879_s3 + $0xf8] sm:$0xff] %v450_v30  ;;  %510 = vst [vmem:[%s9879_s3 + $0x128] sm:$0x1] %v450_v30 }
  0x7e   : > { %475 = vst [vmem:[%s9879_s3 + $0x10] sm:$0xff] %v454_v31  ;;  %481 = vst [vmem:[%s9879_s3 + $0x40] sm:$0xff] %v454_v31 }
  0x7f   : > { %487 = vst [vmem:[%s9879_s3 + $0x70] sm:$0xff] %v454_v31  ;;  %493 = vst [vmem:[%s9879_s3 + $0xa0] sm:$0xff] %v454_v31 }
  0x80   : > { %499 = vst [vmem:[%s9879_s3 + $0xd0] sm:$0xff] %v454_v31  ;;  %505 = vst [vmem:[%s9879_s3 + $0x100] sm:$0xff] %v454_v31 }
  0x81   : > { %511 = vst [vmem:[%s9879_s3 + $0x130] sm:$0x1] %v454_v31  ;;  %476 = vst [vmem:[%s9879_s3 + $0x18] sm:$0xff] %v458_v32 }
  0x82   : > { %482 = vst [vmem:[%s9879_s3 + $0x48] sm:$0xff] %v458_v32  ;;  %488 = vst [vmem:[%s9879_s3 + $0x78] sm:$0xff] %v458_v32 }
  0x83   : > { %494 = vst [vmem:[%s9879_s3 + $0xa8] sm:$0xff] %v458_v32  ;;  %500 = vst [vmem:[%s9879_s3 + $0xd8] sm:$0xff] %v458_v32 }
  0x84   : > { %506 = vst [vmem:[%s9879_s3 + $0x108] sm:$0xff] %v458_v32  ;;  %512 = vst [vmem:[%s9879_s3 + $0x138] sm:$0x1] %v458_v32 }
  0x85   : > { %477 = vst [vmem:[%s9879_s3 + $0x20] sm:$0xff] %v462_v33  ;;  %483 = vst [vmem:[%s9879_s3 + $0x50] sm:$0xff] %v462_v33 }
  0x86   : > { %489 = vst [vmem:[%s9879_s3 + $0x80] sm:$0xff] %v462_v33  ;;  %495 = vst [vmem:[%s9879_s3 + $0xb0] sm:$0xff] %v462_v33 }
  0x87   : > { %501 = vst [vmem:[%s9879_s3 + $0xe0] sm:$0xff] %v462_v33  ;;  %507 = vst [vmem:[%s9879_s3 + $0x110] sm:$0xff] %v462_v33 }
  0x88   : > { %513 = vst [vmem:[%s9879_s3 + $0x140] sm:$0x1] %v462_v33  ;;  %478 = vst [vmem:[%s9879_s3 + $0x28] sm:$0xff] %v466_v34 }
  0x89   : > { %484 = vst [vmem:[%s9879_s3 + $0x58] sm:$0xff] %v466_v34  ;;  %490 = vst [vmem:[%s9879_s3 + $0x88] sm:$0xff] %v466_v34 }
  0x8a   : > { %496 = vst [vmem:[%s9879_s3 + $0xb8] sm:$0xff] %v466_v34  ;;  %502 = vst [vmem:[%s9879_s3 + $0xe8] sm:$0xff] %v466_v34 }
  0x8b   : > { %508 = vst [vmem:[%s9879_s3 + $0x118] sm:$0xff] %v466_v34  ;;  %514 = vst [vmem:[%s9879_s3 + $0x148] sm:$0x1] %v466_v34 }
  0x8c PF: > { %v6860_v35 = vld [vmem:[%s8263_s25 + $0x4] ss:$24 sps:$4 sm:$0xff]   ;;  %v6864_v37 = vld [vmem:[%s8263_s25] ss:$24 sps:$4 sm:$0xff]   ;;  %v6866_v39 = vld [vmem:[%s8263_s25 + $0x34] ss:$24 sps:$4 sm:$0xff]  }
  0x8d   : > { %v6862_v36 = vld [vmem:[%s8263_s25 + $0x904] ss:$24 sps:$4 sm:$0xff]   ;;  %4565 = vmatprep.subr.bf16.mxu1 %v6860_v35  ;;  %v6865_v38 = vld [vmem:[%s8263_s25 + $0x900] ss:$24 sps:$4 sm:$0xff]   ;;  %v6868_v40 = vld [vmem:[%s8263_s25 + $0x934] ss:$24 sps:$4 sm:$0xff]  }
  0x8e   : > { %4778 = vmatprep.subr.bf16.mxu0 %v6862_v36  ;;  %4566 = vmatpush1.bf16.msra.mxu1 %v6864_v37  ;;  %v6870_v41 = vld [vmem:[%s8263_s25 + $0x30] ss:$24 sps:$4 sm:$0xff]   ;;  %v6872_v43 = vld [vmem:[%s8263_s25 + $0x64] ss:$24 sps:$4 sm:$0xff]   ;;  %v6876_v45 = vld [vmem:[%s8263_s25 + $0x60] ss:$24 sps:$4 sm:$0xff]  }
  0x8f   : > { %4779 = vmatpush1.bf16.msra.mxu0 %v6865_v38  ;;  %4567 = vmatprep.subr.bf16.mxu1 %v6866_v39  ;;  %v6871_v42 = vld [vmem:[%s8263_s25 + $0x930] ss:$24 sps:$4 sm:$0xff]   ;;  %v6874_v44 = vld [vmem:[%s8263_s25 + $0x964] ss:$24 sps:$4 sm:$0xff]   ;;  %v6877_v46 = vld [vmem:[%s8263_s25 + $0x960] ss:$24 sps:$4 sm:$0xff]  }
  0x90   : > { %4780 = vmatprep.subr.bf16.mxu0 %v6868_v40  ;;  %v6878_v47 = vld [vmem:[%s8263_s25 + $0x94] ss:$24 sps:$4 sm:$0xff]   ;;  %v6882_v49 = vld [vmem:[%s8263_s25 + $0x90] ss:$24 sps:$4 sm:$0xff]   ;;  %v6884_v51 = vld [vmem:[%s8263_s25 + $0xc4] ss:$24 sps:$4 sm:$0xff]  }
  0x91   : > { %v6880_v48 = vld [vmem:[%s8263_s25 + $0x994] ss:$24 sps:$4 sm:$0xff]   ;;  %v6883_v50 = vld [vmem:[%s8263_s25 + $0x990] ss:$24 sps:$4 sm:$0xff]   ;;  %v6886_v52 = vld [vmem:[%s8263_s25 + $0x9c4] ss:$24 sps:$4 sm:$0xff]  }
  0x92   : > { %4568 = vmatpush1.bf16.msra.mxu1 %v6870_v41  ;;  %v6888_v53 = vld [vmem:[%s8263_s25 + $0xc0] ss:$24 sps:$4 sm:$0xff]   ;;  %v6890_v55 = vld [vmem:[%s8263_s25 + $0xf4] ss:$24 sps:$4 sm:$0xff]   ;;  %v6894_v57 = vld [vmem:[%s8263_s25 + $0xf0] ss:$24 sps:$4 sm:$0xff]  }
  0x93   : > { %4781 = vmatpush1.bf16.msra.mxu0 %v6871_v42  ;;  %4569 = vmatprep.subr.bf16.mxu1 %v6872_v43  ;;  %v6889_v54 = vld [vmem:[%s8263_s25 + $0x9c0] ss:$24 sps:$4 sm:$0xff]   ;;  %v6892_v56 = vld [vmem:[%s8263_s25 + $0x9f4] ss:$24 sps:$4 sm:$0xff]   ;;  %v6895_v58 = vld [vmem:[%s8263_s25 + $0x9f0] ss:$24 sps:$4 sm:$0xff]  }
  0x94   : > { %4782 = vmatprep.subr.bf16.mxu0 %v6874_v44  ;;  %v6896_v59 = vld [vmem:[%s8263_s25 + $0x124] ss:$24 sps:$4 sm:$0xff]   ;;  %v6900_v61 = vld [vmem:[%s8263_s25 + $0x120] ss:$24 sps:$4 sm:$0xff]   ;;  %v6902_v63 = vld [vmem:[%s8263_s25 + $0x154] ss:$24 sps:$4 sm:$0xff]  }
  0x95   : > { %v6898_v60 = vld [vmem:[%s8263_s25 + $0xa24] ss:$24 sps:$4 sm:$0xff]   ;;  %v6901_v62 = vld [vmem:[%s8263_s25 + $0xa20] ss:$24 sps:$4 sm:$0xff]   ;;  %v6904_v0 = vld [vmem:[%s8263_s25 + $0xa54] ss:$24 sps:$4 sm:$0xff]  }
  0x96   : > { %4570 = vmatpush1.bf16.msra.mxu1 %v6876_v45  ;;  %v6906_v1 = vld [vmem:[%s8263_s25 + $0x150] ss:$24 sps:$4 sm:$0xff]   ;;  %v6908_v3 = vld [vmem:[%s8263_s25 + $0x184] ss:$24 sps:$4 sm:$0xff]   ;;  %v6912_v5 = vld [vmem:[%s8263_s25 + $0x180] ss:$24 sps:$4 sm:$0xff]  }
  0x97   : > { %4783 = vmatpush1.bf16.msra.mxu0 %v6877_v46  ;;  %4571 = vmatprep.subr.bf16.mxu1 %v6878_v47  ;;  %v6907_v2 = vld [vmem:[%s8263_s25 + $0xa50] ss:$24 sps:$4 sm:$0xff]   ;;  %v6910_v4 = vld [vmem:[%s8263_s25 + $0xa84] ss:$24 sps:$4 sm:$0xff]   ;;  %v6913_v6 = vld [vmem:[%s8263_s25 + $0xa80] ss:$24 sps:$4 sm:$0xff]  }
  0x98   : > { %4784 = vmatprep.subr.bf16.mxu0 %v6880_v48  ;;  %v6914_v7 = vld [vmem:[%s8263_s25 + $0x1b4] ss:$24 sps:$4 sm:$0xff]   ;;  %v6918_v9 = vld [vmem:[%s8263_s25 + $0x1b0] ss:$24 sps:$4 sm:$0xff]   ;;  %v6920_v11 = vld [vmem:[%s8263_s25 + $0x1e4] ss:$24 sps:$4 sm:$0xff]  }
  0x99   : > { %v6916_v8 = vld [vmem:[%s8263_s25 + $0xab4] ss:$24 sps:$4 sm:$0xff]   ;;  %v6919_v10 = vld [vmem:[%s8263_s25 + $0xab0] ss:$24 sps:$4 sm:$0xff]   ;;  %v6922_v12 = vld [vmem:[%s8263_s25 + $0xae4] ss:$24 sps:$4 sm:$0xff]  }
  0x9a   : > { %4572 = vmatpush1.bf16.msra.mxu1 %v6882_v49  ;;  %v6924_v13 = vld [vmem:[%s8263_s25 + $0x1e0] ss:$24 sps:$4 sm:$0xff]   ;;  %v6926_v15 = vld [vmem:[%s8263_s25 + $0x214] ss:$24 sps:$4 sm:$0xff]   ;;  %v6930_v17 = vld [vmem:[%s8263_s25 + $0x210] ss:$24 sps:$4 sm:$0xff]  }
  0x9b   : > { %4785 = vmatpush1.bf16.msra.mxu0 %v6883_v50  ;;  %4573 = vmatprep.subr.bf16.mxu1 %v6884_v51  ;;  %v6925_v14 = vld [vmem:[%s8263_s25 + $0xae0] ss:$24 sps:$4 sm:$0xff]   ;;  %v6928_v16 = vld [vmem:[%s8263_s25 + $0xb14] ss:$24 sps:$4 sm:$0xff]   ;;  %v6931_v18 = vld [vmem:[%s8263_s25 + $0xb10] ss:$24 sps:$4 sm:$0xff]  }
  0x9c   : > { %4786 = vmatprep.subr.bf16.mxu0 %v6886_v52  ;;  %v516_v19 = vld [vmem:[%s8261_s20 + $0x8] sm:$0xff]  ;;  %v6932_v22 = vld [vmem:[%s8263_s25 + $0x244] ss:$24 sps:$4 sm:$0xff]   ;;  %v6936_v28 = vld [vmem:[%s8263_s25 + $0x240] ss:$24 sps:$4 sm:$0xff]  }
  0x9d   : > { %v528_v20 = vld [vmem:[%s8261_s20 + $0x68] sm:$0xff]  ;;  %v684_v21 = vmul.f32 0.70710677, %v516_v19  ;;  %v522_v24 = vld [vmem:[%s8261_s20 + $0x38] sm:$0xff]  ;;  %v515_v31 = vld [vmem:[%s8261_s20] sm:$0xff]  ;;  %v600_v46 = vmul.f32 0.5, %v516_v19 }
  0x9e   : > { %4574 = vmatpush1.bf16.msra.mxu1 %v6888_v53  ;;  %v696_v23 = vmul.f32 0.70710677, %v528_v20  ;;  %v6934_v25 = vld [vmem:[%s8263_s25 + $0xb44] ss:$24 sps:$4 sm:$0xff]   ;;  %v690_v27 = vmul.f32 0.70710677, %v522_v24 }
  0x9f   : > { %4787 = vmatpush1.bf16.msra.mxu0 %v6889_v54  ;;  %4575 = vmatprep.subr.bf16.mxu1 %v6890_v55  ;;  %7724 = verf.f32 %v684_v21  ;;  %v534_v26 = vld [vmem:[%s8261_s20 + $0x98] sm:$0xff]  ;;  %v6938_v32 = vld [vmem:[%s8263_s25 + $0x274] ss:$24 sps:$4 sm:$0xff]   ;;  %v527_v34 = vld [vmem:[%s8261_s20 + $0x60] sm:$0xff]  ;;  %v683_v35 = vmul.f32 0.70710677, %v515_v31 }
  0xa0   : > { %4788 = vmatprep.subr.bf16.mxu0 %v6892_v56  ;;  %v6937_v29 = vld [vmem:[%s8263_s25 + $0xb40] ss:$24 sps:$4 sm:$0xff]   ;;  %7726 = verf.f32 %v696_v23  ;;  %v702_v30 = vmul.f32 0.70710677, %v534_v26  ;;  %v6940_v33 = vld [vmem:[%s8263_s25 + $0xb74] ss:$24 sps:$4 sm:$0xff]  }
  0xa1   : > { %7728 = verf.f32 %v690_v27  ;;  %v695_v36 = vmul.f32 0.70710677, %v527_v34  ;;  %v521_v37 = vld [vmem:[%s8261_s20 + $0x30] sm:$0xff]  ;;  %v6944_v43 = vld [vmem:[%s8263_s25 + $0x2a4] ss:$24 sps:$4 sm:$0xff]   ;;  %v612_v49 = vmul.f32 0.5, %v528_v20 }
  0xa2   : > { %4576 = vmatpush1.bf16.msra.mxu1 %v6894_v57  ;;  %7730 = verf.f32 %v702_v30  ;;  %v533_v38 = vld [vmem:[%s8261_s20 + $0x90] sm:$0xff]  ;;  %v689_v39 = vmul.f32 0.70710677, %v521_v37  ;;  %v6946_v44 = vld [vmem:[%s8263_s25 + $0xba4] ss:$24 sps:$4 sm:$0xff]   ;;  %v606_v53 = vmul.f32 0.5, %v522_v24 }
  0xa3   : > { %4789 = vmatpush1.bf16.msra.mxu0 %v6895_v58  ;;  %4577 = vmatprep.subr.bf16.mxu1 %v6896_v59  ;;  %7732 = verf.f32 %v683_v35  ;;  %v701_v40 = vmul.f32 0.70710677, %v533_v38  ;;  %v6942_v41 = vld [vmem:[%s8263_s25 + $0x270] ss:$24 sps:$4 sm:$0xff]   ;;  %v6948_v45 = vld [vmem:[%s8263_s25 + $0x2a0] ss:$24 sps:$4 sm:$0xff]  }
  0xa4   : > { %4790 = vmatprep.subr.bf16.mxu0 %v6898_v60  ;;  %7734 = verf.f32 %v695_v36  ;;  %v6943_v42 = vld [vmem:[%s8263_s25 + $0xb70] ss:$24 sps:$4 sm:$0xff]   ;;  %v6949_v48 = vld [vmem:[%s8263_s25 + $0xba0] ss:$24 sps:$4 sm:$0xff]   ;;  %v6950_v51 = vld [vmem:[%s8263_s25 + $0x2d4] ss:$24 sps:$4 sm:$0xff]  }
  0xa5   : > { %7736 = verf.f32 %v689_v39  ;;  %v6952_v55 = vld [vmem:[%s8263_s25 + $0xbd4] ss:$24 sps:$4 sm:$0xff]   ;;  %v618_v57 = vmul.f32 0.5, %v534_v26  ;;  %v6956_v21 = vld [vmem:[%s8263_s25 + $0x300] ss:$24 sps:$4 sm:$0xff]  }
  0xa6   : > { %4578 = vmatpush1.bf16.msra.mxu1 %v6900_v61  ;;  %7738 = verf.f32 %v701_v40  ;;  %v6954_v61 = vld [vmem:[%s8263_s25 + $0x2d0] ss:$24 sps:$4 sm:$0xff]   ;;  %v6959_v26 = vld [vmem:[%s8263_s25 + $0xc00] ss:$24 sps:$4 sm:$0xff]   ;;  %v6976_v35 = vld [vmem:[%s8263_s25 + $0x394] ss:$24 sps:$4 sm:$0xff]  }
  0xa7   : > { %4791 = vmatpush1.bf16.msra.mxu0 %v6901_v62  ;;  %4579 = vmatprep.subr.bf16.mxu1 %v6902_v63  ;;  %v6965_v30 = vld [vmem:[%s8263_s25 + $0xc30] ss:$24 sps:$4 sm:$0xff]   ;;  %v546_v39 = vld [vmem:[%s8261_s20 + $0xf8] sm:$0xff] }
  0xa8   : > { %4792 = vmatprep.subr.bf16.mxu0 %v6904_v0  ;;  %v599_v0 = vmul.f32 0.5, %v515_v31  ;;  %v6970_v31 = vld [vmem:[%s8263_s25 + $0x364] ss:$24 sps:$4 sm:$0xff]   ;;  %v540_v36 = vld [vmem:[%s8261_s20 + $0xc8] sm:$0xff] }
  0xa9   : > { %v7725_v47 = vpop.eup %7724  ;;  %v558_v40 = vld [vmem:[%s8261_s20 + $0x158] sm:$0xff] }
  0xaa   : > { %4580 = vmatpush1.bf16.msra.mxu1 %v6906_v1  ;;  %v7727_v50 = vpop.eup %7726  ;;  %v852_v52 = vadd.f32 1.0, %v7725_v47  ;;  %v726_v47 = vmul.f32 0.70710677, %v558_v40 }
  0xab   : > { %4793 = vmatpush1.bf16.msra.mxu0 %v6907_v2  ;;  %4581 = vmatprep.subr.bf16.mxu1 %v6908_v3  ;;  %v7729_v54 = vpop.eup %7728  ;;  %v864_v56 = vadd.f32 1.0, %v7727_v50  ;;  %v6955_v2 = vld [vmem:[%s8263_s25 + $0xbd0] ss:$24 sps:$4 sm:$0xff]  }
  0xac   : > { %4794 = vmatprep.subr.bf16.mxu0 %v6910_v4  ;;  %v7731_v58 = vpop.eup %7730  ;;  %v936_v59 = vmul.f32 %v852_v52, %v600_v46  ;;  %v858_v60 = vadd.f32 1.0, %v7729_v54  ;;  %v611_v4 = vmul.f32 0.5, %v527_v34  ;;  %v6971_v34 = vld [vmem:[%s8263_s25 + $0xc60] ss:$24 sps:$4 sm:$0xff]   ;;  %v714_v46 = vmul.f32 0.70710677, %v546_v39 }
  0xad   : > { %v948_v62 = vmul.f32 %v864_v56, %v612_v49  ;;  %v870_v63 = vadd.f32 1.0, %v7731_v58  ;;  %v7733_v1 = vpop.eup %7732  ;;  %v8507_v52 = vld [vmem:[%s8261_s20 + $0x150] sm:$0xff]  ;;  %v6985_v56 = vld [vmem:[%s8263_s25 + $0xcc4] ss:$24 sps:$4 sm:$0xff]   ;;  %v6983_v58 = vld [vmem:[%s8263_s25 + $0xcc0] ss:$24 sps:$4 sm:$0xff]  }
  0xae   : > { %4582 = vmatpush1.bf16.msra.mxu1 %v6912_v5  ;;  %v942_v3 = vmul.f32 %v858_v60, %v606_v53  ;;  %v7735_v5 = vpop.eup %7734  ;;  %v6977_v54 = vld [vmem:[%s8263_s25 + $0xc90] ss:$24 sps:$4 sm:$0xff]  }
  0xaf   : > { %4795 = vmatpush1.bf16.msra.mxu0 %v6913_v6  ;;  %4583 = vmatprep.subr.bf16.mxu1 %v6914_v7  ;;  %v8471_v6 = vpack.c.bf16 %v948_v62, %v936_v59  ;;  %v6958_v7 = vld [vmem:[%s8263_s25 + $0x304] ss:$24 sps:$4 sm:$0xff]   ;;  %v6988_v59 = vld [vmem:[%s8263_s25 + $0x3f4] ss:$24 sps:$4 sm:$0xff]   ;;  %v6986_v60 = vld [vmem:[%s8263_s25 + $0x3f0] ss:$24 sps:$4 sm:$0xff]  }
  0xb0   : > { %4796 = vmatprep.subr.bf16.mxu0 %v6916_v8  ;;  %v954_v8 = vmul.f32 %v870_v63, %v618_v57  ;;  %v6980_v57 = vld [vmem:[%s8263_s25 + $0x3c0] ss:$24 sps:$4 sm:$0xff]   ;;  %v6994_v62 = vld [vmem:[%s8263_s25 + $0x424] ss:$24 sps:$4 sm:$0xff]   ;;  %v8519_v63 = vld [vmem:[%s8261_s20 + $0x188] sm:$0xff] }
  0xb1   : > { %4597 = vmatprep.mubr.bf16.mxu1 %v8471_v6 }
  0xb2   : > { %4584 = vmatpush1.bf16.msra.mxu1 %v6918_v9  ;;  %v851_v9 = vadd.f32 1.0, %v7733_v1  ;;  %v8525_v1 = vld [vmem:[%s8261_s20 + $0x1b8] sm:$0xff] }
  0xb3   : > { %4797 = vmatpush1.bf16.msra.mxu0 %v6919_v10  ;;  %4585 = vmatprep.subr.bf16.mxu1 %v6920_v11  ;;  %v605_v10 = vmul.f32 0.5, %v521_v37  ;;  %v7737_v11 = vpop.eup %7736  ;;  %v552_v37 = vld [vmem:[%s8261_s20 + $0x128] sm:$0xff] }
  0xb4   : > { %4798 = vmatprep.subr.bf16.mxu0 %v6922_v12  ;;  %v6961_v12 = vld [vmem:[%s8263_s25 + $0xc04] ss:$24 sps:$4 sm:$0xff]  }
  0xb6   : > { %4586 = vmatpush1.bf16.msra.mxu1 %v6924_v13  ;;  %v863_v13 = vadd.f32 1.0, %v7735_v5  ;;  %v732_v5 = vmul.f32 0.70710677, %v8519_v63 }
  0xb7   : > { %4799 = vmatpush1.bf16.msra.mxu0 %v6925_v14  ;;  %4587 = vmatprep.subr.bf16.mxu1 %v6926_v15  ;;  %v617_v14 = vmul.f32 0.5, %v533_v38  ;;  %v7739_v15 = vpop.eup %7738  ;;  %v708_v38 = vmul.f32 0.70710677, %v540_v36 }
  0xb8   : > { %4800 = vmatprep.subr.bf16.mxu0 %v6928_v16  ;;  %v8476_v16 = vpack.c.bf16 %v954_v8, %v942_v3  ;;  %v947_v19 = vmul.f32 %v863_v13, %v611_v4  ;;  %v869_v20 = vadd.f32 1.0, %v7739_v15  ;;  %v624_v3 = vmul.f32 0.5, %v540_v36 }
  0xb9   : > { %7740 = verf.f32 %v708_v38  ;;  %v636_v4 = vmul.f32 0.5, %v552_v37  ;;  %v738_v13 = vmul.f32 0.70710677, %v8525_v1 }
  0xba   : > { %4588 = vmatpush1.bf16.msra.mxu1 %v6930_v17  ;;  %v935_v17 = vmul.f32 %v851_v9, %v599_v0  ;;  %4810 = vmatprep.mubr.bf16.mxu0 %v8476_v16  ;;  %v953_v24 = vmul.f32 %v869_v20, %v617_v14  ;;  %v8522_v0 = vld [vmem:[%s8261_s20 + $0x1e8] sm:$0xff]  ;;  %v6997_v9 = vld [vmem:[%s8263_s25 + $0xd24] ss:$24 sps:$4 sm:$0xff]  }
  0xbb   : > { %4801 = vmatpush1.bf16.msra.mxu0 %v6931_v18  ;;  %4589 = vmatprep.subr.bf16.mxu1 %v6932_v22  ;;  %v857_v18 = vadd.f32 1.0, %v7737_v11  ;;  %v642_v11 = vmul.f32 0.5, %v558_v40  ;;  %v8536_v14 = vld [vmem:[%s8261_s20 + $0x180] sm:$0xff] }
  0xbc   : > { %4802 = vmatprep.subr.bf16.mxu0 %v6934_v25  ;;  %v8480_v23 = vpack.c.bf16 %v947_v19, %v935_v17  ;;  %v6964_v25 = vld [vmem:[%s8263_s25 + $0x334] ss:$24 sps:$4 sm:$0xff]   ;;  %v6992_v17 = vld [vmem:[%s8263_s25 + $0x420] ss:$24 sps:$4 sm:$0xff]  }
  0xbd   : > { %v941_v22 = vmul.f32 %v857_v18, %v605_v10  ;;  %v630_v10 = vmul.f32 0.5, %v546_v39  ;;  %v6995_v39 = vld [vmem:[%s8263_s25 + $0xd20] ss:$24 sps:$4 sm:$0xff]  }
  0xbe   : > { %4590 = vmatpush1.bf16.msra.mxu1 %v6936_v28  ;;  %v6967_v28 = vld [vmem:[%s8263_s25 + $0xc34] ss:$24 sps:$4 sm:$0xff]  }
  0xbf   : > { %4803 = vmatpush1.bf16.msra.mxu0 %v6937_v29  ;;  %4591 = vmatprep.subr.bf16.mxu1 %v6938_v32  ;;  %v8485_v27 = vpack.c.bf16 %v953_v24, %v941_v22  ;;  %v6962_v29 = vld [vmem:[%s8263_s25 + $0x330] ss:$24 sps:$4 sm:$0xff]   ;;  %v6968_v32 = vld [vmem:[%s8263_s25 + $0x360] ss:$24 sps:$4 sm:$0xff]  }
  0xc0   : > { %4804 = vmatprep.subr.bf16.mxu0 %v6940_v33  ;;  %v6973_v33 = vld [vmem:[%s8263_s25 + $0xc64] ss:$24 sps:$4 sm:$0xff]  }
  0xc2   : > { %4592 = vmatpush1.bf16.msra.mxu1 %v6942_v41  ;;  %v6974_v41 = vld [vmem:[%s8263_s25 + $0x390] ss:$24 sps:$4 sm:$0xff]  }
  0xc3   : > { %4805 = vmatpush1.bf16.msra.mxu0 %v6943_v42  ;;  %4593 = vmatprep.subr.bf16.mxu1 %v6944_v43  ;;  %v6979_v42 = vld [vmem:[%s8263_s25 + $0xc94] ss:$24 sps:$4 sm:$0xff]   ;;  %v720_v43 = vmul.f32 0.70710677, %v552_v37  ;;  %v7741_v8 = vpop.eup %7740 }
  0xc4   : > { %4806 = vmatprep.subr.bf16.mxu0 %v6946_v44  ;;  %v539_v44 = vld [vmem:[%s8261_s20 + $0xc0] sm:$0xff]  ;;  %v876_v18 = vadd.f32 1.0, %v7741_v8  ;;  %v8547_v37 = vld [vmem:[%s8261_s20 + $0x1b0] sm:$0xff] }
  0xc5   : > { %7742 = verf.f32 %v720_v43  ;;  %v707_v49 = vmul.f32 0.70710677, %v539_v44  ;;  %v623_v19 = vmul.f32 0.5, %v539_v44  ;;  %v8552_v43 = vld [vmem:[%s8261_s20 + $0x210] sm:$0xff]  ;;  %v8578_v8 = vld [vmem:[%s8261_s20 + $0x240] sm:$0x1] }
  0xc6   : > { %4594 = vmatpush1.bf16.msra.mxu1 %v6948_v45  ;;  %v6982_v45 = vld [vmem:[%s8263_s25 + $0x3c4] ss:$24 sps:$4 sm:$0xff]   ;;  %7744 = verf.f32 %v714_v46  ;;  %v7003_v46 = vld [vmem:[%s8263_s25 + $0xd54] ss:$24 sps:$4 sm:$0xff]  }
  0xc7   : > { %4807 = vmatpush1.bf16.msra.mxu0 %v6949_v48  ;;  %4595 = vmatprep.subr.bf16.mxu1 %v6950_v51  ;;  %v551_v48 = vld [vmem:[%s8261_s20 + $0x120] sm:$0xff]  ;;  %v545_v51 = vld [vmem:[%s8261_s20 + $0xf0] sm:$0xff]  ;;  %7746 = verf.f32 %v726_v47 }
  0xc8   : > { %4808 = vmatprep.subr.bf16.mxu0 %v6952_v55  ;;  %v719_v50 = vmul.f32 0.70710677, %v551_v48  ;;  %v713_v53 = vmul.f32 0.70710677, %v545_v51  ;;  %v725_v55 = vmul.f32 0.70710677, %v8507_v52  ;;  %7748 = verf.f32 %v707_v49 }
  0xca   : > { %4596 = vmatpush1.bf16.msra.mxu1 %v6954_v61  ;;  %7750 = verf.f32 %v719_v50  ;;  %v6991_v61 = vld [vmem:[%s8263_s25 + $0xcf4] ss:$24 sps:$4 sm:$0xff]  }
  0xcb   : > { %4809 = vmatpush1.bf16.msra.mxu0 %v6955_v2  ;;  %4636 = vmatprep.subr.bf16.mxu1 %v6958_v7  ;;  %7752 = verf.f32 %v713_v53  ;;  %v6989_v2 = vld [vmem:[%s8263_s25 + $0xcf0] ss:$24 sps:$4 sm:$0xff]   ;;  %v744_v7 = vmul.f32 0.70710677, %v8522_v0 }
  0xcc   : > { %4849 = vmatprep.subr.bf16.mxu0 %v6961_v12  ;;  %7754 = verf.f32 %v725_v55  ;;  %v8532_v12 = vld [vmem:[%s8261_s20 + $0x218] sm:$0xff] }
  0xcd   : > { %4598 = vmatmul.mubr.bf16.vlgmr.msra.gmra.mrb[0].mxu1 %v8480_v23  ;;  %7756 = verf.f32 %v732_v5  ;;  %v750_v20 = vmul.f32 0.70710677, %v8532_v12  ;;  %v7006_v55 = vld [vmem:[%s8263_s25 + $0x484] ss:$24 sps:$4 sm:$0xff]  }
  0xce   : > { %4637 = vmatpush1.bf16.msra.mxu1 %v6956_v21  ;;  %4811 = vmatmul.mubr.bf16.vlgmr.msra.gmra.mrb[0].mxu0 %v8485_v27  ;;  %v8541_v21 = vld [vmem:[%s8261_s20 + $0x1e0] sm:$0xff]  ;;  %7758 = verf.f32 %v744_v7  ;;  %v648_v7 = vmul.f32 0.5, %v8519_v63 }
  0xcf   : > { %4638 = vmatprep.subr.bf16.mxu1 %v6964_v25  ;;  %4850 = vmatpush1.bf16.msra.mxu0 %v6959_v26  ;;  %v7743_v15 = vpop.eup %7742  ;;  %v635_v25 = vmul.f32 0.5, %v551_v48  ;;  %v629_v26 = vmul.f32 0.5, %v545_v51  ;;  %7760 = verf.f32 %v738_v13  ;;  %v743_v36 = vmul.f32 0.70710677, %v8541_v21  ;;  %v7001_v51 = vld [vmem:[%s8263_s25 + $0xd50] ss:$24 sps:$4 sm:$0xff]  }
  0xd0   : > { %4851 = vmatprep.subr.bf16.mxu0 %v6967_v28  ;;  %v7745_v22 = vpop.eup %7744  ;;  %v888_v24 = vadd.f32 1.0, %v7743_v15  ;;  %7762 = verf.f32 %v750_v20  ;;  %v660_v13 = vmul.f32 0.5, %v8522_v0  ;;  %v7010_v0 = vld [vmem:[%s8263_s25 + $0x4b0] ss:$24 sps:$4 sm:$0xff]  }
  0xd1   : > { %v7747_v28 = vpop.eup %7746 }
  0xd2   : > { %4639 = vmatpush1.bf16.msra.mxu1 %v6962_v29  ;;  %v7000_v29 = vld [vmem:[%s8263_s25 + $0x454] ss:$24 sps:$4 sm:$0xff]  }
  0xd3   : > { %4640 = vmatprep.subr.bf16.mxu1 %v6970_v31  ;;  %4852 = vmatpush1.bf16.msra.mxu0 %v6965_v30  ;;  %v960_v30 = vmul.f32 %v876_v18, %v624_v3  ;;  %v882_v31 = vadd.f32 1.0, %v7745_v22  ;;  %v8571_v3 = vld [vmem:[%s8261_s20 + $0x278] sm:$0x1]  ;;  %v654_v22 = vmul.f32 0.5, %v8525_v1 }
  0xd4   : > { %4853 = vmatprep.subr.bf16.mxu0 %v6973_v33  ;;  %v7749_v33 = vpop.eup %7748 }
  0xd5   : > { %v7751_v38 = vpop.eup %7750  ;;  %v966_v40 = vmul.f32 %v882_v31, %v630_v10  ;;  %v7015_v31 = vld [vmem:[%s8263_s25 + $0xdb4] ss:$24 sps:$4 sm:$0xff]  }
  0xd6   : > { %4641 = vmatpush1.bf16.msra.mxu1 %v6968_v32  ;;  %v731_v32 = vmul.f32 0.70710677, %v8536_v14  ;;  %v7753_v44 = vpop.eup %7752  ;;  %v887_v49 = vadd.f32 1.0, %v7751_v38  ;;  %v659_v38 = vmul.f32 0.5, %v8541_v21 }
  0xd7   : > { %4642 = vmatprep.subr.bf16.mxu1 %v6976_v35  ;;  %4854 = vmatpush1.bf16.msra.mxu0 %v6971_v34  ;;  %v972_v34 = vmul.f32 %v888_v24, %v636_v4  ;;  %v894_v35 = vadd.f32 1.0, %v7747_v28  ;;  %v7755_v50 = vpop.eup %7754  ;;  %v881_v53 = vadd.f32 1.0, %v7753_v44  ;;  %v755_v24 = vmul.f32 0.70710677, %v8578_v8  ;;  %v7021_v44 = vld [vmem:[%s8263_s25 + $0xde4] ss:$24 sps:$4 sm:$0xff]  }
  0xd8   : > { %4855 = vmatprep.subr.bf16.mxu0 %v6979_v42  ;;  %v641_v42 = vmul.f32 0.5, %v8507_v52  ;;  %7764 = verf.f32 %v731_v32  ;;  %v7757_v10 = vpop.eup %7756  ;;  %v666_v28 = vmul.f32 0.5, %v8532_v12 }
  0xd9   : > { %v8556_v47 = vpack.c.bf16 %v972_v34, %v960_v30  ;;  %v978_v48 = vmul.f32 %v894_v35, %v642_v11  ;;  %7766 = verf.f32 %v743_v36  ;;  %v7007_v11 = vld [vmem:[%s8263_s25 + $0xd80] ss:$24 sps:$4 sm:$0xff]   ;;  %v7759_v18 = vpop.eup %7758  ;;  %v900_v20 = vadd.f32 1.0, %v7757_v10  ;;  %v7013_v35 = vld [vmem:[%s8263_s25 + $0xdb0] ss:$24 sps:$4 sm:$0xff]  }
  0xda   : > { %4643 = vmatpush1.bf16.msra.mxu1 %v6974_v41  ;;  %v875_v41 = vadd.f32 1.0, %v7749_v33  ;;  %v647_v33 = vmul.f32 0.5, %v8536_v14  ;;  %v7016_v14 = vld [vmem:[%s8263_s25 + $0x4e0] ss:$24 sps:$4 sm:$0xff]   ;;  %v8631_v10 = vld [vmem:[%s8261_s20 + $0xa8] sm:$0xff] }
  0xdb   : > { %4644 = vmatprep.subr.bf16.mxu1 %v6982_v45  ;;  %4856 = vmatpush1.bf16.msra.mxu0 %v6977_v54  ;;  %v6998_v45 = vld [vmem:[%s8263_s25 + $0x450] ss:$24 sps:$4 sm:$0xff]   ;;  %v737_v54 = vmul.f32 0.70710677, %v8547_v37  ;;  %v984_v32 = vmul.f32 %v900_v20, %v648_v7  ;;  %v678_v20 = vmul.f32 0.5, %v8571_v3 }
  0xdc   : > { %4857 = vmatprep.subr.bf16.mxu0 %v6985_v56  ;;  %v959_v52 = vmul.f32 %v875_v41, %v623_v19  ;;  %4607 = vmatprep.mubr.bf16.mxu1 %v8556_v47  ;;  %v8562_v56 = vpack.c.bf16 %v978_v48, %v966_v40  ;;  %v7012_v19 = vld [vmem:[%s8263_s25 + $0x4b4] ss:$24 sps:$4 sm:$0xff]   ;;  %v7018_v40 = vld [vmem:[%s8263_s25 + $0x4e4] ss:$24 sps:$4 sm:$0xff]  }
  0xdd   : > { %7768 = verf.f32 %v737_v54  ;;  %v8628_v7 = vld [vmem:[%s8261_s20 + $0x48] sm:$0xff] }
  0xde   : > { %4645 = vmatpush1.bf16.msra.mxu1 %v6980_v57  ;;  %v971_v57 = vmul.f32 %v887_v49, %v635_v25  ;;  %4820 = vmatprep.mubr.bf16.mxu0 %v8562_v56  ;;  %v7761_v25 = vpop.eup %7760  ;;  %v8607_v49 = vld [vmem:[%s8261_s20 + $0x18] sm:$0xff] }
  0xdf   : > { %4646 = vmatprep.subr.bf16.mxu1 %v6988_v59  ;;  %4858 = vmatpush1.bf16.msra.mxu0 %v6983_v58  ;;  %v893_v58 = vadd.f32 1.0, %v7755_v50  ;;  %v749_v59 = vmul.f32 0.70710677, %v8552_v43  ;;  %v7763_v30 = vpop.eup %7762  ;;  %v906_v1 = vadd.f32 1.0, %v7761_v25  ;;  %v653_v50 = vmul.f32 0.5, %v8547_v37 }
  0xe0   : > { %4859 = vmatprep.subr.bf16.mxu0 %v6991_v61  ;;  %v7009_v61 = vld [vmem:[%s8263_s25 + $0xd84] ss:$24 sps:$4 sm:$0xff]   ;;  %v8574_v4 = vpack.c.bf16 %v971_v57, %v959_v52  ;;  %v918_v36 = vadd.f32 1.0, %v7763_v30  ;;  %v686_v52 = vmul.f32 0.70710677, %v8607_v49  ;;  %v665_v37 = vmul.f32 0.5, %v8552_v43 }
  0xe1   : > { %v977_v5 = vmul.f32 %v893_v58, %v641_v42  ;;  %7770 = verf.f32 %v749_v59  ;;  %v990_v41 = vmul.f32 %v906_v1, %v654_v22  ;;  %v7025_v25 = vld [vmem:[%s8263_s25 + $0xe10] ss:$24 sps:$4 sm:$0xff]  }
  0xe2   : > { %4647 = vmatpush1.bf16.msra.mxu1 %v6986_v60  ;;  %v7004_v60 = vld [vmem:[%s8263_s25 + $0x480] ss:$24 sps:$4 sm:$0xff]   ;;  %v7765_v34 = vpop.eup %7764 }
  0xe3   : > { %4648 = vmatprep.subr.bf16.mxu1 %v6994_v62  ;;  %4860 = vmatpush1.bf16.msra.mxu0 %v6989_v2  ;;  %v965_v62 = vmul.f32 %v881_v53, %v629_v26  ;;  %v8568_v2 = vld [vmem:[%s8261_s20 + $0x248] sm:$0x1]  ;;  %v912_v26 = vadd.f32 1.0, %v7759_v18  ;;  %v899_v42 = vadd.f32 1.0, %v7765_v34  ;;  %v8615_v53 = vld [vmem:[%s8261_s20 + $0x10] sm:$0xff] }
  0xe4   : > { %4861 = vmatprep.subr.bf16.mxu0 %v6997_v9  ;;  %v8581_v9 = vld [vmem:[%s8261_s20 + $0x270] sm:$0x1]  ;;  %v756_v15 = vmul.f32 0.70710677, %v8568_v2  ;;  %4608 = vmatmul.mubr.bf16.gmra.mrb[4].mxu1 %v8574_v4  ;;  %v7028_v34 = vld [vmem:[%s8263_s25 + $0x540] ss:$24 sps:$4 sm:$0xff]  }
  0xe5   : > { %v8589_v63 = vpack.c.bf16 %v977_v5, %v965_v62  ;;  %v996_v12 = vmul.f32 %v912_v26, %v660_v13  ;;  %v983_v21 = vmul.f32 %v899_v42, %v647_v33  ;;  %v7024_v62 = vld [vmem:[%s8263_s25 + $0x514] ss:$24 sps:$4 sm:$0xff]   ;;  %v692_v26 = vmul.f32 0.70710677, %v8628_v7 }
  0xe6   : > { %4649 = vmatpush1.bf16.msra.mxu1 %v6992_v17  ;;  %v762_v17 = vmul.f32 0.70710677, %v8571_v3  ;;  %7772 = verf.f32 %v756_v15  ;;  %v7027_v13 = vld [vmem:[%s8263_s25 + $0xe14] ss:$24 sps:$4 sm:$0xff]  }
  0xe7   : > { %4650 = vmatprep.subr.bf16.mxu1 %v7000_v29  ;;  %4862 = vmatpush1.bf16.msra.mxu0 %v6995_v39  ;;  %v761_v29 = vmul.f32 0.70710677, %v8581_v9  ;;  %v7767_v39 = vpop.eup %7766  ;;  %v7036_v42 = vld [vmem:[%s8263_s25 + $0x574] ss:$24 sps:$4 sm:$0xff]  }
  0xe8   : > { %4863 = vmatprep.subr.bf16.mxu0 %v7003_v46  ;;  %4821 = vmatmul.mubr.bf16.gmra.mrb[4].mxu0 %v8589_v63  ;;  %7774 = verf.f32 %v762_v17  ;;  %v1002_v46 = vmul.f32 %v918_v36, %v666_v28  ;;  %v911_v48 = vadd.f32 1.0, %v7767_v39  ;;  %v7769_v54 = vpop.eup %7768  ;;  %v685_v17 = vmul.f32 0.70710677, %v8615_v53 }
  0xe9   : > { %7776 = verf.f32 %v755_v24  ;;  %v905_v5 = vadd.f32 1.0, %v7769_v54  ;;  %v704_v28 = vmul.f32 0.70710677, %v8631_v10  ;;  %v8674_v54 = vld [vmem:[%s8261_s20 + $0xd0] sm:$0xff] }
  0xea   : > { %4651 = vmatpush1.bf16.msra.mxu1 %v6998_v45  ;;  %7778 = verf.f32 %v761_v29  ;;  %v8604_v45 = vpack.c.bf16 %v996_v12, %v984_v32  ;;  %v8619_v57 = vpack.c.bf16 %v1002_v46, %v990_v41  ;;  %v995_v58 = vmul.f32 %v911_v48, %v659_v38  ;;  %v8646_v29 = vld [vmem:[%s8261_s20 + $0x40] sm:$0xff]  ;;  %v8665_v46 = vld [vmem:[%s8261_s20 + $0xd8] sm:$0xff]  ;;  %v7039_v48 = vld [vmem:[%s8263_s25 + $0xe74] ss:$24 sps:$4 sm:$0xff]  }
  0xeb   : > { %4652 = vmatprep.subr.bf16.mxu1 %v7006_v55  ;;  %4864 = vmatpush1.bf16.msra.mxu0 %v7001_v51  ;;  %v8611_v51 = vld [vmem:[%s8261_s20 + $0x78] sm:$0xff]  ;;  %7780 = verf.f32 %v686_v52  ;;  %v989_v18 = vmul.f32 %v905_v5, %v653_v50  ;;  %v8652_v32 = vld [vmem:[%s8261_s20 + $0xa0] sm:$0xff]  ;;  %v677_v12 = vmul.f32 0.5, %v8581_v9 }
  0xec   : > { %4865 = vmatprep.subr.bf16.mxu0 %v7009_v61  ;;  %v7019_v55 = vld [vmem:[%s8263_s25 + $0xde0] ss:$24 sps:$4 sm:$0xff]   ;;  %4617 = vmatprep.mubr.bf16.mxu1 %v8604_v45  ;;  %v698_v59 = vmul.f32 0.70710677, %v8611_v51  ;;  %v7771_v61 = vpop.eup %7770  ;;  %v8636_v43 = vpack.c.bf16 %v995_v58, %v983_v21  ;;  %v7033_v38 = vld [vmem:[%s8263_s25 + $0xe44] ss:$24 sps:$4 sm:$0xff]  }
  0xed   : > { %4830 = vmatprep.mubr.bf16.mxu0 %v8619_v57  ;;  %v917_v15 = vadd.f32 1.0, %v7771_v61  ;;  %v7031_v41 = vld [vmem:[%s8263_s25 + $0xe40] ss:$24 sps:$4 sm:$0xff]   ;;  %v8681_v61 = vld [vmem:[%s8261_s20 + $0x130] sm:$0xff] }
  0xee   : > { %4653 = vmatpush1.bf16.msra.mxu1 %v7004_v60  ;;  %v8624_v60 = vld [vmem:[%s8261_s20 + $0x70] sm:$0xff]  ;;  %7782 = verf.f32 %v698_v59  ;;  %v8671_v52 = vld [vmem:[%s8261_s20 + $0x138] sm:$0xff]  ;;  %v602_v59 = vmul.f32 0.5, %v8607_v49 }
  0xef   : > { %4654 = vmatprep.subr.bf16.mxu1 %v7012_v19  ;;  %4866 = vmatpush1.bf16.msra.mxu0 %v7007_v11  ;;  %v7022_v11 = vld [vmem:[%s8263_s25 + $0x510] ss:$24 sps:$4 sm:$0xff]   ;;  %v672_v19 = vmul.f32 0.5, %v8568_v2  ;;  %v697_v22 = vmul.f32 0.70710677, %v8624_v60  ;;  %7784 = verf.f32 %v685_v17 }
  0xf0   : > { %4867 = vmatprep.subr.bf16.mxu0 %v7015_v31  ;;  %v7773_v24 = vpop.eup %7772  ;;  %4618 = vmatmul.mubr.bf16.gmra.mrb[8].mxu1 %v8636_v43  ;;  %v7030_v2 = vld [vmem:[%s8263_s25 + $0x544] ss:$24 sps:$4 sm:$0xff]   ;;  %v671_v31 = vmul.f32 0.5, %v8578_v8  ;;  %v7037_v49 = vld [vmem:[%s8263_s25 + $0xe70] ss:$24 sps:$4 sm:$0xff]  }
  0xf1   : > { %v924_v3 = vadd.f32 1.0, %v7773_v24  ;;  %7786 = verf.f32 %v697_v22  ;;  %v721_v24 = vmul.f32 0.70710677, %v8681_v61 }
  0xf2   : > { %4655 = vmatpush1.bf16.msra.mxu1 %v7010_v0  ;;  %v1001_v0 = vmul.f32 %v917_v15, %v665_v37  ;;  %v7775_v30 = vpop.eup %7774  ;;  %7788 = verf.f32 %v692_v26  ;;  %v722_v15 = vmul.f32 0.70710677, %v8671_v52 }
  0xf3   : > { %4656 = vmatprep.subr.bf16.mxu1 %v7018_v40  ;;  %4868 = vmatpush1.bf16.msra.mxu0 %v7013_v35  ;;  %v7777_v1 = vpop.eup %7776  ;;  %v930_v35 = vadd.f32 1.0, %v7775_v30  ;;  %v1008_v8 = vmul.f32 %v924_v3, %v672_v19  ;;  %7790 = verf.f32 %v704_v28  ;;  %v691_v40 = vmul.f32 0.70710677, %v8646_v29  ;;  %v7045_v3 = vld [vmem:[%s8263_s25 + $0xea4] ss:$24 sps:$4 sm:$0xff]  }
  0xf4   : > { %4869 = vmatprep.subr.bf16.mxu0 %v7021_v44  ;;  %v8654_v33 = vpack.c.bf16 %v1001_v0, %v989_v18  ;;  %v7779_v36 = vpop.eup %7778  ;;  %v923_v39 = vadd.f32 1.0, %v7777_v1  ;;  %v703_v44 = vmul.f32 0.70710677, %v8652_v32  ;;  %v7040_v0 = vld [vmem:[%s8263_s25 + $0x5a0] ss:$24 sps:$4 sm:$0xff]   ;;  %v601_v28 = vmul.f32 0.5, %v8615_v53 }
  0xf5   : > { %v1014_v9 = vmul.f32 %v930_v35, %v678_v20  ;;  %v8668_v21 = vpack.c.bf16 %v1008_v8, %v1008_v8  ;;  %7792 = verf.f32 %v691_v40  ;;  %v709_v20 = vmul.f32 0.70710677, %v8674_v54  ;;  %v7048_v53 = vld [vmem:[%s8263_s25 + $0x5d4] ss:$24 sps:$4 sm:$0xff]   ;;  %v8710_v40 = vld [vmem:[%s8261_s20 + $0x198] sm:$0xff] }
  0xf6   : > { %4657 = vmatpush1.bf16.msra.mxu1 %v7016_v14  ;;  %4831 = vmatmul.mubr.bf16.gmra.mrb[8].mxu0 %v8654_v33  ;;  %v929_v14 = vadd.f32 1.0, %v7779_v36  ;;  %v1007_v50 = vmul.f32 %v923_v39, %v671_v31  ;;  %7794 = verf.f32 %v703_v44  ;;  %v613_v30 = vmul.f32 0.5, %v8624_v60  ;;  %v7051_v8 = vld [vmem:[%s8263_s25 + $0xed4] ss:$24 sps:$4 sm:$0xff]  }
  0xf7   : > { %4658 = vmatprep.subr.bf16.mxu1 %v7024_v62  ;;  %4870 = vmatpush1.bf16.msra.mxu0 %v7019_v55  ;;  %v7034_v55 = vld [vmem:[%s8263_s25 + $0x570] ss:$24 sps:$4 sm:$0xff]   ;;  %v8677_v58 = vpack.c.bf16 %v1014_v9, %v1014_v9  ;;  %v7781_v62 = vpop.eup %7780  ;;  %v620_v36 = vmul.f32 0.5, %v8631_v10  ;;  %v619_v10 = vmul.f32 0.5, %v8652_v32  ;;  %v7054_v32 = vld [vmem:[%s8263_s25 + $0x604] ss:$24 sps:$4 sm:$0xff]  }
  0xf8   : > { %4871 = vmatprep.subr.bf16.mxu0 %v7027_v13  ;;  %v1013_v37 = vmul.f32 %v929_v14, %v677_v12  ;;  %4627 = vmatprep.mubr.bf16.mxu1 %v8668_v21  ;;  %v8684_v5 = vpack.c.bf16 %v1007_v50, %v1007_v50  ;;  %v710_v13 = vmul.f32 0.70710677, %v8665_v46  ;;  %v7783_v17 = vpop.eup %7782  ;;  %v854_v19 = vadd.f32 1.0, %v7781_v62  ;;  %v7043_v12 = vld [vmem:[%s8263_s25 + $0xea0] ss:$24 sps:$4 sm:$0xff]   ;;  %v8718_v44 = vld [vmem:[%s8261_s20 + $0x190] sm:$0xff] }
  0xf9   : > { %4840 = vmatprep.mubr.bf16.mxu0 %v8677_v58  ;;  %v866_v22 = vadd.f32 1.0, %v7783_v17  ;;  %v607_v14 = vmul.f32 0.5, %v8646_v29  ;;  %v7046_v29 = vld [vmem:[%s8263_s25 + $0x5d0] ss:$24 sps:$4 sm:$0xff]  }
  0xfa   : > { %4659 = vmatpush1.bf16.msra.mxu1 %v7022_v11  ;;  %v614_v11 = vmul.f32 0.5, %v8611_v51  ;;  %v8691_v18 = vpack.c.bf16 %v1013_v37, %v1013_v37  ;;  %v7042_v51 = vld [vmem:[%s8263_s25 + $0x5a4] ss:$24 sps:$4 sm:$0xff]   ;;  %7796 = verf.f32 %v710_v13  ;;  %v938_v26 = vmul.f32 %v854_v19, %v602_v59 }
  0xfb   : > { %4660 = vmatprep.subr.bf16.mxu1 %v7030_v2  ;;  %4872 = vmatpush1.bf16.msra.mxu0 %v7025_v25  ;;  %v7785_v25 = vpop.eup %7784  ;;  %7798 = verf.f32 %v722_v15  ;;  %v734_v59 = vmul.f32 0.70710677, %v8710_v40 }
  0xfc   : > { %4873 = vmatprep.subr.bf16.mxu0 %v7033_v38  ;;  %4628 = vmatmul.mubr.bf16.gmra.mrb[12].mxu1 %v8684_v5  ;;  %v7787_v2 = vpop.eup %7786  ;;  %v950_v31 = vmul.f32 %v866_v22, %v614_v11  ;;  %v853_v1 = vadd.f32 1.0, %v7785_v25  ;;  %7800 = verf.f32 %v709_v20  ;;  %v7049_v20 = vld [vmem:[%s8263_s25 + $0xed0] ss:$24 sps:$4 sm:$0xff]   ;;  %v626_v25 = vmul.f32 0.5, %v8665_v46 }
  0xfd   : > { %v7789_v35 = vpop.eup %7788  ;;  %v865_v60 = vadd.f32 1.0, %v7787_v2  ;;  %7802 = verf.f32 %v721_v24  ;;  %v638_v2 = vmul.f32 0.5, %v8671_v52  ;;  %v625_v46 = vmul.f32 0.5, %v8674_v54  ;;  %v7063_v54 = vld [vmem:[%s8263_s25 + $0xf34] ss:$24 sps:$4 sm:$0xff]  }
  0xfe   : > { %4661 = vmatpush1.bf16.msra.mxu1 %v7028_v34  ;;  %v608_v34 = vmul.f32 0.5, %v8628_v7  ;;  %4841 = vmatmul.mubr.bf16.gmra.mrb[12].mxu0 %v8691_v18  ;;  %v7791_v38 = vpop.eup %7790  ;;  %v8707_v39 = vpack.c.bf16 %v950_v31, %v938_v26  ;;  %v860_v7 = vadd.f32 1.0, %v7789_v35  ;;  %7804 = verf.f32 %v734_v59  ;;  %v7055_v31 = vld [vmem:[%s8263_s25 + $0xf00] ss:$24 sps:$4 sm:$0xff]   ;;  %v7066_v59 = vld [vmem:[%s8263_s25 + $0x664] ss:$24 sps:$4 sm:$0xff]  }
  0xff   : > { %4662 = vmatprep.subr.bf16.mxu1 %v7036_v42  ;;  %4874 = vmatpush1.bf16.msra.mxu0 %v7031_v41  ;;  %v8713_v41 = vld [vmem:[%s8261_s20 + $0x1f8] sm:$0xff]  ;;  %v937_v42 = vmul.f32 %v853_v1, %v601_v28  ;;  %v872_v9 = vadd.f32 1.0, %v7791_v38  ;;  %v7793_v50 = vpop.eup %7792 }
 0x100   : > { %4875 = vmatprep.subr.bf16.mxu0 %v7039_v48  ;;  %v8721_v48 = vld [vmem:[%s8261_s20 + $0x1f0] sm:$0xff]  ;;  %4668 = vmatprep.mubr.bf16.mxu1 %v8707_v39  ;;  %v944_v37 = vmul.f32 %v860_v7, %v608_v34  ;;  %v746_v62 = vmul.f32 0.70710677, %v8713_v41  ;;  %v7795_v11 = vpop.eup %7794  ;;  %v859_v15 = vadd.f32 1.0, %v7793_v50  ;;  %v7057_v28 = vld [vmem:[%s8263_s25 + $0xf04] ss:$24 sps:$4 sm:$0xff]  }
 0x101   : > { %v956_v13 = vmul.f32 %v872_v9, %v620_v36  ;;  %v871_v17 = vadd.f32 1.0, %v7795_v11  ;;  %v745_v19 = vmul.f32 0.70710677, %v8721_v48  ;;  %v8748_v7 = vld [vmem:[%s8261_s20 + $0x250] sm:$0x1]  ;;  %v650_v11 = vmul.f32 0.5, %v8710_v40 }
 0x102   : > { %4663 = vmatpush1.bf16.msra.mxu1 %v7034_v55  ;;  %v949_v55 = vmul.f32 %v865_v60, %v613_v30  ;;  %v943_v24 = vmul.f32 %v859_v15, %v607_v14  ;;  %7806 = verf.f32 %v746_v62  ;;  %v7061_v62 = vld [vmem:[%s8263_s25 + $0xf30] ss:$24 sps:$4 sm:$0xff]   ;;  %v662_v15 = vmul.f32 0.5, %v8713_v41  ;;  %v7072_v40 = vld [vmem:[%s8263_s25 + $0x694] ss:$24 sps:$4 sm:$0xff]  }
 0x103   : > { %4664 = vmatprep.subr.bf16.mxu1 %v7042_v51  ;;  %4876 = vmatpush1.bf16.msra.mxu0 %v7037_v49  ;;  %v733_v49 = vmul.f32 0.70710677, %v8718_v44  ;;  %v7052_v51 = vld [vmem:[%s8263_s25 + $0x600] ss:$24 sps:$4 sm:$0xff]   ;;  %v8732_v22 = vpack.c.bf16 %v956_v13, %v944_v37  ;;  %v955_v30 = vmul.f32 %v871_v17, %v619_v10  ;;  %v7058_v10 = vld [vmem:[%s8263_s25 + $0x630] ss:$24 sps:$4 sm:$0xff]  }
 0x104   : > { %4877 = vmatprep.subr.bf16.mxu0 %v7045_v3  ;;  %v8735_v26 = vpack.c.bf16 %v949_v55, %v937_v42  ;;  %v7069_v13 = vld [vmem:[%s8263_s25 + $0xf64] ss:$24 sps:$4 sm:$0xff]  }
 0x105   : > { %9900 = vst [vmem:[#allocation6_spill] sm:$0xff] %v8732_v22  ;;  %7808 = verf.f32 %v733_v49  ;;  %4881 = vmatprep.mubr.bf16.mxu0 %v8732_v22  ;;  %v8742_v35 = vpack.c.bf16 %v955_v30, %v943_v24  ;;  %v7064_v49 = vld [vmem:[%s8263_s25 + $0x660] ss:$24 sps:$4 sm:$0xff]  }
 0x106   : > { %4665 = vmatpush1.bf16.msra.mxu1 %v7040_v0  ;;  %v7797_v0 = vpop.eup %7796  ;;  %7810 = verf.f32 %v745_v19 }
 0x107   : > { %4666 = vmatprep.subr.bf16.mxu1 %v7048_v53  ;;  %4878 = vmatpush1.bf16.msra.mxu0 %v7043_v12  ;;  %v7799_v3 = vpop.eup %7798  ;;  %v878_v1 = vadd.f32 1.0, %v7797_v0  ;;  %9901 = vst [vmem:[#allocation7_spill] sm:$0xff] %v8742_v35  ;;  %v7060_v12 = vld [vmem:[%s8263_s25 + $0x634] ss:$24 sps:$4 sm:$0xff]   ;;  %v637_v53 = vmul.f32 0.5, %v8681_v61 }
 0x108   : > { %4879 = vmatprep.subr.bf16.mxu0 %v7051_v8  ;;  %v7801_v34 = vpop.eup %7800  ;;  %v890_v52 = vadd.f32 1.0, %v7799_v3  ;;  %v590_v8 = vld [vmem:[%s8261_s20 + $0x258] sm:$0x1]  ;;  %v757_v61 = vmul.f32 0.70710677, %v8748_v7 }
 0x109   : > { %v7803_v60 = vpop.eup %7802  ;;  %v962_v36 = vmul.f32 %v878_v1, %v626_v25  ;;  %v877_v38 = vadd.f32 1.0, %v7801_v34  ;;  %v758_v14 = vmul.f32 0.70710677, %v590_v8  ;;  %v661_v25 = vmul.f32 0.5, %v8721_v48  ;;  %v7073_v48 = vld [vmem:[%s8263_s25 + $0xf90] ss:$24 sps:$4 sm:$0xff]  }
 0x10a   : > { %4667 = vmatpush1.bf16.msra.mxu1 %v7046_v29  ;;  %v974_v42 = vmul.f32 %v890_v52, %v638_v2  ;;  %v889_v9 = vadd.f32 1.0, %v7803_v60  ;;  %v7805_v29 = vpop.eup %7804  ;;  %v7081_v52 = vld [vmem:[%s8263_s25 + $0xfc4] ss:$24 sps:$4 sm:$0xff]   ;;  %v674_v60 = vmul.f32 0.5, %v590_v8  ;;  %v7084_v8 = vld [vmem:[%s8263_s25 + $0x6f4] ss:$24 sps:$4 sm:$0xff]  }
 0x10b   : > { %4707 = vmatprep.subr.bf16.mxu1 %v7054_v32  ;;  %4880 = vmatpush1.bf16.msra.mxu0 %v7049_v20  ;;  %v961_v50 = vmul.f32 %v877_v38, %v625_v46  ;;  %7812 = verf.f32 %v758_v14  ;;  %v902_v19 = vadd.f32 1.0, %v7805_v29  ;;  %v649_v20 = vmul.f32 0.5, %v8718_v44  ;;  %v7075_v44 = vld [vmem:[%s8263_s25 + $0xf94] ss:$24 sps:$4 sm:$0xff]  }
 0x10c   : > { %4920 = vmatprep.subr.bf16.mxu0 %v7057_v28  ;;  %v8755_v55 = vpack.c.bf16 %v974_v42, %v962_v36  ;;  %v973_v37 = vmul.f32 %v889_v9, %v637_v53  ;;  %7814 = verf.f32 %v757_v61  ;;  %v7807_v17 = vpop.eup %7806  ;;  %v7067_v28 = vld [vmem:[%s8263_s25 + $0xf60] ss:$24 sps:$4 sm:$0xff]   ;;  %v548_v36 = vld [vmem:[%s8261_s20 + $0x108] sm:$0xff]  ;;  %v673_v14 = vmul.f32 0.5, %v8748_v7 }
 0x10d   : > { %4669 = vmatmul.mubr.bf16.vlgmr.msra.gmra.mrb[0].mxu1 %v8735_v26  ;;  %v914_v24 = vadd.f32 1.0, %v7807_v17  ;;  %v986_v41 = vmul.f32 %v902_v19, %v650_v11  ;;  %v7076_v53 = vld [vmem:[%s8263_s25 + $0x6c0] ss:$24 sps:$4 sm:$0xff]   ;;  %v560_v38 = vld [vmem:[%s8261_s20 + $0x168] sm:$0xff] }
 0x10e   : > { %4708 = vmatpush1.bf16.msra.mxu1 %v7052_v51  ;;  %4882 = vmatmul.mubr.bf16.vlgmr.msra.gmra.mrb[0].mxu0 %v8742_v35  ;;  %v8761_v32 = vpack.c.bf16 %v973_v37, %v961_v50  ;;  %v8789_v50 = vld [vmem:[%s8261_s20 + $0x160] sm:$0xff]  ;;  %v7085_v19 = vld [vmem:[%s8263_s25 + $0xff0] ss:$24 sps:$4 sm:$0xff]  }
 0x10f   : > { %4709 = vmatprep.subr.bf16.mxu1 %v7060_v12  ;;  %4921 = vmatpush1.bf16.msra.mxu0 %v7055_v31  ;;  %v7809_v51 = vpop.eup %7808  ;;  %v998_v2 = vmul.f32 %v914_v24, %v662_v15  ;;  %v7070_v31 = vld [vmem:[%s8263_s25 + $0x690] ss:$24 sps:$4 sm:$0xff]   ;;  %v7078_v12 = vld [vmem:[%s8263_s25 + $0x6c4] ss:$24 sps:$4 sm:$0xff]   ;;  %v727_v29 = vmul.f32 0.70710677, %v8789_v50 }
 0x110   : > { %4922 = vmatprep.subr.bf16.mxu0 %v7063_v54  ;;  %4678 = vmatprep.mubr.bf16.mxu1 %v8755_v55  ;;  %v7811_v0 = vpop.eup %7810  ;;  %v901_v30 = vadd.f32 1.0, %v7809_v51  ;;  %v8782_v54 = vld [vmem:[%s8261_s20 + $0x100] sm:$0xff]  ;;  %v7087_v15 = vld [vmem:[%s8263_s25 + $0xff4] ss:$24 sps:$4 sm:$0xff]  }
 0x111   : > { %v913_v3 = vadd.f32 1.0, %v7811_v0  ;;  %v8774_v46 = vpack.c.bf16 %v998_v2, %v986_v41  ;;  %v715_v11 = vmul.f32 0.70710677, %v8782_v54  ;;  %v7079_v7 = vld [vmem:[%s8263_s25 + $0xfc0] ss:$24 sps:$4 sm:$0xff]   ;;  %v572_v24 = vld [vmem:[%s8261_s20 + $0x1c8] sm:$0xff] }
 0x112   : > { %4710 = vmatpush1.bf16.msra.mxu1 %v7058_v10  ;;  %v985_v1 = vmul.f32 %v901_v30, %v649_v20  ;;  %v716_v10 = vmul.f32 0.70710677, %v548_v36  ;;  %v7090_v51 = vld [vmem:[%s8263_s25 + $0x724] ss:$24 sps:$4 sm:$0xff]   ;;  %v740_v41 = vmul.f32 0.70710677, %v572_v24 }
 0x113   : > { %4711 = vmatprep.subr.bf16.mxu1 %v7066_v59  ;;  %4923 = vmatpush1.bf16.msra.mxu0 %v7061_v62  ;;  %v997_v34 = vmul.f32 %v913_v3, %v661_v25  ;;  %v728_v59 = vmul.f32 0.70710677, %v560_v38  ;;  %v8806_v25 = vld [vmem:[%s8261_s20 + $0x228] sm:$0xff]  ;;  %v8816_v2 = vld [vmem:[%s8261_s20 + $0x220] sm:$0xff] }
 0x114   : > { %4924 = vmatprep.subr.bf16.mxu0 %v7069_v13  ;;  %7816 = verf.f32 %v716_v10  ;;  %v752_v30 = vmul.f32 0.70710677, %v8806_v25  ;;  %v7096_v3 = vld [vmem:[%s8263_s25 + $0x754] ss:$24 sps:$4 sm:$0xff]   ;;  %v631_v10 = vmul.f32 0.5, %v8782_v54 }
 0x115   : > { %4679 = vmatmul.mubr.bf16.gmra.mrb[4].mxu1 %v8761_v32  ;;  %v7813_v42 = vpop.eup %7812  ;;  %v8785_v9 = vpack.c.bf16 %v997_v34, %v985_v1  ;;  %7818 = verf.f32 %v728_v59  ;;  %v632_v1 = vmul.f32 0.5, %v548_v36  ;;  %v751_v34 = vmul.f32 0.70710677, %v8816_v2 }
 0x116   : > { %4712 = vmatpush1.bf16.msra.mxu1 %v7064_v49  ;;  %4688 = vmatprep.mubr.bf16.mxu1 %v8774_v46  ;;  %v7815_v61 = vpop.eup %7814  ;;  %v926_v37 = vadd.f32 1.0, %v7813_v42  ;;  %7820 = verf.f32 %v715_v11  ;;  %v7082_v49 = vld [vmem:[%s8263_s25 + $0x6f0] ss:$24 sps:$4 sm:$0xff]  }
 0x117   : > { %4713 = vmatprep.subr.bf16.mxu1 %v7072_v40  ;;  %4925 = vmatpush1.bf16.msra.mxu0 %v7067_v28  ;;  %v925_v62 = vadd.f32 1.0, %v7815_v61  ;;  %7822 = verf.f32 %v727_v29  ;;  %v7088_v40 = vld [vmem:[%s8263_s25 + $0x720] ss:$24 sps:$4 sm:$0xff]   ;;  %v7093_v28 = vld [vmem:[%s8263_s25 + $0x1024] ss:$24 sps:$4 sm:$0xff]  }
 0x118   : > { %4926 = vmatprep.subr.bf16.mxu0 %v7075_v44  ;;  %v1010_v13 = vmul.f32 %v926_v37, %v674_v60  ;;  %v8813_v44 = vld [vmem:[%s8261_s20 + $0x1c0] sm:$0xff]  ;;  %7824 = verf.f32 %v740_v41  ;;  %v7094_v42 = vld [vmem:[%s8263_s25 + $0x750] ss:$24 sps:$4 sm:$0xff]   ;;  %v643_v37 = vmul.f32 0.5, %v8789_v50 }
 0x119   : > { %v1009_v17 = vmul.f32 %v925_v62, %v673_v14  ;;  %7826 = verf.f32 %v752_v30  ;;  %v7102_v61 = vld [vmem:[%s8263_s25 + $0x784] ss:$24 sps:$4 sm:$0xff]   ;;  %v7103_v41 = vld [vmem:[%s8263_s25 + $0x1080] ss:$24 sps:$4 sm:$0xff]   ;;  %v656_v30 = vmul.f32 0.5, %v572_v24 }
 0x11a   : > { %4714 = vmatpush1.bf16.msra.mxu1 %v7070_v31  ;;  %v8799_v20 = vpack.c.bf16 %v1010_v13, %v1010_v13  ;;  %v739_v31 = vmul.f32 0.70710677, %v8813_v44  ;;  %v7105_v62 = vld [vmem:[%s8263_s25 + $0x1084] ss:$24 sps:$4 sm:$0xff]   ;;  %v8831_v13 = vld [vmem:[%s8261_s20 + $0x288] sm:$0x1] }
 0x11b   : > { %4715 = vmatprep.subr.bf16.mxu1 %v7078_v12  ;;  %4927 = vmatpush1.bf16.msra.mxu0 %v7073_v48  ;;  %v8808_v0 = vpack.c.bf16 %v1009_v17, %v1009_v17  ;;  %v7091_v48 = vld [vmem:[%s8263_s25 + $0x1020] ss:$24 sps:$4 sm:$0xff]   ;;  %v7109_v24 = vld [vmem:[%s8263_s25 + $0x10b0] ss:$24 sps:$4 sm:$0xff]  }
 0x11c   : > { %4928 = vmatprep.subr.bf16.mxu0 %v7081_v52  ;;  %v7099_v52 = vld [vmem:[%s8263_s25 + $0x1054] ss:$24 sps:$4 sm:$0xff]   ;;  %7828 = verf.f32 %v739_v31  ;;  %v7100_v17 = vld [vmem:[%s8263_s25 + $0x780] ss:$24 sps:$4 sm:$0xff]   ;;  %v7106_v31 = vld [vmem:[%s8263_s25 + $0x7b0] ss:$24 sps:$4 sm:$0xff]  }
 0x11d   : > { %4689 = vmatmul.mubr.bf16.gmra.mrb[8].mxu1 %v8785_v9  ;;  %7830 = verf.f32 %v751_v34  ;;  %v668_v34 = vmul.f32 0.5, %v8806_v25  ;;  %v520_v25 = vld [vmem:[%s8261_s20 + $0x28] sm:$0xff] }
 0x11e   : > { %4716 = vmatpush1.bf16.msra.mxu1 %v7076_v53  ;;  %4698 = vmatprep.mubr.bf16.mxu1 %v8799_v20  ;;  %v7817_v12 = vpop.eup %7816  ;;  %v644_v53 = vmul.f32 0.5, %v560_v38  ;;  %v7097_v38 = vld [vmem:[%s8263_s25 + $0x1050] ss:$24 sps:$4 sm:$0xff]  }
 0x11f   : > { %4717 = vmatprep.subr.bf16.mxu1 %v7084_v8  ;;  %4929 = vmatpush1.bf16.msra.mxu0 %v7079_v7  ;;  %v7819_v60 = vpop.eup %7818  ;;  %v884_v14 = vadd.f32 1.0, %v7817_v12 }
 0x120   : > { %4930 = vmatprep.subr.bf16.mxu0 %v7087_v15  ;;  %v7821_v36 = vpop.eup %7820  ;;  %v896_v8 = vadd.f32 1.0, %v7819_v60  ;;  %v8834_v15 = vld [vmem:[%s8261_s20 + $0x280] sm:$0x1] }
 0x121   : > { %v7823_v59 = vpop.eup %7822  ;;  %v968_v11 = vmul.f32 %v884_v14, %v632_v1  ;;  %v883_v29 = vadd.f32 1.0, %v7821_v36  ;;  %v8856_v36 = vld [vmem:[%s8261_s20 + $0x88] sm:$0xff] }
 0x122   : > { %4718 = vmatpush1.bf16.msra.mxu1 %v7082_v49  ;;  %v980_v54 = vmul.f32 %v896_v8, %v644_v53  ;;  %v895_v7 = vadd.f32 1.0, %v7823_v59  ;;  %v764_v49 = vmul.f32 0.70710677, %v8831_v13  ;;  %v655_v53 = vmul.f32 0.5, %v8813_v44  ;;  %v7112_v8 = vld [vmem:[%s8263_s25 + $0x7e0] ss:$24 sps:$4 sm:$0xff]  }
 0x123   : > { %4719 = vmatprep.subr.bf16.mxu1 %v7090_v51  ;;  %4931 = vmatpush1.bf16.msra.mxu0 %v7085_v19  ;;  %v967_v50 = vmul.f32 %v883_v29, %v631_v10  ;;  %v7108_v19 = vld [vmem:[%s8263_s25 + $0x7b4] ss:$24 sps:$4 sm:$0xff]   ;;  %v667_v10 = vmul.f32 0.5, %v8816_v2  ;;  %v688_v29 = vmul.f32 0.70710677, %v520_v25 }
 0x124   : > { %4932 = vmatprep.subr.bf16.mxu0 %v7093_v28  ;;  %v8839_v51 = vpack.c.bf16 %v980_v54, %v968_v11  ;;  %v763_v28 = vmul.f32 0.70710677, %v8834_v15  ;;  %7832 = verf.f32 %v764_v49  ;;  %v700_v54 = vmul.f32 0.70710677, %v8856_v36 }
 0x125   : > { %4699 = vmatmul.mubr.bf16.gmra.mrb[16].mxu1 %v8808_v0 }
 0x126   : > { %4720 = vmatpush1.bf16.msra.mxu1 %v7088_v40  ;;  %9902 = vst [vmem:[#allocation8_spill] sm:$0xff] %v8839_v51  ;;  %v979_v40 = vmul.f32 %v895_v7, %v643_v37  ;;  %4891 = vmatprep.mubr.bf16.mxu0 %v8839_v51  ;;  %7834 = verf.f32 %v763_v28  ;;  %v7117_v37 = vld [vmem:[%s8263_s25 + $0x10e4] ss:$24 sps:$4 sm:$0xff]   ;;  %v8877_v28 = vld [vmem:[%s8261_s20 + $0x50] sm:$0xff] }
 0x127   : > { %4721 = vmatprep.subr.bf16.mxu1 %v7096_v3  ;;  %4933 = vmatpush1.bf16.msra.mxu0 %v7091_v48  ;;  %v7825_v3 = vpop.eup %7824  ;;  %v7111_v48 = vld [vmem:[%s8263_s25 + $0x10b4] ss:$24 sps:$4 sm:$0xff]   ;;  %v8868_v7 = vld [vmem:[%s8261_s20 + $0x20] sm:$0xff]  ;;  %7836 = verf.f32 %v688_v29  ;;  %v604_v29 = vmul.f32 0.5, %v520_v25  ;;  %v8915_v25 = vld [vmem:[%s8261_s20 + $0x178] sm:$0xff] }
 0x128   : > { %4934 = vmatprep.subr.bf16.mxu0 %v7099_v52  ;;  %v8846_v1 = vpack.c.bf16 %v979_v40, %v967_v50  ;;  %v7827_v12 = vpop.eup %7826  ;;  %v908_v52 = vadd.f32 1.0, %v7825_v3  ;;  %v7120_v50 = vld [vmem:[%s8263_s25 + $0x814] ss:$24 sps:$4 sm:$0xff]   ;;  %v8874_v40 = vld [vmem:[%s8261_s20 + $0x80] sm:$0xff]  ;;  %7838 = verf.f32 %v700_v54 }
 0x129   : > { %v7829_v60 = vpop.eup %7828  ;;  %v920_v14 = vadd.f32 1.0, %v7827_v12  ;;  %v687_v12 = vmul.f32 0.70710677, %v8868_v7  ;;  %v8903_v54 = vld [vmem:[%s8261_s20 + $0xe8] sm:$0xff] }
 0x12a   : > { %4722 = vmatpush1.bf16.msra.mxu1 %v7094_v42  ;;  %9903 = vst [vmem:[#allocation9_spill] sm:$0xff] %v8846_v1  ;;  %4892 = vmatmul.mubr.bf16.gmra.mrb[4].mxu0 %v8846_v1  ;;  %v7114_v42 = vld [vmem:[%s8263_s25 + $0x7e4] ss:$24 sps:$4 sm:$0xff]   ;;  %v992_v44 = vmul.f32 %v908_v52, %v656_v30  ;;  %v907_v59 = vadd.f32 1.0, %v7829_v60  ;;  %v699_v60 = vmul.f32 0.70710677, %v8874_v40 }
 0x12b   : > { %4723 = vmatprep.subr.bf16.mxu1 %v7102_v61  ;;  %4935 = vmatpush1.bf16.msra.mxu0 %v7097_v38  ;;  %v7831_v61 = vpop.eup %7830  ;;  %v8861_v38 = vld [vmem:[%s8261_s20 + $0x58] sm:$0xff]  ;;  %v1004_v2 = vmul.f32 %v920_v14, %v668_v34  ;;  %v7123_v34 = vld [vmem:[%s8263_s25 + $0x1114] ss:$24 sps:$4 sm:$0xff]   ;;  %v693_v14 = vmul.f32 0.70710677, %v8877_v28 }
 0x12c   : > { %4936 = vmatprep.subr.bf16.mxu0 %v7105_v62  ;;  %v8864_v62 = vld [vmem:[%s8261_s20 + $0xb8] sm:$0xff]  ;;  %v919_v11 = vadd.f32 1.0, %v7831_v61  ;;  %v991_v49 = vmul.f32 %v907_v59, %v655_v53  ;;  %v680_v53 = vmul.f32 0.5, %v8831_v13 }
 0x12d   : > { %v706_v3 = vmul.f32 0.70710677, %v8864_v62  ;;  %v7126_v13 = vld [vmem:[%s8263_s25 + $0x844] ss:$24 sps:$4 sm:$0xff]  }
 0x12e   : > { %4724 = vmatpush1.bf16.msra.mxu1 %v7100_v17  ;;  %v7115_v17 = vld [vmem:[%s8263_s25 + $0x10e0] ss:$24 sps:$4 sm:$0xff]   ;;  %v1003_v30 = vmul.f32 %v919_v11, %v667_v10  ;;  %v7129_v59 = vld [vmem:[%s8263_s25 + $0x1144] ss:$24 sps:$4 sm:$0xff]  }
 0x12f   : > { %4725 = vmatprep.subr.bf16.mxu1 %v7108_v19  ;;  %4937 = vmatpush1.bf16.msra.mxu0 %v7103_v41  ;;  %v694_v19 = vmul.f32 0.70710677, %v8861_v38  ;;  %v8879_v41 = vpack.c.bf16 %v1004_v2, %v992_v44  ;;  %v7132_v2 = vld [vmem:[%s8263_s25 + $0x874] ss:$24 sps:$4 sm:$0xff]  }
 0x130   : > { %4938 = vmatprep.subr.bf16.mxu0 %v7111_v48  ;;  %v8883_v48 = vld [vmem:[%s8261_s20 + $0xb0] sm:$0xff]  ;;  %v8889_v52 = vpack.c.bf16 %v1003_v30, %v991_v49  ;;  %v616_v49 = vmul.f32 0.5, %v8856_v36  ;;  %v712_v30 = vmul.f32 0.70710677, %v8903_v54 }
 0x131   : > { %9904 = vst [vmem:[#allocation10_spill] sm:$0xff] %v8879_v41  ;;  %4901 = vmatprep.mubr.bf16.mxu0 %v8879_v41  ;;  %7840 = verf.f32 %v694_v19  ;;  %v705_v10 = vmul.f32 0.70710677, %v8883_v48  ;;  %v8908_v19 = vld [vmem:[%s8261_s20 + $0x148] sm:$0xff] }
 0x132   : > { %4726 = vmatpush1.bf16.msra.mxu1 %v7106_v31  ;;  %v7118_v31 = vld [vmem:[%s8263_s25 + $0x810] ss:$24 sps:$4 sm:$0xff]   ;;  %9905 = vst [vmem:[#allocation11_spill] sm:$0xff] %v8889_v52  ;;  %7842 = verf.f32 %v706_v3  ;;  %4902 = vmatmul.mubr.bf16.gmra.mrb[8].mxu0 %v8889_v52  ;;  %v8912_v3 = vld [vmem:[%s8261_s20 + $0x118] sm:$0xff]  ;;  %v724_v36 = vmul.f32 0.70710677, %v8908_v19 }
 0x133   : > { %4727 = vmatprep.subr.bf16.mxu1 %v7114_v42  ;;  %4939 = vmatpush1.bf16.msra.mxu0 %v7109_v24  ;;  %v7833_v42 = vpop.eup %7832  ;;  %v679_v24 = vmul.f32 0.5, %v8834_v15  ;;  %7844 = verf.f32 %v687_v12  ;;  %v7124_v15 = vld [vmem:[%s8263_s25 + $0x840] ss:$24 sps:$4 sm:$0xff]  }
 0x134   : > { %4940 = vmatprep.subr.bf16.mxu0 %v7117_v37  ;;  %v7835_v61 = vpop.eup %7834  ;;  %v932_v37 = vadd.f32 1.0, %v7833_v42  ;;  %7846 = verf.f32 %v699_v60  ;;  %v8924_v60 = vld [vmem:[%s8261_s20 + $0xe0] sm:$0xff] }
 0x135   : > { %v931_v44 = vadd.f32 1.0, %v7835_v61  ;;  %7848 = verf.f32 %v693_v14  ;;  %v8927_v42 = vld [vmem:[%s8261_s20 + $0x140] sm:$0xff]  ;;  %v718_v61 = vmul.f32 0.70710677, %v8912_v3 }
 0x136   : > { %4728 = vmatpush1.bf16.msra.mxu1 %v7112_v8  ;;  %v7121_v8 = vld [vmem:[%s8263_s25 + $0x1110] ss:$24 sps:$4 sm:$0xff]   ;;  %v1016_v11 = vmul.f32 %v932_v37, %v680_v53  ;;  %7850 = verf.f32 %v705_v10  ;;  %v622_v53 = vmul.f32 0.5, %v8864_v62  ;;  %v8933_v10 = vmul.f32 0.5, %v8868_v7  ;;  %v7837_v62 = vpop.eup %7836 }
 0x137   : > { %4729 = vmatprep.subr.bf16.mxu1 %v7120_v50  ;;  %4941 = vmatpush1.bf16.msra.mxu0 %v7115_v17  ;;  %v7127_v17 = vld [vmem:[%s8263_s25 + $0x1140] ss:$24 sps:$4 sm:$0xff]   ;;  %v1015_v50 = vmul.f32 %v931_v44, %v679_v24  ;;  %v7130_v24 = vld [vmem:[%s8263_s25 + $0x870] ss:$24 sps:$4 sm:$0xff]   ;;  %7852 = verf.f32 %v712_v30  ;;  %v730_v37 = vmul.f32 0.70710677, %v8915_v25  ;;  %v7839_v44 = vpop.eup %7838 }
 0x138   : > { %4942 = vmatprep.subr.bf16.mxu0 %v7123_v34  ;;  %v7135_v34 = vld [vmem:[%s8263_s25 + $0x1174] ss:$24 sps:$4 sm:$0xff]   ;;  %v8918_v12 = vpack.c.bf16 %v1016_v11, %v1016_v11  ;;  %7854 = verf.f32 %v724_v36  ;;  %v856_v7 = vadd.f32 1.0, %v7837_v62  ;;  %v711_v11 = vmul.f32 0.70710677, %v8924_v60 }
 0x139   : > { %v8930_v14 = vpack.c.bf16 %v1015_v50, %v1015_v50  ;;  %7856 = verf.f32 %v718_v61  ;;  %v723_v50 = vmul.f32 0.70710677, %v8927_v42  ;;  %v609_v36 = vmul.f32 0.5, %v8877_v28 }
 0x13a   : > { %4730 = vmatpush1.bf16.msra.mxu1 %v7118_v31  ;;  %9906 = vst [vmem:[#allocation12_spill] sm:$0xff] %v8918_v12  ;;  %v610_v31 = vmul.f32 0.5, %v8861_v38  ;;  %v8937_v38 = vld [vmem:[%s8261_s20 + $0x110] sm:$0xff]  ;;  %4911 = vmatprep.mubr.bf16.mxu0 %v8918_v12  ;;  %v621_v12 = vmul.f32 0.5, %v8883_v48  ;;  %7858 = verf.f32 %v730_v37  ;;  %v940_v61 = vmul.f32 %v856_v7, %v604_v29 }
 0x13b   : > { %4731 = vmatprep.subr.bf16.mxu1 %v7126_v13  ;;  %4943 = vmatpush1.bf16.msra.mxu0 %v7121_v8  ;;  %9907 = vst [vmem:[#allocation13_spill] sm:$0xff] %v8930_v14  ;;  %v615_v13 = vmul.f32 0.5, %v8874_v40  ;;  %v8943_v8 = vld [vmem:[%s8261_s20 + $0x170] sm:$0xff]  ;;  %v7841_v30 = vpop.eup %7840  ;;  %v7138_v40 = vld [vmem:[%s8263_s25 + $0x8a4] ss:$24 sps:$4 sm:$0xff]   ;;  %7860 = verf.f32 %v711_v11  ;;  %v628_v7 = vmul.f32 0.5, %v8903_v54 }
 0x13c   : > { %4944 = vmatprep.subr.bf16.mxu0 %v7129_v59  ;;  %4912 = vmatmul.mubr.bf16.gmra.mrb[16].mxu0 %v8930_v14  ;;  %v868_v59 = vadd.f32 1.0, %v7839_v44  ;;  %v7843_v52 = vpop.eup %7842  ;;  %v862_v62 = vadd.f32 1.0, %v7841_v30  ;;  %v717_v41 = vmul.f32 0.70710677, %v8937_v38  ;;  %v7141_v14 = vld [vmem:[%s8263_s25 + $0x11a4] ss:$24 sps:$4 sm:$0xff]   ;;  %7862 = verf.f32 %v723_v50 }
 0x13d   : > { %v874_v1 = vadd.f32 1.0, %v7843_v52  ;;  %v729_v28 = vmul.f32 0.70710677, %v8943_v8  ;;  %v645_v22 = vmul.f32 0.5, %v8943_v8 }
 0x13e   : > { %4732 = vmatpush1.bf16.msra.mxu1 %v7124_v15  ;;  %v7133_v15 = vld [vmem:[%s8263_s25 + $0x1170] ss:$24 sps:$4 sm:$0xff]   ;;  %v952_v44 = vmul.f32 %v868_v59, %v616_v49  ;;  %v946_v29 = vmul.f32 %v862_v62, %v610_v31  ;;  %7864 = verf.f32 %v717_v41  ;;  %v7144_v49 = vld [vmem:[%s8263_s25 + $0x8d4] ss:$24 sps:$4 sm:$0xff]   ;;  %v640_v41 = vmul.f32 0.5, %v8908_v19  ;;  %v8980_v19 = vld [vmem:[%s8261_s20 + $0x238] sm:$0xff] }
 0x13f   : > { %4733 = vmatprep.subr.bf16.mxu1 %v7132_v2  ;;  %4945 = vmatpush1.bf16.msra.mxu0 %v7127_v17  ;;  %v7845_v2 = vpop.eup %7844  ;;  %v7136_v17 = vld [vmem:[%s8263_s25 + $0x8a0] ss:$24 sps:$4 sm:$0xff]   ;;  %v958_v50 = vmul.f32 %v874_v1, %v622_v53  ;;  %7866 = verf.f32 %v729_v28  ;;  %v8962_v59 = vld [vmem:[%s8261_s20 + $0x1a8] sm:$0xff]  ;;  %v646_v62 = vmul.f32 0.5, %v8915_v25 }
 0x140   : > { %4946 = vmatprep.subr.bf16.mxu0 %v7135_v34  ;;  %v7847_v48 = vpop.eup %7846  ;;  %v855_v37 = vadd.f32 1.0, %v7845_v2  ;;  %v7139_v34 = vld [vmem:[%s8263_s25 + $0x11a0] ss:$24 sps:$4 sm:$0xff]   ;;  %v8959_v52 = vpack.c.bf16 %v952_v44, %v940_v61  ;;  %v7142_v31 = vld [vmem:[%s8263_s25 + $0x8d0] ss:$24 sps:$4 sm:$0xff]  }
 0x141   : > { %v7849_v11 = vpop.eup %7848  ;;  %v867_v30 = vadd.f32 1.0, %v7847_v48  ;;  %v8969_v61 = vld [vmem:[%s8261_s20 + $0x208] sm:$0xff]  ;;  %v8973_v53 = vpack.c.bf16 %v958_v50, %v946_v29  ;;  %v8977_v28 = vld [vmem:[%s8261_s20 + $0x1d8] sm:$0xff]  ;;  %v639_v48 = vmul.f32 0.5, %v8927_v42  ;;  %v736_v29 = vmul.f32 0.70710677, %v8962_v59 }
 0x142   : > { %4734 = vmatpush1.bf16.msra.mxu1 %v7130_v24  ;;  %v7851_v24 = vpop.eup %7850  ;;  %v861_v54 = vadd.f32 1.0, %v7849_v11  ;;  %v7147_v1 = vld [vmem:[%s8263_s25 + $0x11d4] ss:$24 sps:$4 sm:$0xff]   ;;  %4739 = vmatprep.mubr.bf16.mxu1 %v8959_v52  ;;  %v939_v2 = vmul.f32 %v855_v37, %v8933_v10  ;;  %v7145_v25 = vld [vmem:[%s8263_s25 + $0x11d0] ss:$24 sps:$4 sm:$0xff]  }
 0x143   : > { %4735 = vmatprep.subr.bf16.mxu1 %v7138_v40  ;;  %4947 = vmatpush1.bf16.msra.mxu0 %v7133_v15  ;;  %v634_v40 = vmul.f32 0.5, %v8912_v3  ;;  %9908 = vst [vmem:[#allocation14_spill] sm:$0xff] %v8973_v53  ;;  %v951_v15 = vmul.f32 %v867_v30, %v615_v13  ;;  %v873_v44 = vadd.f32 1.0, %v7851_v24  ;;  %v7853_v3 = vpop.eup %7852  ;;  %v748_v11 = vmul.f32 0.70710677, %v8969_v61 }
 0x144   : > { %4948 = vmatprep.subr.bf16.mxu0 %v7141_v14  ;;  %v627_v14 = vmul.f32 0.5, %v8924_v60  ;;  %v7855_v10 = vpop.eup %7854  ;;  %4952 = vmatprep.mubr.bf16.mxu0 %v8973_v53  ;;  %v945_v13 = vmul.f32 %v861_v54, %v609_v36  ;;  %v7150_v50 = vld [vmem:[%s8263_s25 + $0xc] ss:$24 sps:$4 sm:$0xff]   ;;  %v880_v30 = vadd.f32 1.0, %v7853_v3  ;;  %v7148_v60 = vld [vmem:[%s8263_s25 + $0x8] ss:$24 sps:$4 sm:$0xff]   ;;  %7868 = verf.f32 %v736_v29 }
 0x145   : > { %v957_v37 = vmul.f32 %v873_v44, %v621_v12  ;;  %v7857_v24 = vpop.eup %7856  ;;  %v892_v42 = vadd.f32 1.0, %v7855_v10  ;;  %v742_v51 = vmul.f32 0.70710677, %v8977_v28  ;;  %v8993_v12 = vpack.c.bf16 %v951_v15, %v939_v2  ;;  %v7153_v36 = vld [vmem:[%s8263_s25 + $0x14] ss:$24 sps:$4 sm:$0xff]  }
 0x146   : > { %4736 = vmatpush1.bf16.msra.mxu1 %v7136_v17  ;;  %v633_v17 = vmul.f32 0.5, %v8937_v38  ;;  %v7859_v53 = vpop.eup %7858  ;;  %v964_v54 = vmul.f32 %v880_v30, %v628_v7  ;;  %v886_v38 = vadd.f32 1.0, %v7857_v24  ;;  %7870 = verf.f32 %v748_v11  ;;  %v7151_v3 = vld [vmem:[%s8263_s25 + $0x10] ss:$24 sps:$4 sm:$0xff]   ;;  %v7156_v29 = vld [vmem:[%s8263_s25 + $0x3c] ss:$24 sps:$4 sm:$0xff]  }
 0x147   : > { %4737 = vmatprep.subr.bf16.mxu1 %v7144_v49  ;;  %4949 = vmatpush1.bf16.msra.mxu0 %v7139_v34  ;;  %v754_v49 = vmul.f32 0.70710677, %v8980_v19  ;;  %v8997_v34 = vld [vmem:[%s8261_s20 + $0x1a0] sm:$0xff]  ;;  %v7861_v44 = vpop.eup %7860  ;;  %v976_v10 = vmul.f32 %v892_v42, %v640_v41  ;;  %v898_v35 = vadd.f32 1.0, %v7859_v53  ;;  %7872 = verf.f32 %v742_v51  ;;  %v7154_v41 = vld [vmem:[%s8263_s25 + $0x38] ss:$24 sps:$4 sm:$0xff]  }
 0x148   : > { %4950 = vmatprep.subr.bf16.mxu0 %v7147_v1  ;;  %v9003_v1 = vld [vmem:[%s8261_s20 + $0x200] sm:$0xff]  ;;  %v7863_v2 = vpop.eup %7862  ;;  %v9005_v7 = vpack.c.bf16 %v957_v37, %v945_v13  ;;  %v970_v11 = vmul.f32 %v886_v38, %v634_v40  ;;  %v879_v30 = vadd.f32 1.0, %v7861_v44  ;;  %v735_v24 = vmul.f32 0.70710677, %v8997_v34  ;;  %v9013_v42 = vld [vmem:[%s8261_s20 + $0x1d0] sm:$0xff] }
 0x149   : > { %v7159_v15 = vld [vmem:[%s8263_s25 + $0x44] ss:$24 sps:$4 sm:$0xff]   ;;  %7874 = verf.f32 %v754_v49  ;;  %v9009_v53 = vpack.c.bf16 %v976_v10, %v964_v54  ;;  %v982_v8 = vmul.f32 %v898_v35, %v646_v62  ;;  %v891_v51 = vadd.f32 1.0, %v7863_v2  ;;  %v7157_v35 = vld [vmem:[%s8263_s25 + $0x40] ss:$24 sps:$4 sm:$0xff]  }
 0x14a   : > { %4738 = vmatpush1.bf16.msra.mxu1 %v7142_v31  ;;  %v7865_v31 = vpop.eup %7864  ;;  %v963_v40 = vmul.f32 %v879_v30, %v627_v14  ;;  %v7162_v38 = vld [vmem:[%s8263_s25 + $0x6c] ss:$24 sps:$4 sm:$0xff]   ;;  %7876 = verf.f32 %v735_v24  ;;  %v741_v44 = vmul.f32 0.70710677, %v9013_v42  ;;  %v658_v24 = vmul.f32 0.5, %v8977_v28 }
 0x14b   : > { %4991 = vmatprep.subr.bf16.mxu1 %v7150_v50  ;;  %4951 = vmatpush1.bf16.msra.mxu0 %v7145_v25  ;;  %v7867_v13 = vpop.eup %7866  ;;  %v885_v37 = vadd.f32 1.0, %v7865_v31  ;;  %v747_v50 = vmul.f32 0.70710677, %v9003_v1  ;;  %v9018_v25 = vld [vmem:[%s8261_s20 + $0x230] sm:$0xff]  ;;  %v9022_v62 = vpack.c.bf16 %v982_v8, %v970_v11  ;;  %v975_v49 = vmul.f32 %v891_v51, %v639_v48  ;;  %v9035_v11 = vld [vmem:[%s8261_s20 + $0x260] sm:$0x1] }
 0x14c   : > { %5417 = vmatprep.subr.bf16.mxu0 %v7153_v36  ;;  %v897_v54 = vadd.f32 1.0, %v7867_v13  ;;  %v7165_v36 = vld [vmem:[%s8263_s25 + $0x74] ss:$24 sps:$4 sm:$0xff]   ;;  %v652_v48 = vmul.f32 0.5, %v8962_v59  ;;  %v753_v2 = vmul.f32 0.70710677, %v9018_v25 }
 0x14d   : > { %4740 = vmatmul.mubr.bf16.vlgmr.msra.gmra.mrb[0].mxu1 %v8993_v12  ;;  %v969_v14 = vmul.f32 %v885_v37, %v633_v17  ;;  %7878 = verf.f32 %v747_v50  ;;  %v9037_v17 = vpack.c.bf16 %v975_v49, %v963_v40  ;;  %v759_v30 = vmul.f32 0.70710677, %v9035_v11  ;;  %v7160_v31 = vld [vmem:[%s8263_s25 + $0x68] ss:$24 sps:$4 sm:$0xff]   ;;  %v7166_v50 = vld [vmem:[%s8263_s25 + $0x98] ss:$24 sps:$4 sm:$0xff]  }
 0x14e   : > { %4992 = vmatpush1.bf16.msra.mxu1 %v7148_v60  ;;  %4749 = vmatprep.mubr.bf16.mxu1 %v9009_v53  ;;  %v9029_v60 = vld [vmem:[%s8261_s20 + $0x268] sm:$0x1]  ;;  %v981_v10 = vmul.f32 %v897_v54, %v645_v22  ;;  %7880 = verf.f32 %v741_v44  ;;  %v664_v22 = vmul.f32 0.5, %v8969_v61  ;;  %v670_v61 = vmul.f32 0.5, %v8980_v19  ;;  %v7171_v49 = vld [vmem:[%s8263_s25 + $0xa4] ss:$24 sps:$4 sm:$0xff]  }
 0x14f   : > { %4953 = vmatmul.mubr.bf16.vlgmr.msra.gmra.mrb[0].mxu0 %v9005_v7  ;;  %4993 = vmatprep.subr.bf16.mxu1 %v7156_v29  ;;  %v760_v29 = vmul.f32 0.70710677, %v9029_v60  ;;  %7882 = verf.f32 %v753_v2  ;;  %v9054_v44 = vld [vmem:[%s8261_s20 + $0x298] sm:$0x1]  ;;  %v651_v2 = vmul.f32 0.5, %v8997_v34 }
 0x150   : > { %5418 = vmatpush1.bf16.msra.mxu0 %v7151_v3  ;;  %4962 = vmatprep.mubr.bf16.mxu0 %v9022_v62  ;;  %v7869_v3 = vpop.eup %7868  ;;  %v9043_v8 = vpack.c.bf16 %v981_v10, %v969_v14  ;;  %v9057_v10 = vld [vmem:[%s8261_s20 + $0x290] sm:$0x1] }
 0x151   : > { %5419 = vmatprep.subr.bf16.mxu0 %v7159_v15  ;;  %v7871_v59 = vpop.eup %7870  ;;  %v7168_v15 = vld [vmem:[%s8263_s25 + $0x9c] ss:$24 sps:$4 sm:$0xff]   ;;  %v904_v51 = vadd.f32 1.0, %v7869_v3  ;;  %7884 = verf.f32 %v760_v29  ;;  %v766_v29 = vmul.f32 0.70710677, %v9054_v44 }
 0x152   : > { %4994 = vmatpush1.bf16.msra.mxu1 %v7154_v41  ;;  %v7873_v13 = vpop.eup %7872  ;;  %v7163_v41 = vld [vmem:[%s8263_s25 + $0x70] ss:$24 sps:$4 sm:$0xff]   ;;  %v916_v40 = vadd.f32 1.0, %v7871_v59  ;;  %7886 = verf.f32 %v759_v30 }
 0x153   : > { %4995 = vmatprep.subr.bf16.mxu1 %v7162_v38  ;;  %v7875_v37 = vpop.eup %7874  ;;  %v988_v54 = vmul.f32 %v904_v51, %v652_v48  ;;  %v910_v28 = vadd.f32 1.0, %v7873_v13  ;;  %v7169_v38 = vld [vmem:[%s8263_s25 + $0xa0] ss:$24 sps:$4 sm:$0xff]   ;;  %v7177_v51 = vld [vmem:[%s8263_s25 + $0xd4] ss:$24 sps:$4 sm:$0xff]   ;;  %7888 = verf.f32 %v766_v29  ;;  %v657_v13 = vmul.f32 0.5, %v9013_v42 }
 0x154   : > { %5420 = vmatpush1.bf16.msra.mxu0 %v7157_v35  ;;  %v1000_v14 = vmul.f32 %v916_v40, %v664_v22  ;;  %v922_v35 = vadd.f32 1.0, %v7875_v37  ;;  %v7877_v48 = vpop.eup %7876  ;;  %v765_v22 = vmul.f32 0.70710677, %v9057_v10  ;;  %v7180_v37 = vld [vmem:[%s8263_s25 + $0xfc] ss:$24 sps:$4 sm:$0xff]   ;;  %v676_v42 = vmul.f32 0.5, %v9029_v60 }
 0x155   : > { %4750 = vmatmul.mubr.bf16.gmra.mrb[4].mxu1 %v9037_v17  ;;  %5421 = vmatprep.subr.bf16.mxu0 %v7165_v36  ;;  %v994_v19 = vmul.f32 %v910_v28, %v658_v24  ;;  %v7174_v36 = vld [vmem:[%s8263_s25 + $0xcc] ss:$24 sps:$4 sm:$0xff]   ;;  %v7175_v28 = vld [vmem:[%s8263_s25 + $0xd0] ss:$24 sps:$4 sm:$0xff]  }
 0x156   : > { %4996 = vmatpush1.bf16.msra.mxu1 %v7160_v31  ;;  %v9063_v30 = vpack.c.bf16 %v1000_v14, %v988_v54  ;;  %v1006_v3 = vmul.f32 %v922_v35, %v670_v61  ;;  %v663_v31 = vmul.f32 0.5, %v9003_v1  ;;  %7890 = verf.f32 %v765_v22  ;;  %v7178_v29 = vld [vmem:[%s8263_s25 + $0xf8] ss:$24 sps:$4 sm:$0xff]   ;;  %v7186_v60 = vld [vmem:[%s8263_s25 + $0x12c] ss:$24 sps:$4 sm:$0xff]  }
 0x157   : > { %4963 = vmatmul.mubr.bf16.gmra.mrb[4].mxu0 %v9043_v8  ;;  %4997 = vmatprep.subr.bf16.mxu1 %v7168_v15  ;;  %v7879_v59 = vpop.eup %7878  ;;  %v903_v15 = vadd.f32 1.0, %v7877_v48  ;;  %v669_v61 = vmul.f32 0.5, %v9018_v25  ;;  %v675_v25 = vmul.f32 0.5, %v9035_v11  ;;  %v7181_v22 = vld [vmem:[%s8263_s25 + $0x100] ss:$24 sps:$4 sm:$0xff]  }
 0x158   : > { %5422 = vmatpush1.bf16.msra.mxu0 %v7163_v41  ;;  %4759 = vmatprep.mubr.bf16.mxu1 %v9063_v30  ;;  %v9069_v34 = vpack.c.bf16 %v1006_v3, %v994_v19  ;;  %v915_v24 = vadd.f32 1.0, %v7879_v59  ;;  %v7172_v41 = vld [vmem:[%s8263_s25 + $0xc8] ss:$24 sps:$4 sm:$0xff]   ;;  %v7881_v1 = vpop.eup %7880  ;;  %v7183_v19 = vld [vmem:[%s8263_s25 + $0x104] ss:$24 sps:$4 sm:$0xff]  }
 0x159   : > { %5423 = vmatprep.subr.bf16.mxu0 %v7171_v49  ;;  %v987_v40 = vmul.f32 %v903_v15, %v651_v2  ;;  %v7883_v49 = vpop.eup %7882  ;;  %v909_v54 = vadd.f32 1.0, %v7881_v1 }
 0x15a   : > { %4998 = vmatpush1.bf16.msra.mxu1 %v7166_v50  ;;  %4972 = vmatprep.mubr.bf16.mxu0 %v9069_v34  ;;  %v999_v50 = vmul.f32 %v915_v24, %v663_v31  ;;  %v921_v35 = vadd.f32 1.0, %v7883_v49 }
 0x15b   : > { %4999 = vmatprep.subr.bf16.mxu1 %v7174_v36  ;;  %v7885_v14 = vpop.eup %7884 }
 0x15c   : > { %5424 = vmatpush1.bf16.msra.mxu0 %v7169_v38  ;;  %v7887_v2 = vpop.eup %7886  ;;  %v9080_v36 = vpack.c.bf16 %v999_v50, %v987_v40  ;;  %v993_v38 = vmul.f32 %v909_v54, %v657_v13  ;;  %v928_v48 = vadd.f32 1.0, %v7885_v14  ;;  %v1005_v3 = vmul.f32 %v921_v35, %v669_v61  ;;  %v7184_v13 = vld [vmem:[%s8263_s25 + $0x128] ss:$24 sps:$4 sm:$0xff]   ;;  %v7192_v40 = vld [vmem:[%s8263_s25 + $0x15c] ss:$24 sps:$4 sm:$0xff]  }
 0x15d   : > { %5425 = vmatprep.subr.bf16.mxu0 %v7177_v51  ;;  %v927_v31 = vadd.f32 1.0, %v7887_v2  ;;  %v7189_v51 = vld [vmem:[%s8263_s25 + $0x134] ss:$24 sps:$4 sm:$0xff]   ;;  %v7889_v1 = vpop.eup %7888  ;;  %v681_v61 = vmul.f32 0.5, %v9057_v10  ;;  %v7187_v50 = vld [vmem:[%s8263_s25 + $0x130] ss:$24 sps:$4 sm:$0xff]  }
 0x15e   : > { %5000 = vmatpush1.bf16.msra.mxu1 %v7172_v41  ;;  %v1012_v59 = vmul.f32 %v928_v48, %v676_v42  ;;  %v9086_v11 = vpack.c.bf16 %v1005_v3, %v993_v38  ;;  %v682_v41 = vmul.f32 0.5, %v9054_v44  ;;  %v934_v54 = vadd.f32 1.0, %v7889_v1  ;;  %v7195_v44 = vld [vmem:[%s8263_s25 + $0x164] ss:$24 sps:$4 sm:$0xff]   ;;  %v7190_v42 = vld [vmem:[%s8263_s25 + $0x158] ss:$24 sps:$4 sm:$0xff]  }
 0x15f   : > { %5001 = vmatprep.subr.bf16.mxu1 %v7180_v37  ;;  %4760 = vmatmul.mubr.bf16.gmra.mrb[8].mxu1 %v9080_v36  ;;  %v1011_v15 = vmul.f32 %v927_v31, %v675_v25  ;;  %v7198_v35 = vld [vmem:[%s8263_s25 + $0x18c] ss:$24 sps:$4 sm:$0xff]   ;;  %v7204_v48 = vld [vmem:[%s8263_s25 + $0x1bc] ss:$24 sps:$4 sm:$0xff]   ;;  %v7199_v3 = vld [vmem:[%s8263_s25 + $0x190] ss:$24 sps:$4 sm:$0xff]  }
 0x160   : > { %5426 = vmatpush1.bf16.msra.mxu0 %v7175_v28  ;;  %v9089_v24 = vpack.c.bf16 %v1012_v59, %v1012_v59  ;;  %v7891_v37 = vpop.eup %7890  ;;  %v1018_v14 = vmul.f32 %v934_v54, %v682_v41  ;;  %v7201_v38 = vld [vmem:[%s8263_s25 + $0x194] ss:$24 sps:$4 sm:$0xff]   ;;  %v7207_v31 = vld [vmem:[%s8263_s25 + $0x1c4] ss:$24 sps:$4 sm:$0xff]   ;;  %v7205_v59 = vld [vmem:[%s8263_s25 + $0x1c0] ss:$24 sps:$4 sm:$0xff]  }
 0x161   : > { %5427 = vmatprep.subr.bf16.mxu0 %v7183_v19  ;;  %4973 = vmatmul.mubr.bf16.gmra.mrb[8].mxu0 %v9086_v11  ;;  %v9097_v49 = vpack.c.bf16 %v1011_v15, %v1011_v15  ;;  %v933_v28 = vadd.f32 1.0, %v7891_v37  ;;  %v7193_v19 = vld [vmem:[%s8263_s25 + $0x160] ss:$24 sps:$4 sm:$0xff]   ;;  %v7213_v15 = vld [vmem:[%s8263_s25 + $0x1f4] ss:$24 sps:$4 sm:$0xff]  }
 0x162   : > { %5002 = vmatpush1.bf16.msra.mxu1 %v7178_v29  ;;  %4769 = vmatprep.mubr.bf16.mxu1 %v9089_v24  ;;  %v9105_v25 = vpack.c.bf16 %v1018_v14, %v1018_v14  ;;  %v7196_v29 = vld [vmem:[%s8263_s25 + $0x188] ss:$24 sps:$4 sm:$0xff]   ;;  %v7219_v41 = vld [vmem:[%s8263_s25 + $0x224] ss:$24 sps:$4 sm:$0xff]   ;;  %v7214_v1 = vld [vmem:[%s8263_s25 + $0x218] ss:$24 sps:$4 sm:$0xff]  }
 0x163   : > { %5003 = vmatprep.subr.bf16.mxu1 %v7186_v60  ;;  %v1017_v10 = vmul.f32 %v933_v28, %v681_v61  ;;  %v7202_v60 = vld [vmem:[%s8263_s25 + $0x1b8] ss:$24 sps:$4 sm:$0xff]   ;;  %v7225_v37 = vld [vmem:[%s8263_s25 + $0x254] ss:$24 sps:$4 sm:$0xff]   ;;  %v7231_v28 = vld [vmem:[%s8263_s25 + $0x284] ss:$24 sps:$4 sm:$0xff]  }
 0x164   : > { %5428 = vmatpush1.bf16.msra.mxu0 %v7181_v22  ;;  %4982 = vmatprep.mubr.bf16.mxu0 %v9105_v25  ;;  %v7210_v22 = vld [vmem:[%s8263_s25 + $0x1ec] ss:$24 sps:$4 sm:$0xff]   ;;  %v7217_v61 = vld [vmem:[%s8263_s25 + $0x220] ss:$24 sps:$4 sm:$0xff]   ;;  %v7228_v54 = vld [vmem:[%s8263_s25 + $0x27c] ss:$24 sps:$4 sm:$0xff]  }
 0x165   : > { %5429 = vmatprep.subr.bf16.mxu0 %v7189_v51  ;;  %v9107_v2 = vpack.c.bf16 %v1017_v10, %v1017_v10  ;;  %v7208_v51 = vld [vmem:[%s8263_s25 + $0x1e8] ss:$24 sps:$4 sm:$0xff]   ;;  %v7234_v14 = vld [vmem:[%s8263_s25 + $0x2ac] ss:$24 sps:$4 sm:$0xff]  }
 0x166   : > { %5004 = vmatpush1.bf16.msra.mxu1 %v7184_v13  ;;  %v7211_v13 = vld [vmem:[%s8263_s25 + $0x1f0] ss:$24 sps:$4 sm:$0xff]   ;;  %v7229_v10 = vld [vmem:[%s8263_s25 + $0x280] ss:$24 sps:$4 sm:$0xff]  }
 0x167   : > { %5005 = vmatprep.subr.bf16.mxu1 %v7192_v40  ;;  %4770 = vmatmul.mubr.bf16.gmra.mrb[20].mxu1 %v9097_v49  ;;  %v7222_v40 = vld [vmem:[%s8263_s25 + $0x24c] ss:$24 sps:$4 sm:$0xff]  }
 0x168   : > { %5430 = vmatpush1.bf16.msra.mxu0 %v7187_v50  ;;  %5023 = vmatprep.mubr.bf16.mxu1 %v8471_v6  ;;  %v7220_v50 = vld [vmem:[%s8263_s25 + $0x248] ss:$24 sps:$4 sm:$0xff]  }
 0x169   : > { %5431 = vmatprep.subr.bf16.mxu0 %v7195_v44  ;;  %4983 = vmatmul.mubr.bf16.gmra.mrb[20].mxu0 %v9107_v2  ;;  %v7223_v44 = vld [vmem:[%s8263_s25 + $0x250] ss:$24 sps:$4 sm:$0xff]  }
 0x16a   : > { %5006 = vmatpush1.bf16.msra.mxu1 %v7190_v42  ;;  %5449 = vmatprep.mubr.bf16.mxu0 %v8471_v6  ;;  %v7216_v6 = vld [vmem:[%s8263_s25 + $0x21c] ss:$24 sps:$4 sm:$0xff]   ;;  %v7226_v42 = vld [vmem:[%s8263_s25 + $0x278] ss:$24 sps:$4 sm:$0xff]  }
 0x16b   : > { %5007 = vmatprep.subr.bf16.mxu1 %v7198_v35  ;;  %v7237_v35 = vld [vmem:[%s8263_s25 + $0x2b4] ss:$24 sps:$4 sm:$0xff]  }
 0x16c   : > { %5432 = vmatpush1.bf16.msra.mxu0 %v7193_v19  ;;  %v7232_v19 = vld [vmem:[%s8263_s25 + $0x2a8] ss:$24 sps:$4 sm:$0xff]  }
 0x16d   : > { %5433 = vmatprep.subr.bf16.mxu0 %v7201_v38  ;;  %v7240_v38 = vld [vmem:[%s8263_s25 + $0x2dc] ss:$24 sps:$4 sm:$0xff]  }
 0x16e   : > { %5008 = vmatpush1.bf16.msra.mxu1 %v7196_v29  ;;  %v7235_v29 = vld [vmem:[%s8263_s25 + $0x2b0] ss:$24 sps:$4 sm:$0xff]  }
 0x16f   : > { %5009 = vmatprep.subr.bf16.mxu1 %v7204_v48  ;;  %v7243_v48 = vld [vmem:[%s8263_s25 + $0x2e4] ss:$24 sps:$4 sm:$0xff]  }
 0x170   : > { %5434 = vmatpush1.bf16.msra.mxu0 %v7199_v3  ;;  %v7238_v3 = vld [vmem:[%s8263_s25 + $0x2d8] ss:$24 sps:$4 sm:$0xff]  }
 0x171   : > { %5435 = vmatprep.subr.bf16.mxu0 %v7207_v31  ;;  %v7246_v31 = vld [vmem:[%s8263_s25 + $0x30c] ss:$24 sps:$4 sm:$0xff]  }
 0x172   : > { %5010 = vmatpush1.bf16.msra.mxu1 %v7202_v60  ;;  %v7241_v60 = vld [vmem:[%s8263_s25 + $0x2e0] ss:$24 sps:$4 sm:$0xff]  }
 0x173   : > { %5011 = vmatprep.subr.bf16.mxu1 %v7210_v22  ;;  %v7249_v22 = vld [vmem:[%s8263_s25 + $0x314] ss:$24 sps:$4 sm:$0xff]  }
 0x174   : > { %5436 = vmatpush1.bf16.msra.mxu0 %v7205_v59  ;;  %v7244_v59 = vld [vmem:[%s8263_s25 + $0x308] ss:$24 sps:$4 sm:$0xff]  }
 0x175   : > { %5437 = vmatprep.subr.bf16.mxu0 %v7213_v15  ;;  %v7252_v15 = vld [vmem:[%s8263_s25 + $0x33c] ss:$24 sps:$4 sm:$0xff]  }
 0x176   : > { %5012 = vmatpush1.bf16.msra.mxu1 %v7208_v51  ;;  %v7247_v51 = vld [vmem:[%s8263_s25 + $0x310] ss:$24 sps:$4 sm:$0xff]  }
 0x177   : > { %5013 = vmatprep.subr.bf16.mxu1 %v7216_v6  ;;  %v7255_v6 = vld [vmem:[%s8263_s25 + $0x344] ss:$24 sps:$4 sm:$0xff]  }
 0x178   : > { %5438 = vmatpush1.bf16.msra.mxu0 %v7211_v13  ;;  %v7250_v13 = vld [vmem:[%s8263_s25 + $0x338] ss:$24 sps:$4 sm:$0xff]  }
 0x179   : > { %5439 = vmatprep.subr.bf16.mxu0 %v7219_v41  ;;  %v7258_v41 = vld [vmem:[%s8263_s25 + $0x36c] ss:$24 sps:$4 sm:$0xff]  }
 0x17a   : > { %5014 = vmatpush1.bf16.msra.mxu1 %v7214_v1  ;;  %v7253_v1 = vld [vmem:[%s8263_s25 + $0x340] ss:$24 sps:$4 sm:$0xff]  }
 0x17b   : > { %5015 = vmatprep.subr.bf16.mxu1 %v7222_v40  ;;  %v7261_v40 = vld [vmem:[%s8263_s25 + $0x374] ss:$24 sps:$4 sm:$0xff]  }
 0x17c   : > { %5440 = vmatpush1.bf16.msra.mxu0 %v7217_v61  ;;  %v7256_v61 = vld [vmem:[%s8263_s25 + $0x368] ss:$24 sps:$4 sm:$0xff]  }
 0x17d   : > { %5441 = vmatprep.subr.bf16.mxu0 %v7225_v37  ;;  %v7264_v37 = vld [vmem:[%s8263_s25 + $0x39c] ss:$24 sps:$4 sm:$0xff]  }
 0x17e   : > { %5016 = vmatpush1.bf16.msra.mxu1 %v7220_v50  ;;  %v7259_v50 = vld [vmem:[%s8263_s25 + $0x370] ss:$24 sps:$4 sm:$0xff]  }
 0x17f   : > { %5017 = vmatprep.subr.bf16.mxu1 %v7228_v54  ;;  %v7270_v54 = vld [vmem:[%s8263_s25 + $0x3cc] ss:$24 sps:$4 sm:$0xff]  }
 0x180   : > { %5442 = vmatpush1.bf16.msra.mxu0 %v7223_v44  ;;  %v7265_v44 = vld [vmem:[%s8263_s25 + $0x3a0] ss:$24 sps:$4 sm:$0xff]  }
 0x181   : > { %5443 = vmatprep.subr.bf16.mxu0 %v7231_v28  ;;  %v7273_v28 = vld [vmem:[%s8263_s25 + $0x3d4] ss:$24 sps:$4 sm:$0xff]  }
 0x182   : > { %5018 = vmatpush1.bf16.msra.mxu1 %v7226_v42  ;;  %v7268_v42 = vld [vmem:[%s8263_s25 + $0x3c8] ss:$24 sps:$4 sm:$0xff]  }
 0x183   : > { %5019 = vmatprep.subr.bf16.mxu1 %v7234_v14  ;;  %v7276_v14 = vld [vmem:[%s8263_s25 + $0x3fc] ss:$24 sps:$4 sm:$0xff]  }
 0x184   : > { %5444 = vmatpush1.bf16.msra.mxu0 %v7229_v10  ;;  %v7271_v10 = vld [vmem:[%s8263_s25 + $0x3d0] ss:$24 sps:$4 sm:$0xff]  }
 0x185   : > { %5445 = vmatprep.subr.bf16.mxu0 %v7237_v35  ;;  %v7279_v35 = vld [vmem:[%s8263_s25 + $0x404] ss:$24 sps:$4 sm:$0xff]  }
 0x186   : > { %5020 = vmatpush1.bf16.msra.mxu1 %v7232_v19  ;;  %v7277_v19 = vld [vmem:[%s8263_s25 + $0x400] ss:$24 sps:$4 sm:$0xff]  }
 0x187   : > { %5021 = vmatprep.subr.bf16.mxu1 %v7240_v38  ;;  %v7285_v38 = vld [vmem:[%s8263_s25 + $0x434] ss:$24 sps:$4 sm:$0xff]  }
 0x188   : > { %5446 = vmatpush1.bf16.msra.mxu0 %v7235_v29  ;;  %v7280_v29 = vld [vmem:[%s8263_s25 + $0x428] ss:$24 sps:$4 sm:$0xff]  }
 0x189   : > { %5447 = vmatprep.subr.bf16.mxu0 %v7243_v48  ;;  %v7288_v48 = vld [vmem:[%s8263_s25 + $0x45c] ss:$24 sps:$4 sm:$0xff]  }
 0x18a   : > { %5022 = vmatpush1.bf16.msra.mxu1 %v7238_v3  ;;  %v7283_v3 = vld [vmem:[%s8263_s25 + $0x430] ss:$24 sps:$4 sm:$0xff]  }
 0x18b   : > { %5062 = vmatprep.subr.bf16.mxu1 %v7246_v31  ;;  %v7291_v31 = vld [vmem:[%s8263_s25 + $0x464] ss:$24 sps:$4 sm:$0xff]  }
 0x18c   : > { %5448 = vmatpush1.bf16.msra.mxu0 %v7241_v60  ;;  %v7289_v60 = vld [vmem:[%s8263_s25 + $0x460] ss:$24 sps:$4 sm:$0xff]  }
 0x18d   : > { %5488 = vmatprep.subr.bf16.mxu0 %v7249_v22  ;;  %5024 = vmatmul.mubr.bf16.vlgmr.msra.gmra.mrb[24].mxu1 %v8480_v23  ;;  %v7297_v22 = vld [vmem:[%s8263_s25 + $0x494] ss:$24 sps:$4 sm:$0xff]  }
 0x18e   : > { %5063 = vmatpush1.bf16.msra.mxu1 %v7244_v59  ;;  %5033 = vmatprep.mubr.bf16.mxu1 %v8556_v47  ;;  %v7292_v59 = vld [vmem:[%s8263_s25 + $0x488] ss:$24 sps:$4 sm:$0xff]  }
 0x18f   : > { %5450 = vmatmul.mubr.bf16.vlgmr.msra.gmra.mrb[24].mxu0 %v8480_v23  ;;  %5064 = vmatprep.subr.bf16.mxu1 %v7252_v15  ;;  %v7267_v23 = vld [vmem:[%s8263_s25 + $0x3a4] ss:$24 sps:$4 sm:$0xff]  }
 0x190   : > { %5489 = vmatpush1.bf16.msra.mxu0 %v7247_v51  ;;  %5459 = vmatprep.mubr.bf16.mxu0 %v8556_v47  ;;  %v7262_v47 = vld [vmem:[%s8263_s25 + $0x398] ss:$24 sps:$4 sm:$0xff]   ;;  %v7300_v15 = vld [vmem:[%s8263_s25 + $0x4bc] ss:$24 sps:$4 sm:$0xff]  }
 0x191   : > { %5490 = vmatprep.subr.bf16.mxu0 %v7255_v6  ;;  %v7295_v51 = vld [vmem:[%s8263_s25 + $0x490] ss:$24 sps:$4 sm:$0xff]  }
 0x192   : > { %5065 = vmatpush1.bf16.msra.mxu1 %v7250_v13  ;;  %v7298_v6 = vld [vmem:[%s8263_s25 + $0x4b8] ss:$24 sps:$4 sm:$0xff]  }
 0x193   : > { %5066 = vmatprep.subr.bf16.mxu1 %v7258_v41  ;;  %v7301_v13 = vld [vmem:[%s8263_s25 + $0x4c0] ss:$24 sps:$4 sm:$0xff]   ;;  %v7309_v41 = vld [vmem:[%s8263_s25 + $0x4f4] ss:$24 sps:$4 sm:$0xff]  }
 0x194   : > { %5491 = vmatpush1.bf16.msra.mxu0 %v7253_v1  ;;  %v7304_v1 = vld [vmem:[%s8263_s25 + $0x4e8] ss:$24 sps:$4 sm:$0xff]  }
 0x195   : > { %5492 = vmatprep.subr.bf16.mxu0 %v7261_v40  ;;  %5034 = vmatmul.mubr.bf16.gmra.mrb[28].mxu1 %v8574_v4  ;;  %v7312_v40 = vld [vmem:[%s8263_s25 + $0x51c] ss:$24 sps:$4 sm:$0xff]  }
 0x196   : > { %5067 = vmatpush1.bf16.msra.mxu1 %v7256_v61  ;;  %5043 = vmatprep.mubr.bf16.mxu1 %v8604_v45  ;;  %v7307_v61 = vld [vmem:[%s8263_s25 + $0x4f0] ss:$24 sps:$4 sm:$0xff]  }
 0x197   : > { %5068 = vmatprep.subr.bf16.mxu1 %v7264_v37  ;;  %5460 = vmatmul.mubr.bf16.gmra.mrb[28].mxu0 %v8574_v4  ;;  %v7274_v4 = vld [vmem:[%s8263_s25 + $0x3f8] ss:$24 sps:$4 sm:$0xff]   ;;  %v7315_v37 = vld [vmem:[%s8263_s25 + $0x524] ss:$24 sps:$4 sm:$0xff]  }
 0x198   : > { %5493 = vmatpush1.bf16.msra.mxu0 %v7259_v50  ;;  %5469 = vmatprep.mubr.bf16.mxu0 %v8604_v45  ;;  %v7282_v45 = vld [vmem:[%s8263_s25 + $0x42c] ss:$24 sps:$4 sm:$0xff]   ;;  %v7310_v50 = vld [vmem:[%s8263_s25 + $0x518] ss:$24 sps:$4 sm:$0xff]  }
 0x199   : > { %5494 = vmatprep.subr.bf16.mxu0 %v7267_v23  ;;  %v7318_v23 = vld [vmem:[%s8263_s25 + $0x54c] ss:$24 sps:$4 sm:$0xff]  }
 0x19a   : > { %5069 = vmatpush1.bf16.msra.mxu1 %v7262_v47  ;;  %v7313_v47 = vld [vmem:[%s8263_s25 + $0x520] ss:$24 sps:$4 sm:$0xff]  }
 0x19b   : > { %5070 = vmatprep.subr.bf16.mxu1 %v7270_v54  ;;  %v7321_v54 = vld [vmem:[%s8263_s25 + $0x554] ss:$24 sps:$4 sm:$0xff]  }
 0x19c   : > { %5495 = vmatpush1.bf16.msra.mxu0 %v7265_v44  ;;  %v7316_v44 = vld [vmem:[%s8263_s25 + $0x548] ss:$24 sps:$4 sm:$0xff]  }
 0x19d   : > { %5496 = vmatprep.subr.bf16.mxu0 %v7273_v28  ;;  %5044 = vmatmul.mubr.bf16.gmra.mrb[32].mxu1 %v8636_v43  ;;  %v7324_v28 = vld [vmem:[%s8263_s25 + $0x57c] ss:$24 sps:$4 sm:$0xff]  }
 0x19e   : > { %5071 = vmatpush1.bf16.msra.mxu1 %v7268_v42  ;;  %5053 = vmatprep.mubr.bf16.mxu1 %v8668_v21  ;;  %v7319_v42 = vld [vmem:[%s8263_s25 + $0x550] ss:$24 sps:$4 sm:$0xff]  }
 0x19f   : > { %5072 = vmatprep.subr.bf16.mxu1 %v7276_v14  ;;  %5470 = vmatmul.mubr.bf16.gmra.mrb[32].mxu0 %v8636_v43  ;;  %v7286_v43 = vld [vmem:[%s8263_s25 + $0x458] ss:$24 sps:$4 sm:$0xff]   ;;  %v7327_v14 = vld [vmem:[%s8263_s25 + $0x584] ss:$24 sps:$4 sm:$0xff]  }
 0x1a0   : > { %5497 = vmatpush1.bf16.msra.mxu0 %v7271_v10  ;;  %5479 = vmatprep.mubr.bf16.mxu0 %v8668_v21  ;;  %v7294_v21 = vld [vmem:[%s8263_s25 + $0x48c] ss:$24 sps:$4 sm:$0xff]   ;;  %v7322_v10 = vld [vmem:[%s8263_s25 + $0x578] ss:$24 sps:$4 sm:$0xff]  }
 0x1a1   : > { %5498 = vmatprep.subr.bf16.mxu0 %v7279_v35  ;;  %v7330_v35 = vld [vmem:[%s8263_s25 + $0x5ac] ss:$24 sps:$4 sm:$0xff]  }
 0x1a2   : > { %5073 = vmatpush1.bf16.msra.mxu1 %v7274_v4  ;;  %v7325_v4 = vld [vmem:[%s8263_s25 + $0x580] ss:$24 sps:$4 sm:$0xff]  }
 0x1a3   : > { %5074 = vmatprep.subr.bf16.mxu1 %v7282_v45  ;;  %v7333_v45 = vld [vmem:[%s8263_s25 + $0x5b4] ss:$24 sps:$4 sm:$0xff]  }
 0x1a4   : > { %5499 = vmatpush1.bf16.msra.mxu0 %v7277_v19  ;;  %v7328_v19 = vld [vmem:[%s8263_s25 + $0x5a8] ss:$24 sps:$4 sm:$0xff]  }
 0x1a5   : > { %5500 = vmatprep.subr.bf16.mxu0 %v7285_v38  ;;  %5054 = vmatmul.mubr.bf16.gmra.mrb[36].mxu1 %v8684_v5  ;;  %v7336_v38 = vld [vmem:[%s8263_s25 + $0x5dc] ss:$24 sps:$4 sm:$0xff]  }
 0x1a6   : > { %5075 = vmatpush1.bf16.msra.mxu1 %v7280_v29  ;;  %5094 = vmatprep.mubr.bf16.mxu1 %v8707_v39  ;;  %v7331_v29 = vld [vmem:[%s8263_s25 + $0x5b0] ss:$24 sps:$4 sm:$0xff]  }
 0x1a7   : > { %5076 = vmatprep.subr.bf16.mxu1 %v7288_v48  ;;  %5480 = vmatmul.mubr.bf16.gmra.mrb[36].mxu0 %v8684_v5  ;;  %v7303_v5 = vld [vmem:[%s8263_s25 + $0x4c4] ss:$24 sps:$4 sm:$0xff]  }
 0x1a8   : > { %5501 = vmatpush1.bf16.msra.mxu0 %v7283_v3  ;;  %5520 = vmatprep.mubr.bf16.mxu0 %v8707_v39  ;;  %v7306_v39 = vld [vmem:[%s8263_s25 + $0x4ec] ss:$24 sps:$4 sm:$0xff]   ;;  %v7334_v3 = vld [vmem:[%s8263_s25 + $0x5d8] ss:$24 sps:$4 sm:$0xff]  }
 0x1a9   : > { %5502 = vmatprep.subr.bf16.mxu0 %v7291_v31  ;;  %v7339_v48 = vld [vmem:[%s8263_s25 + $0x5e4] ss:$24 sps:$4 sm:$0xff]  }
 0x1aa   : > { %5077 = vmatpush1.bf16.msra.mxu1 %v7286_v43  ;;  %v7342_v31 = vld [vmem:[%s8263_s25 + $0x60c] ss:$24 sps:$4 sm:$0xff]   ;;  %v7337_v43 = vld [vmem:[%s8263_s25 + $0x5e0] ss:$24 sps:$4 sm:$0xff]  }
 0x1ab   : > { %5078 = vmatprep.subr.bf16.mxu1 %v7294_v21  ;;  %v7345_v21 = vld [vmem:[%s8263_s25 + $0x614] ss:$24 sps:$4 sm:$0xff]  }
 0x1ac   : > { %5503 = vmatpush1.bf16.msra.mxu0 %v7289_v60  ;;  %v7340_v60 = vld [vmem:[%s8263_s25 + $0x608] ss:$24 sps:$4 sm:$0xff]  }
 0x1ad   : > { %5504 = vmatprep.subr.bf16.mxu0 %v7297_v22  ;;  %v7348_v22 = vld [vmem:[%s8263_s25 + $0x63c] ss:$24 sps:$4 sm:$0xff]  }
 0x1ae   : > { %5079 = vmatpush1.bf16.msra.mxu1 %v7292_v59  ;;  %v7343_v59 = vld [vmem:[%s8263_s25 + $0x610] ss:$24 sps:$4 sm:$0xff]  }
 0x1af   : > { %5080 = vmatprep.subr.bf16.mxu1 %v7300_v15  ;;  %v7351_v15 = vld [vmem:[%s8263_s25 + $0x644] ss:$24 sps:$4 sm:$0xff]  }
 0x1b0   : > { %5505 = vmatpush1.bf16.msra.mxu0 %v7295_v51  ;;  %v7346_v51 = vld [vmem:[%s8263_s25 + $0x638] ss:$24 sps:$4 sm:$0xff]  }
 0x1b1   : > { %5506 = vmatprep.subr.bf16.mxu0 %v7303_v5  ;;  %v7354_v5 = vld [vmem:[%s8263_s25 + $0x66c] ss:$24 sps:$4 sm:$0xff]  }
 0x1b2   : > { %5081 = vmatpush1.bf16.msra.mxu1 %v7298_v6  ;;  %v7349_v6 = vld [vmem:[%s8263_s25 + $0x640] ss:$24 sps:$4 sm:$0xff]  }
 0x1b3   : > { %5082 = vmatprep.subr.bf16.mxu1 %v7306_v39  ;;  %v7357_v39 = vld [vmem:[%s8263_s25 + $0x674] ss:$24 sps:$4 sm:$0xff]  }
 0x1b4   : > { %5507 = vmatpush1.bf16.msra.mxu0 %v7301_v13  ;;  %v7352_v13 = vld [vmem:[%s8263_s25 + $0x668] ss:$24 sps:$4 sm:$0xff]  }
 0x1b5   : > { %5508 = vmatprep.subr.bf16.mxu0 %v7309_v41 }
 0x1b6   : > { %5083 = vmatpush1.bf16.msra.mxu1 %v7304_v1 }
 0x1b7   : > { %5084 = vmatprep.subr.bf16.mxu1 %v7312_v40  ;;  %v7360_v40 = vld [vmem:[%s8263_s25 + $0x69c] ss:$24 sps:$4 sm:$0xff]  }
 0x1b8   : > { %5509 = vmatpush1.bf16.msra.mxu0 %v7307_v61 }
 0x1b9   : > { %5510 = vmatprep.subr.bf16.mxu0 %v7315_v37 }
 0x1ba   : > { %5085 = vmatpush1.bf16.msra.mxu1 %v7310_v50  ;;  %v7363_v50 = vld [vmem:[%s8263_s25 + $0x6a4] ss:$24 sps:$4 sm:$0xff]  }
 0x1bb   : > { %5086 = vmatprep.subr.bf16.mxu1 %v7318_v23 }
 0x1bc   : > { %5511 = vmatpush1.bf16.msra.mxu0 %v7313_v47  ;;  %v7358_v47 = vld [vmem:[%s8263_s25 + $0x698] ss:$24 sps:$4 sm:$0xff]  }
 0x1bd   : > { %5512 = vmatprep.subr.bf16.mxu0 %v7321_v54 }
 0x1be   : > { %5087 = vmatpush1.bf16.msra.mxu1 %v7316_v44  ;;  %v7366_v44 = vld [vmem:[%s8263_s25 + $0x6cc] ss:$24 sps:$4 sm:$0xff]  }
 0x1bf   : > { %5088 = vmatprep.subr.bf16.mxu1 %v7324_v28 }
 0x1c0   : > { %5513 = vmatpush1.bf16.msra.mxu0 %v7319_v42  ;;  %v7361_v42 = vld [vmem:[%s8263_s25 + $0x6a0] ss:$24 sps:$4 sm:$0xff]  }
 0x1c1   : > { %5514 = vmatprep.subr.bf16.mxu0 %v7327_v14  ;;  %v7369_v14 = vld [vmem:[%s8263_s25 + $0x6d4] ss:$24 sps:$4 sm:$0xff]  }
 0x1c2   : > { %5089 = vmatpush1.bf16.msra.mxu1 %v7322_v10  ;;  %v7364_v10 = vld [vmem:[%s8263_s25 + $0x6c8] ss:$24 sps:$4 sm:$0xff]  }
 0x1c3   : > { %5090 = vmatprep.subr.bf16.mxu1 %v7330_v35  ;;  %v7372_v35 = vld [vmem:[%s8263_s25 + $0x6fc] ss:$24 sps:$4 sm:$0xff]  }
 0x1c4   : > { %5515 = vmatpush1.bf16.msra.mxu0 %v7325_v4  ;;  %v7375_v4 = vld [vmem:[%s8263_s25 + $0x704] ss:$24 sps:$4 sm:$0xff]  }
 0x1c5   : > { %5516 = vmatprep.subr.bf16.mxu0 %v7333_v45  ;;  %v7378_v45 = vld [vmem:[%s8263_s25 + $0x72c] ss:$24 sps:$4 sm:$0xff]  }
 0x1c6   : > { %5091 = vmatpush1.bf16.msra.mxu1 %v7328_v19  ;;  %v7373_v19 = vld [vmem:[%s8263_s25 + $0x700] ss:$24 sps:$4 sm:$0xff]  }
 0x1c7   : > { %5092 = vmatprep.subr.bf16.mxu1 %v7336_v38  ;;  %v7381_v38 = vld [vmem:[%s8263_s25 + $0x734] ss:$24 sps:$4 sm:$0xff]  }
 0x1c8   : > { %5517 = vmatpush1.bf16.msra.mxu0 %v7331_v29  ;;  %v7376_v29 = vld [vmem:[%s8263_s25 + $0x728] ss:$24 sps:$4 sm:$0xff]  }
 0x1c9   : > { %5518 = vmatprep.subr.bf16.mxu0 %v7339_v48  ;;  %v7384_v48 = vld [vmem:[%s8263_s25 + $0x75c] ss:$24 sps:$4 sm:$0xff]  }
 0x1ca   : > { %5093 = vmatpush1.bf16.msra.mxu1 %v7334_v3  ;;  %v7379_v3 = vld [vmem:[%s8263_s25 + $0x730] ss:$24 sps:$4 sm:$0xff]  }
 0x1cb   : > { %5133 = vmatprep.subr.bf16.mxu1 %v7342_v31  ;;  %v7390_v31 = vld [vmem:[%s8263_s25 + $0x78c] ss:$24 sps:$4 sm:$0xff]  }
 0x1cc   : > { %5519 = vmatpush1.bf16.msra.mxu0 %v7337_v43  ;;  %v7385_v43 = vld [vmem:[%s8263_s25 + $0x760] ss:$24 sps:$4 sm:$0xff]  }
 0x1cd   : > { %5095 = vmatmul.mubr.bf16.vlgmr.msra.gmra.mrb[24].mxu1 %v8735_v26  ;;  %5559 = vmatprep.subr.bf16.mxu0 %v7345_v21  ;;  %v7393_v21 = vld [vmem:[%s8263_s25 + $0x794] ss:$24 sps:$4 sm:$0xff]  }
 0x1ce   : > { %5134 = vmatpush1.bf16.msra.mxu1 %v7340_v60  ;;  %5104 = vmatprep.mubr.bf16.mxu1 %v8755_v55  ;;  %v7388_v60 = vld [vmem:[%s8263_s25 + $0x788] ss:$24 sps:$4 sm:$0xff]  }
 0x1cf   : > { %5521 = vmatmul.mubr.bf16.vlgmr.msra.gmra.mrb[24].mxu0 %v8735_v26  ;;  %5135 = vmatprep.subr.bf16.mxu1 %v7348_v22  ;;  %v9239_v41 = vpop.f32.mrb[12].mxu1  ;;  %v7355_v26 = vld [vmem:[%s8263_s25 + $0x670] ss:$24 sps:$4 sm:$0xff]   ;;  %v7396_v22 = vld [vmem:[%s8263_s25 + $0x7bc] ss:$24 sps:$4 sm:$0xff]  }
 0x1d0   : > { %5560 = vmatpush1.bf16.msra.mxu0 %v7343_v59  ;;  %5530 = vmatprep.mubr.bf16.mxu0 %v8755_v55  ;;  %v9241_v1 = vpop.f32.mrb[13].mxu1  ;;  %v7399_v59 = vld [vmem:[%s8263_s25 + $0x7c4] ss:$24 sps:$4 sm:$0xff]  }
 0x1d1   : > { %5561 = vmatprep.subr.bf16.mxu0 %v7351_v15  ;;  %v4633_v61 = vpop.f32.mrb[14].mxu1  ;;  %v9246_v55 = vpop.f32.mrb[12].mxu0  ;;  %v7394_v15 = vld [vmem:[%s8263_s25 + $0x7b8] ss:$24 sps:$4 sm:$0xff]  }
 0x1d2   : > { %5136 = vmatpush1.bf16.msra.mxu1 %v7346_v51  ;;  %v4634_v37 = vpop.f32.mrb[15].mxu1  ;;  %v9249_v23 = vpop.f32.mrb[13].mxu0  ;;  %v7397_v51 = vld [vmem:[%s8263_s25 + $0x7c0] ss:$24 sps:$4 sm:$0xff]   ;;  %v7414_v61 = vld [vmem:[%s8263_s25 + $0x84c] ss:$24 sps:$4 sm:$0xff]  }
 0x1d3   : > { %5137 = vmatprep.subr.bf16.mxu1 %v7354_v5  ;;  %v4846_v54 = vpop.f32.mrb[14].mxu0  ;;  %v7405_v5 = vld [vmem:[%s8263_s25 + $0x7f4] ss:$24 sps:$4 sm:$0xff]  }
 0x1d4   : > { %5562 = vmatpush1.bf16.msra.mxu0 %v7349_v6  ;;  %v4847_v28 = vpop.f32.mrb[15].mxu0  ;;  %v7400_v6 = vld [vmem:[%s8263_s25 + $0x7e8] ss:$24 sps:$4 sm:$0xff]  }
 0x1d5   : > { %5105 = vmatmul.mubr.bf16.gmra.mrb[28].mxu1 %v8761_v32  ;;  %5563 = vmatprep.subr.bf16.mxu0 %v7357_v39  ;;  %v7408_v39 = vld [vmem:[%s8263_s25 + $0x81c] ss:$24 sps:$4 sm:$0xff]  }
 0x1d6   : > { %5138 = vmatpush1.bf16.msra.mxu1 %v7352_v13  ;;  %5114 = vmatprep.mubr.bf16.mxu1 %v8774_v46  ;;  %v7403_v13 = vld [vmem:[%s8263_s25 + $0x7f0] ss:$24 sps:$4 sm:$0xff]  }
 0x1d7   : > { %5531 = vmatmul.mubr.bf16.gmra.mrb[28].mxu0 %v8761_v32  ;;  %5139 = vmatprep.subr.bf16.mxu1 %v7360_v40  ;;  %v7367_v32 = vld [vmem:[%s8263_s25 + $0x6d0] ss:$24 sps:$4 sm:$0xff]   ;;  %v7411_v40 = vld [vmem:[%s8263_s25 + $0x824] ss:$24 sps:$4 sm:$0xff]  }
 0x1d8   : > { %5564 = vmatpush1.bf16.msra.mxu0 %v7355_v26  ;;  %5540 = vmatprep.mubr.bf16.mxu0 %v8774_v46  ;;  %v7370_v46 = vld [vmem:[%s8263_s25 + $0x6f8] ss:$24 sps:$4 sm:$0xff]  }
 0x1d9   : > { %5565 = vmatprep.subr.bf16.mxu0 %v7363_v50  ;;  %v7406_v26 = vld [vmem:[%s8263_s25 + $0x818] ss:$24 sps:$4 sm:$0xff]  }
 0x1da   : > { %5140 = vmatpush1.bf16.msra.mxu1 %v7358_v47  ;;  %v7409_v50 = vld [vmem:[%s8263_s25 + $0x820] ss:$24 sps:$4 sm:$0xff]  }
 0x1db   : > { %5141 = vmatprep.subr.bf16.mxu1 %v7366_v44  ;;  %v7417_v44 = vld [vmem:[%s8263_s25 + $0x854] ss:$24 sps:$4 sm:$0xff]  }
 0x1dc   : > { %5566 = vmatpush1.bf16.msra.mxu0 %v7361_v42  ;;  %v7412_v42 = vld [vmem:[%s8263_s25 + $0x848] ss:$24 sps:$4 sm:$0xff]  }
 0x1dd   : > { %5115 = vmatmul.mubr.bf16.gmra.mrb[32].mxu1 %v8785_v9  ;;  %5567 = vmatprep.subr.bf16.mxu0 %v7369_v14 }
 0x1de   : > { %5142 = vmatpush1.bf16.msra.mxu1 %v7364_v10  ;;  %5124 = vmatprep.mubr.bf16.mxu1 %v8799_v20  ;;  %v7420_v10 = vld [vmem:[%s8263_s25 + $0x87c] ss:$24 sps:$4 sm:$0xff]  }
 0x1df   : > { %5541 = vmatmul.mubr.bf16.gmra.mrb[32].mxu0 %v8785_v9  ;;  %5143 = vmatprep.subr.bf16.mxu1 %v7372_v35  ;;  %v7387_v9 = vld [vmem:[%s8263_s25 + $0x764] ss:$24 sps:$4 sm:$0xff]  }
 0x1e0   : > { %5568 = vmatpush1.bf16.msra.mxu0 %v7367_v32  ;;  %5550 = vmatprep.mubr.bf16.mxu0 %v8799_v20  ;;  %v7382_v20 = vld [vmem:[%s8263_s25 + $0x758] ss:$24 sps:$4 sm:$0xff]   ;;  %v7423_v32 = vld [vmem:[%s8263_s25 + $0x884] ss:$24 sps:$4 sm:$0xff]  }
 0x1e1   : > { %5569 = vmatprep.subr.bf16.mxu0 %v7375_v4  ;;  %v7418_v4 = vld [vmem:[%s8263_s25 + $0x878] ss:$24 sps:$4 sm:$0xff]  }
 0x1e2   : > { %5144 = vmatpush1.bf16.msra.mxu1 %v7370_v46  ;;  %v7421_v46 = vld [vmem:[%s8263_s25 + $0x880] ss:$24 sps:$4 sm:$0xff]  }
 0x1e3   : > { %5145 = vmatprep.subr.bf16.mxu1 %v7378_v45  ;;  %v7429_v45 = vld [vmem:[%s8263_s25 + $0x8b4] ss:$24 sps:$4 sm:$0xff]  }
 0x1e4   : > { %5570 = vmatpush1.bf16.msra.mxu0 %v7373_v19  ;;  %v7424_v19 = vld [vmem:[%s8263_s25 + $0x8a8] ss:$24 sps:$4 sm:$0xff]  }
 0x1e5   : > { %5125 = vmatmul.mubr.bf16.gmra.mrb[40].mxu1 %v8808_v0  ;;  %5571 = vmatprep.subr.bf16.mxu0 %v7381_v38  ;;  %v7432_v38 = vld [vmem:[%s8263_s25 + $0x8dc] ss:$24 sps:$4 sm:$0xff]  }
 0x1e6   : > { %5146 = vmatpush1.bf16.msra.mxu1 %v7376_v29  ;;  %5165 = vmatprep.mubr.bf16.mxu1 %v8959_v52  ;;  %v7427_v29 = vld [vmem:[%s8263_s25 + $0x8b0] ss:$24 sps:$4 sm:$0xff]  }
 0x1e7   : > { %5551 = vmatmul.mubr.bf16.gmra.mrb[40].mxu0 %v8808_v0  ;;  %5147 = vmatprep.subr.bf16.mxu1 %v7384_v48  ;;  %v7391_v0 = vld [vmem:[%s8263_s25 + $0x790] ss:$24 sps:$4 sm:$0xff]   ;;  %v7435_v48 = vld [vmem:[%s8263_s25 + $0x8e4] ss:$24 sps:$4 sm:$0xff]  }
 0x1e8   : > { %5572 = vmatpush1.bf16.msra.mxu0 %v7379_v3  ;;  %5591 = vmatprep.mubr.bf16.mxu0 %v8959_v52  ;;  %v7402_v52 = vld [vmem:[%s8263_s25 + $0x7ec] ss:$24 sps:$4 sm:$0xff]   ;;  %v7430_v3 = vld [vmem:[%s8263_s25 + $0x8d8] ss:$24 sps:$4 sm:$0xff]  }
 0x1e9   : > { %5573 = vmatprep.subr.bf16.mxu0 %v7387_v9  ;;  %v7438_v9 = vld [vmem:[%s8263_s25 + $0x90c] ss:$24 sps:$4 sm:$0xff]  }
 0x1ea   : > { %5148 = vmatpush1.bf16.msra.mxu1 %v7382_v20  ;;  %v7433_v20 = vld [vmem:[%s8263_s25 + $0x8e0] ss:$24 sps:$4 sm:$0xff]  }
 0x1eb   : > { %5149 = vmatprep.subr.bf16.mxu1 %v7390_v31  ;;  %v7441_v31 = vld [vmem:[%s8263_s25 + $0x914] ss:$24 sps:$4 sm:$0xff]  }
 0x1ec   : > { %5574 = vmatpush1.bf16.msra.mxu0 %v7385_v43  ;;  %v7436_v43 = vld [vmem:[%s8263_s25 + $0x908] ss:$24 sps:$4 sm:$0xff]  }
 0x1ed   : > { %5575 = vmatprep.subr.bf16.mxu0 %v7393_v21  ;;  %v7444_v21 = vld [vmem:[%s8263_s25 + $0x93c] ss:$24 sps:$4 sm:$0xff]  }
 0x1ee   : > { %5150 = vmatpush1.bf16.msra.mxu1 %v7388_v60  ;;  %v7439_v60 = vld [vmem:[%s8263_s25 + $0x910] ss:$24 sps:$4 sm:$0xff]  }
 0x1ef   : > { %5151 = vmatprep.subr.bf16.mxu1 %v7396_v22  ;;  %v7447_v22 = vld [vmem:[%s8263_s25 + $0x944] ss:$24 sps:$4 sm:$0xff]  }
 0x1f0   : > { %5576 = vmatpush1.bf16.msra.mxu0 %v7391_v0  ;;  %v7442_v0 = vld [vmem:[%s8263_s25 + $0x938] ss:$24 sps:$4 sm:$0xff]  }
 0x1f1   : > { %5577 = vmatprep.subr.bf16.mxu0 %v7399_v59  ;;  %v7450_v59 = vld [vmem:[%s8263_s25 + $0x96c] ss:$24 sps:$4 sm:$0xff]  }
 0x1f2   : > { %5152 = vmatpush1.bf16.msra.mxu1 %v7394_v15  ;;  %v7445_v15 = vld [vmem:[%s8263_s25 + $0x940] ss:$24 sps:$4 sm:$0xff]  }
 0x1f3   : > { %5153 = vmatprep.subr.bf16.mxu1 %v7402_v52  ;;  %v7453_v52 = vld [vmem:[%s8263_s25 + $0x974] ss:$24 sps:$4 sm:$0xff]  }
 0x1f4   : > { %5578 = vmatpush1.bf16.msra.mxu0 %v7397_v51  ;;  %v7448_v51 = vld [vmem:[%s8263_s25 + $0x968] ss:$24 sps:$4 sm:$0xff]  }
 0x1f5   : > { %5579 = vmatprep.subr.bf16.mxu0 %v7405_v5 }
 0x1f6   : > { %5154 = vmatpush1.bf16.msra.mxu1 %v7400_v6 }
 0x1f7   : > { %5155 = vmatprep.subr.bf16.mxu1 %v7408_v39  ;;  %v7451_v39 = vld [vmem:[%s8263_s25 + $0x970] ss:$24 sps:$4 sm:$0xff]  }
 0x1f8   : > { %5580 = vmatpush1.bf16.msra.mxu0 %v7403_v13  ;;  %v4700_v37 = vpop.f32.mrb[16].mxu1 }
 0x1f9   : > { %v9298_v47 = vadd.f32 %v4700_v37, %v9239_v41  ;;  %v4702_v54 = vpop.f32.mrb[17].mxu1  ;;  %5581 = vmatprep.subr.bf16.mxu0 %v7411_v40  ;;  %v7415_v41 = vld [vmem:[%s8263_s25 + $0x850] ss:$24 sps:$4 sm:$0xff]   ;;  %v7459_v40 = vld [vmem:[%s8263_s25 + $0x9a4] ss:$24 sps:$4 sm:$0xff]  }
 0x1fa   : > { %v9302_v28 = vadd.f32 %v4702_v54, %v9241_v1  ;;  %5156 = vmatpush1.bf16.msra.mxu1 %v7406_v26  ;;  %v4704_v14 = vpop.f32.mrb[18].mxu1  ;;  %v7426_v1 = vld [vmem:[%s8263_s25 + $0x8ac] ss:$24 sps:$4 sm:$0xff]   ;;  %v7454_v26 = vld [vmem:[%s8263_s25 + $0x998] ss:$24 sps:$4 sm:$0xff]  }
 0x1fb   : > { %5157 = vmatprep.subr.bf16.mxu1 %v7414_v61  ;;  %v4705_v35 = vpop.f32.mrb[19].mxu1  ;;  %v7462_v61 = vld [vmem:[%s8263_s25 + $0x9cc] ss:$24 sps:$4 sm:$0xff]   ;;  %v7457_v37 = vld [vmem:[%s8263_s25 + $0x9a0] ss:$24 sps:$4 sm:$0xff]  }
 0x1fc   : > { %5582 = vmatpush1.bf16.msra.mxu0 %v7409_v50  ;;  %v7465_v50 = vld [vmem:[%s8263_s25 + $0x9d4] ss:$24 sps:$4 sm:$0xff]   ;;  %v7460_v54 = vld [vmem:[%s8263_s25 + $0x9c8] ss:$24 sps:$4 sm:$0xff]   ;;  %v7466_v14 = vld [vmem:[%s8263_s25 + $0x9f8] ss:$24 sps:$4 sm:$0xff]  }
 0x1fd   : > { %5583 = vmatprep.subr.bf16.mxu0 %v7417_v44  ;;  %v7468_v44 = vld [vmem:[%s8263_s25 + $0x9fc] ss:$24 sps:$4 sm:$0xff]   ;;  %v1019_v35 = vld [vmem:[%s9879_s3] sm:$0xff] }
 0x1fe   : > { %5158 = vmatpush1.bf16.msra.mxu1 %v7412_v42  ;;  %v7463_v42 = vld [vmem:[%s8263_s25 + $0x9d0] ss:$24 sps:$4 sm:$0xff]  }
 0x1ff   : > { %5159 = vmatprep.subr.bf16.mxu1 %v7420_v10 }
 0x200   : > { %5584 = vmatpush1.bf16.msra.mxu0 %v7415_v41  ;;  %v7469_v41 = vld [vmem:[%s8263_s25 + $0xa00] ss:$24 sps:$4 sm:$0xff]  }
 0x201   : > { %5585 = vmatprep.subr.bf16.mxu0 %v7423_v32 }
 0x202   : > { %5160 = vmatpush1.bf16.msra.mxu1 %v7418_v4  ;;  %v7477_v4 = vld [vmem:[%s8263_s25 + $0xa34] ss:$24 sps:$4 sm:$0xff]  }
 0x203   : > { %5161 = vmatprep.subr.bf16.mxu1 %v7426_v1 }
 0x204   : > { %5586 = vmatpush1.bf16.msra.mxu0 %v7421_v46 }
 0x205   : > { %5587 = vmatprep.subr.bf16.mxu0 %v7429_v45  ;;  %v1025_v45 = vld [vmem:[%s9879_s3 + $0x30] sm:$0xff] }
 0x206   : > { %5162 = vmatpush1.bf16.msra.mxu1 %v7424_v19  ;;  %v7472_v19 = vld [vmem:[%s8263_s25 + $0xa28] ss:$24 sps:$4 sm:$0xff]  }
 0x207   : > { %5163 = vmatprep.subr.bf16.mxu1 %v7432_v38 }
 0x208   : > { %5588 = vmatpush1.bf16.msra.mxu0 %v7427_v29 }
 0x209   : > { %5589 = vmatprep.subr.bf16.mxu0 %v7435_v48  ;;  %v7480_v48 = vld [vmem:[%s8263_s25 + $0xa5c] ss:$24 sps:$4 sm:$0xff]  }
 0x20a   : > { %5164 = vmatpush1.bf16.msra.mxu1 %v7430_v3 }
 0x20b   : > { %5204 = vmatprep.subr.bf16.mxu1 %v7438_v9 }
 0x20c   : > { %5590 = vmatpush1.bf16.msra.mxu0 %v7433_v20  ;;  %v7475_v20 = vld [vmem:[%s8263_s25 + $0xa30] ss:$24 sps:$4 sm:$0xff]  }
 0x20d   : > { %5166 = vmatmul.mubr.bf16.vlgmr.msra.gmra.mrb[24].mxu1 %v8993_v12  ;;  %5630 = vmatprep.subr.bf16.mxu0 %v7441_v31 }
 0x20e   : > { %5205 = vmatpush1.bf16.msra.mxu1 %v7436_v43  ;;  %5175 = vmatprep.mubr.bf16.mxu1 %v9009_v53 }
 0x20f   : > { %5592 = vmatmul.mubr.bf16.vlgmr.msra.gmra.mrb[24].mxu0 %v8993_v12  ;;  %5206 = vmatprep.subr.bf16.mxu1 %v7444_v21  ;;  %v9333_v5 = vpop.f32.mrb[16].mxu0  ;;  %v7456_v12 = vld [vmem:[%s8263_s25 + $0x99c] ss:$24 sps:$4 sm:$0xff]  }
 0x210   : > { %5631 = vmatpush1.bf16.msra.mxu0 %v7439_v60  ;;  %5601 = vmatprep.mubr.bf16.mxu0 %v9009_v53  ;;  %v9335_v6 = vpop.f32.mrb[17].mxu0  ;;  %v1026_v21 = vld [vmem:[%s9879_s3 + $0x38] sm:$0xff] }
 0x211   : > { %5632 = vmatprep.subr.bf16.mxu0 %v7447_v22  ;;  %v4917_v13 = vpop.f32.mrb[18].mxu0  ;;  %v7483_v22 = vld [vmem:[%s8263_s25 + $0xa64] ss:$24 sps:$4 sm:$0xff]  }
 0x212   : > { %5207 = vmatpush1.bf16.msra.mxu1 %v7442_v0  ;;  %v4918_v53 = vpop.f32.mrb[19].mxu0  ;;  %v1031_v13 = vld [vmem:[%s9879_s3 + $0x60] sm:$0xff] }
 0x213   : > { %5208 = vmatprep.subr.bf16.mxu1 %v7450_v59  ;;  %v7481_v53 = vld [vmem:[%s8263_s25 + $0xa60] ss:$24 sps:$4 sm:$0xff]  }
 0x214   : > { %5633 = vmatpush1.bf16.msra.mxu0 %v7445_v15  ;;  %v7478_v15 = vld [vmem:[%s8263_s25 + $0xa58] ss:$24 sps:$4 sm:$0xff]  }
 0x215   : > { %5176 = vmatmul.mubr.bf16.gmra.mrb[28].mxu1 %v9037_v17  ;;  %5634 = vmatprep.subr.bf16.mxu0 %v7453_v52 }
 0x216   : > { %5209 = vmatpush1.bf16.msra.mxu1 %v7448_v51  ;;  %5185 = vmatprep.mubr.bf16.mxu1 %v9063_v30  ;;  %v7486_v51 = vld [vmem:[%s8263_s25 + $0xa8c] ss:$24 sps:$4 sm:$0xff]  }
 0x217   : > { %5602 = vmatmul.mubr.bf16.gmra.mrb[28].mxu0 %v9037_v17  ;;  %5210 = vmatprep.subr.bf16.mxu1 %v7456_v12  ;;  %v7471_v17 = vld [vmem:[%s8263_s25 + $0xa04] ss:$24 sps:$4 sm:$0xff]  }
 0x218   : > { %5635 = vmatpush1.bf16.msra.mxu0 %v7451_v39  ;;  %5611 = vmatprep.mubr.bf16.mxu0 %v9063_v30  ;;  %v7474_v30 = vld [vmem:[%s8263_s25 + $0xa2c] ss:$24 sps:$4 sm:$0xff]  }
 0x219   : > { %5636 = vmatprep.subr.bf16.mxu0 %v7459_v40  ;;  %v1032_v40 = vld [vmem:[%s9879_s3 + $0x68] sm:$0xff] }
 0x21a   : > { %5211 = vmatpush1.bf16.msra.mxu1 %v7454_v26  ;;  %v7489_v26 = vld [vmem:[%s8263_s25 + $0xa94] ss:$24 sps:$4 sm:$0xff]  }
 0x21b   : > { %5212 = vmatprep.subr.bf16.mxu1 %v7462_v61 }
 0x21c   : > { %5637 = vmatpush1.bf16.msra.mxu0 %v7457_v37 }
 0x21d   : > { %5186 = vmatmul.mubr.bf16.gmra.mrb[32].mxu1 %v9080_v36  ;;  %5638 = vmatprep.subr.bf16.mxu0 %v7465_v50 }
 0x21e   : > { %5213 = vmatpush1.bf16.msra.mxu1 %v7460_v54  ;;  %5195 = vmatprep.mubr.bf16.mxu1 %v9089_v24 }
 0x21f   : > { %5612 = vmatmul.mubr.bf16.gmra.mrb[32].mxu0 %v9080_v36  ;;  %5214 = vmatprep.subr.bf16.mxu1 %v7468_v44  ;;  %v1020_v36 = vld [vmem:[%s9879_s3 + $0x8] sm:$0xff] }
 0x220   : > { %5639 = vmatpush1.bf16.msra.mxu0 %v7463_v42  ;;  %v4741_v10 = vpop.f32.mrb[0].mxu1  ;;  %5621 = vmatprep.mubr.bf16.mxu0 %v9089_v24  ;;  %v7492_v42 = vld [vmem:[%s8263_s25 + $0xabc] ss:$24 sps:$4 sm:$0xff]  }
 0x221   : > { %v4743_v32 = vpop.f32.mrb[1].mxu1  ;;  %5640 = vmatprep.subr.bf16.mxu0 %v7471_v17 }
 0x222   : > { %v4954_v1 = vpop.f32.mrb[0].mxu0  ;;  %v4745_v46 = vpop.f32.mrb[2].mxu1  ;;  %5215 = vmatpush1.bf16.msra.mxu1 %v7466_v14  ;;  %v1037_v14 = vld [vmem:[%s9879_s3 + $0x90] sm:$0xff] }
 0x223   : > { %v6622_v38 = vadd.f32 %v4954_v1, %v4741_v10  ;;  %v4956_v29 = vpop.f32.mrb[1].mxu0  ;;  %v4747_v24 = vpop.f32.mrb[3].mxu1  ;;  %5216 = vmatprep.subr.bf16.mxu1 %v7474_v30  ;;  %v7487_v10 = vld [vmem:[%s8263_s25 + $0xa90] ss:$24 sps:$4 sm:$0xff]   ;;  %v7495_v1 = vld [vmem:[%s8263_s25 + $0xac4] ss:$24 sps:$4 sm:$0xff]  }
 0x224   : > { %v6623_v3 = vadd.f32 %v4956_v29, %v4743_v32  ;;  %v4958_v9 = vpop.f32.mrb[2].mxu0  ;;  %5641 = vmatpush1.bf16.msra.mxu0 %v7469_v41  ;;  %v1038_v32 = vld [vmem:[%s9879_s3 + $0x98] sm:$0xff] }
 0x225   : > { %v5843_v31 = vadd.f32 %v6622_v38, %v1019_v35  ;;  %v6624_v43 = vadd.f32 %v4958_v9, %v4745_v46  ;;  %v4960_v60 = vpop.f32.mrb[3].mxu0  ;;  %5196 = vmatmul.mubr.bf16.gmra.mrb[44].mxu1 %v9097_v49  ;;  %5642 = vmatprep.subr.bf16.mxu0 %v7477_v4  ;;  %v7498_v38 = vld [vmem:[%s8263_s25 + $0xaec] ss:$24 sps:$4 sm:$0xff]  }
 0x226   : > { %v5844_v0 = vadd.f32 %v6623_v3, %v1020_v36  ;;  %v6625_v59 = vadd.f32 %v4960_v60, %v4747_v24  ;;  %5217 = vmatpush1.bf16.msra.mxu1 %v7472_v19  ;;  %5236 = vmatprep.mubr.bf16.mxu1 %v8476_v16  ;;  %v7493_v24 = vld [vmem:[%s8263_s25 + $0xac0] ss:$24 sps:$4 sm:$0xff]   ;;  %v1044_v60 = vld [vmem:[%s9879_s3 + $0xc8] sm:$0xff] }
 0x227   : > { %5885 = vst [vmem:[%s9879_s3] sm:$0xff] %v5843_v31  ;;  %v5849_v52 = vadd.f32 %v6624_v43, %v1025_v45  ;;  %5622 = vmatmul.mubr.bf16.gmra.mrb[44].mxu0 %v9097_v49  ;;  %5218 = vmatprep.subr.bf16.mxu1 %v7480_v48  ;;  %v7490_v45 = vld [vmem:[%s8263_s25 + $0xab8] ss:$24 sps:$4 sm:$0xff]   ;;  %v7501_v48 = vld [vmem:[%s8263_s25 + $0xaf4] ss:$24 sps:$4 sm:$0xff]   ;;  %v7496_v3 = vld [vmem:[%s8263_s25 + $0xae8] ss:$24 sps:$4 sm:$0xff]  }
 0x228   : > { %5886 = vst [vmem:[%s9879_s3 + $0x8] sm:$0xff] %v5844_v0  ;;  %v5850_v12 = vadd.f32 %v6625_v59, %v1026_v21  ;;  %5643 = vmatpush1.bf16.msra.mxu0 %v7475_v20  ;;  %v4751_v39 = vpop.f32.mrb[4].mxu1  ;;  %5662 = vmatprep.mubr.bf16.mxu0 %v8476_v16  ;;  %v7484_v16 = vld [vmem:[%s8263_s25 + $0xa88] ss:$24 sps:$4 sm:$0xff]   ;;  %v7504_v20 = vld [vmem:[%s8263_s25 + $0xb1c] ss:$24 sps:$4 sm:$0xff]  }
 0x229   : > { %5891 = vst [vmem:[%s9879_s3 + $0x30] sm:$0xff] %v5849_v52  ;;  %v4753_v49 = vpop.f32.mrb[5].mxu1  ;;  %5644 = vmatprep.subr.bf16.mxu0 %v7483_v22  ;;  %v1043_v31 = vld [vmem:[%s9879_s3 + $0xc0] sm:$0xff]  ;;  %v7499_v21 = vld [vmem:[%s8263_s25 + $0xaf0] ss:$24 sps:$4 sm:$0xff]  }
 0x22a   : > { %5892 = vst [vmem:[%s9879_s3 + $0x38] sm:$0xff] %v5850_v12  ;;  %v4964_v61 = vpop.f32.mrb[4].mxu0  ;;  %v4755_v37 = vpop.f32.mrb[6].mxu1  ;;  %5219 = vmatpush1.bf16.msra.mxu1 %v7478_v15  ;;  %v7507_v0 = vld [vmem:[%s8263_s25 + $0xb24] ss:$24 sps:$4 sm:$0xff]   ;;  %v1049_v15 = vld [vmem:[%s9879_s3 + $0xf0] sm:$0xff] }
 0x22b   : > { %v6626_v50 = vadd.f32 %v4964_v61, %v4751_v39  ;;  %v4966_v54 = vpop.f32.mrb[5].mxu0  ;;  %v4757_v44 = vpop.f32.mrb[7].mxu1  ;;  %5220 = vmatprep.subr.bf16.mxu1 %v7486_v51  ;;  %v7502_v51 = vld [vmem:[%s8263_s25 + $0xb18] ss:$24 sps:$4 sm:$0xff]  }
 0x22c   : > { %v6627_v17 = vadd.f32 %v4966_v54, %v4753_v49  ;;  %v4968_v30 = vpop.f32.mrb[6].mxu0  ;;  %5645 = vmatpush1.bf16.msra.mxu0 %v7481_v53  ;;  %v7510_v53 = vld [vmem:[%s8263_s25 + $0xb4c] ss:$24 sps:$4 sm:$0xff]  }
 0x22d   : > { %v5855_v35 = vadd.f32 %v6626_v50, %v1031_v13  ;;  %v6628_v41 = vadd.f32 %v4968_v30, %v4755_v37  ;;  %v4970_v4 = vpop.f32.mrb[7].mxu0  ;;  %5646 = vmatprep.subr.bf16.mxu0 %v7489_v26  ;;  %v1050_v13 = vld [vmem:[%s9879_s3 + $0xf8] sm:$0xff]  ;;  %v7508_v50 = vld [vmem:[%s8263_s25 + $0xb48] ss:$24 sps:$4 sm:$0xff]   ;;  %v7513_v54 = vld [vmem:[%s8263_s25 + $0xb54] ss:$24 sps:$4 sm:$0xff]  }
 0x22e   : > { %v5856_v36 = vadd.f32 %v6627_v17, %v1032_v40  ;;  %v6629_v46 = vadd.f32 %v4970_v4, %v4757_v44  ;;  %5221 = vmatpush1.bf16.msra.mxu1 %v7484_v16  ;;  %v7505_v26 = vld [vmem:[%s8263_s25 + $0xb20] ss:$24 sps:$4 sm:$0xff]   ;;  %v7516_v30 = vld [vmem:[%s8263_s25 + $0xb7c] ss:$24 sps:$4 sm:$0xff]  }
 0x22f   : > { %5897 = vst [vmem:[%s9879_s3 + $0x60] sm:$0xff] %v5855_v35  ;;  %v5861_v19 = vadd.f32 %v6628_v41, %v1037_v14  ;;  %5222 = vmatprep.subr.bf16.mxu1 %v7492_v42 }
 0x230   : > { %5898 = vst [vmem:[%s9879_s3 + $0x68] sm:$0xff] %v5856_v36  ;;  %v5862_v29 = vadd.f32 %v6629_v46, %v1038_v32  ;;  %5647 = vmatpush1.bf16.msra.mxu0 %v7487_v10  ;;  %v7511_v32 = vld [vmem:[%s8263_s25 + $0xb50] ss:$24 sps:$4 sm:$0xff]  }
 0x231   : > { %5903 = vst [vmem:[%s9879_s3 + $0x90] sm:$0xff] %v5861_v19  ;;  %5648 = vmatprep.subr.bf16.mxu0 %v7495_v1  ;;  %v7519_v1 = vld [vmem:[%s8263_s25 + $0xb84] ss:$24 sps:$4 sm:$0xff]  }
 0x232   : > { %5904 = vst [vmem:[%s9879_s3 + $0x98] sm:$0xff] %v5862_v29  ;;  %5223 = vmatpush1.bf16.msra.mxu1 %v7490_v45  ;;  %v4761_v9 = vpop.f32.mrb[8].mxu1  ;;  %v7514_v45 = vld [vmem:[%s8263_s25 + $0xb78] ss:$24 sps:$4 sm:$0xff]  }
 0x233   : > { %5224 = vmatprep.subr.bf16.mxu1 %v7498_v38  ;;  %v4763_v43 = vpop.f32.mrb[9].mxu1 }
 0x234   : > { %5649 = vmatpush1.bf16.msra.mxu0 %v7493_v24  ;;  %v4765_v22 = vpop.f32.mrb[10].mxu1  ;;  %v4974_v59 = vpop.f32.mrb[8].mxu0  ;;  %v7522_v24 = vld [vmem:[%s8263_s25 + $0xbac] ss:$24 sps:$4 sm:$0xff]  }
 0x235   : > { %5650 = vmatprep.subr.bf16.mxu0 %v7501_v48  ;;  %v4767_v52 = vpop.f32.mrb[11].mxu1  ;;  %v6630_v12 = vadd.f32 %v4974_v59, %v4761_v9  ;;  %v4976_v39 = vpop.f32.mrb[9].mxu0  ;;  %v7520_v9 = vld [vmem:[%s8263_s25 + $0xba8] ss:$24 sps:$4 sm:$0xff]  }
 0x236   : > { %5225 = vmatpush1.bf16.msra.mxu1 %v7496_v3  ;;  %v6631_v49 = vadd.f32 %v4976_v39, %v4763_v43  ;;  %v4978_v40 = vpop.f32.mrb[10].mxu0  ;;  %v7517_v3 = vld [vmem:[%s8263_s25 + $0xb80] ss:$24 sps:$4 sm:$0xff]   ;;  %v7528_v43 = vld [vmem:[%s8263_s25 + $0xbdc] ss:$24 sps:$4 sm:$0xff]  }
 0x237   : > { %5226 = vmatprep.subr.bf16.mxu1 %v7504_v20  ;;  %v5867_v61 = vadd.f32 %v6630_v12, %v1043_v31  ;;  %v6632_v37 = vadd.f32 %v4978_v40, %v4765_v22  ;;  %v4980_v16 = vpop.f32.mrb[11].mxu0  ;;  %v7525_v31 = vld [vmem:[%s8263_s25 + $0xbb4] ss:$24 sps:$4 sm:$0xff]   ;;  %v7532_v39 = vld [vmem:[%s8263_s25 + $0xc08] ss:$24 sps:$4 sm:$0xff]  }
 0x238   : > { %5651 = vmatpush1.bf16.msra.mxu0 %v7499_v21  ;;  %v5868_v44 = vadd.f32 %v6631_v49, %v1044_v60  ;;  %v6633_v42 = vadd.f32 %v4980_v16, %v4767_v52  ;;  %v7534_v52 = vld [vmem:[%s8263_s25 + $0xc0c] ss:$24 sps:$4 sm:$0xff]   ;;  %v7538_v40 = vld [vmem:[%s8263_s25 + $0xc38] ss:$24 sps:$4 sm:$0xff]   ;;  %v7544_v16 = vld [vmem:[%s8263_s25 + $0xc68] ss:$24 sps:$4 sm:$0xff]  }
 0x239   : > { %5652 = vmatprep.subr.bf16.mxu0 %v7507_v0  ;;  %5909 = vst [vmem:[%s9879_s3 + $0xc0] sm:$0xff] %v5867_v61  ;;  %v5873_v17 = vadd.f32 %v6632_v37, %v1049_v15  ;;  %v7523_v0 = vld [vmem:[%s8263_s25 + $0xbb0] ss:$24 sps:$4 sm:$0xff]   ;;  %v7537_v12 = vld [vmem:[%s8263_s25 + $0xc14] ss:$24 sps:$4 sm:$0xff]  }
 0x23a   : > { %5227 = vmatpush1.bf16.msra.mxu1 %v7502_v51  ;;  %v4771_v14 = vpop.f32.mrb[20].mxu1  ;;  %5910 = vst [vmem:[%s9879_s3 + $0xc8] sm:$0xff] %v5868_v44  ;;  %v5874_v10 = vadd.f32 %v6633_v42, %v1050_v13  ;;  %v7526_v15 = vld [vmem:[%s8263_s25 + $0xbd8] ss:$24 sps:$4 sm:$0xff]   ;;  %v7540_v13 = vld [vmem:[%s8263_s25 + $0xc3c] ss:$24 sps:$4 sm:$0xff]  }
 0x23b   : > { %5228 = vmatprep.subr.bf16.mxu1 %v7510_v53  ;;  %v4772_v35 = vadd.f32 %v4771_v14, %v9298_v47  ;;  %v4773_v41 = vpop.f32.mrb[21].mxu1  ;;  %5915 = vst [vmem:[%s9879_s3 + $0xf0] sm:$0xff] %v5873_v17  ;;  %v7529_v51 = vld [vmem:[%s8263_s25 + $0xbe0] ss:$24 sps:$4 sm:$0xff]   ;;  %v7535_v53 = vld [vmem:[%s8263_s25 + $0xc10] ss:$24 sps:$4 sm:$0xff]  }
 0x23c   : > { %5653 = vmatpush1.bf16.msra.mxu0 %v7505_v26  ;;  %v4774_v4 = vadd.f32 %v4773_v41, %v9302_v28  ;;  %v4775_v36 = vpop.f32.mrb[22].mxu1  ;;  %5916 = vst [vmem:[%s9879_s3 + $0xf8] sm:$0xff] %v5874_v10  ;;  %v4984_v46 = vpop.f32.mrb[20].mxu0  ;;  %v1055_v28 = vld [vmem:[%s9879_s3 + $0x120] sm:$0x1] }
 0x23d   : > { %5654 = vmatprep.subr.bf16.mxu0 %v7513_v54  ;;  %v4843_v47 = vadd.f32 %v9246_v55, %v4772_v35  ;;  %v4776_v19 = vpop.f32.mrb[23].mxu1  ;;  %v4986_v29 = vpop.f32.mrb[21].mxu0  ;;  %v1056_v55 = vld [vmem:[%s9879_s3 + $0x128] sm:$0x1]  ;;  %v7543_v49 = vld [vmem:[%s8263_s25 + $0xc44] ss:$24 sps:$4 sm:$0xff]  }
 0x23e   : > { %5229 = vmatpush1.bf16.msra.mxu1 %v7508_v50  ;;  %v4845_v38 = vadd.f32 %v9249_v23, %v4774_v4  ;;  %v4988_v20 = vpop.f32.mrb[22].mxu0  ;;  %v7546_v26 = vld [vmem:[%s8263_s25 + $0xc6c] ss:$24 sps:$4 sm:$0xff]   ;;  %v7541_v61 = vld [vmem:[%s8263_s25 + $0xc40] ss:$24 sps:$4 sm:$0xff]  }
 0x23f   : > { %5230 = vmatprep.subr.bf16.mxu1 %v7516_v30  ;;  %v4914_v48 = vadd.f32 %v9333_v5, %v4843_v47  ;;  %v4989_v21 = vpop.f32.mrb[23].mxu0  ;;  %v7549_v37 = vld [vmem:[%s8263_s25 + $0xc74] ss:$24 sps:$4 sm:$0xff]   ;;  %v7547_v54 = vld [vmem:[%s8263_s25 + $0xc70] ss:$24 sps:$4 sm:$0xff]   ;;  %v9909_v47 = vld [vmem:[#allocation6_spill] sm:$0xff] }
 0x240   : > { %5655 = vmatpush1.bf16.msra.mxu0 %v7511_v32  ;;  %v4916_v23 = vadd.f32 %v9335_v6, %v4845_v38  ;;  %v7531_v6 = vld [vmem:[%s8263_s25 + $0xbe4] ss:$24 sps:$4 sm:$0xff]   ;;  %v7553_v42 = vld [vmem:[%s8263_s25 + $0xca0] ss:$24 sps:$4 sm:$0xff]   ;;  %v7561_v17 = vld [vmem:[%s8263_s25 + $0xcd4] ss:$24 sps:$4 sm:$0xff]  }
 0x241   : > { %5656 = vmatprep.subr.bf16.mxu0 %v7519_v1  ;;  %v4985_v60 = vadd.f32 %v4984_v46, %v4914_v48  ;;  %v7552_v50 = vld [vmem:[%s8263_s25 + $0xc9c] ss:$24 sps:$4 sm:$0xff]   ;;  %v7558_v44 = vld [vmem:[%s8263_s25 + $0xccc] ss:$24 sps:$4 sm:$0xff]   ;;  %v7556_v14 = vld [vmem:[%s8263_s25 + $0xcc8] ss:$24 sps:$4 sm:$0xff]  }
 0x242   : > { %5231 = vmatpush1.bf16.msra.mxu1 %v7514_v45  ;;  %v4987_v5 = vadd.f32 %v4986_v29, %v4916_v23  ;;  %v7564_v30 = vld [vmem:[%s8263_s25 + $0xcfc] ss:$24 sps:$4 sm:$0xff]   ;;  %v7559_v10 = vld [vmem:[%s8263_s25 + $0xcd0] ss:$24 sps:$4 sm:$0xff]   ;;  %v7570_v35 = vld [vmem:[%s8263_s25 + $0xd2c] ss:$24 sps:$4 sm:$0xff]  }
 0x243   : > { %5232 = vmatprep.subr.bf16.mxu1 %v7522_v24  ;;  %v5879_v22 = vadd.f32 %v4985_v60, %v1055_v28  ;;  %v7565_v41 = vld [vmem:[%s8263_s25 + $0xd00] ss:$24 sps:$4 sm:$0xff]   ;;  %v7573_v32 = vld [vmem:[%s8263_s25 + $0xd34] ss:$24 sps:$4 sm:$0xff]   ;;  %v7571_v36 = vld [vmem:[%s8263_s25 + $0xd30] ss:$24 sps:$4 sm:$0xff]  }
 0x244   : > { %5657 = vmatpush1.bf16.msra.mxu0 %v7517_v3  ;;  %v5880_v59 = vadd.f32 %v4987_v5, %v1056_v55  ;;  %v7568_v4 = vld [vmem:[%s8263_s25 + $0xd28] ss:$24 sps:$4 sm:$0xff]   ;;  %v7576_v1 = vld [vmem:[%s8263_s25 + $0xd5c] ss:$24 sps:$4 sm:$0xff]   ;;  %v7582_v46 = vld [vmem:[%s8263_s25 + $0xd8c] ss:$24 sps:$4 sm:$0xff]  }
 0x245   : > { %5658 = vmatprep.subr.bf16.mxu0 %v7525_v31  ;;  %5921 = vst [vmem:[%s9879_s3 + $0x120] sm:$0x1] %v5879_v22  ;;  %v7577_v45 = vld [vmem:[%s8263_s25 + $0xd60] ss:$24 sps:$4 sm:$0xff]   ;;  %v7585_v19 = vld [vmem:[%s8263_s25 + $0xd94] ss:$24 sps:$4 sm:$0xff]  }
 0x246   : > { %5233 = vmatpush1.bf16.msra.mxu1 %v7520_v9  ;;  %5922 = vst [vmem:[%s9879_s3 + $0x128] sm:$0x1] %v5880_v59  ;;  %v7580_v38 = vld [vmem:[%s8263_s25 + $0xd88] ss:$24 sps:$4 sm:$0xff]   ;;  %v7588_v28 = vld [vmem:[%s8263_s25 + $0xdbc] ss:$24 sps:$4 sm:$0xff]  }
 0x247   : > { %5234 = vmatprep.subr.bf16.mxu1 %v7528_v43  ;;  %v7591_v29 = vld [vmem:[%s8263_s25 + $0xdc4] ss:$24 sps:$4 sm:$0xff]   ;;  %v7586_v24 = vld [vmem:[%s8263_s25 + $0xdb8] ss:$24 sps:$4 sm:$0xff]   ;;  %v7597_v3 = vld [vmem:[%s8263_s25 + $0xdf4] ss:$24 sps:$4 sm:$0xff]  }
 0x248   : > { %5659 = vmatpush1.bf16.msra.mxu0 %v7523_v0  ;;  %v7594_v48 = vld [vmem:[%s8263_s25 + $0xdec] ss:$24 sps:$4 sm:$0xff]   ;;  %v7589_v55 = vld [vmem:[%s8263_s25 + $0xdc0] ss:$24 sps:$4 sm:$0xff]   ;;  %v7600_v20 = vld [vmem:[%s8263_s25 + $0xe1c] ss:$24 sps:$4 sm:$0xff]  }
 0x249   : > { %5660 = vmatprep.subr.bf16.mxu0 %v7531_v6  ;;  %v7592_v9 = vld [vmem:[%s8263_s25 + $0xde8] ss:$24 sps:$4 sm:$0xff]   ;;  %v7603_v31 = vld [vmem:[%s8263_s25 + $0xe24] ss:$24 sps:$4 sm:$0xff]   ;;  %v7598_v43 = vld [vmem:[%s8263_s25 + $0xe18] ss:$24 sps:$4 sm:$0xff]  }
 0x24a   : > { %5235 = vmatpush1.bf16.msra.mxu1 %v7526_v15  ;;  %v7595_v23 = vld [vmem:[%s8263_s25 + $0xdf0] ss:$24 sps:$4 sm:$0xff]   ;;  %v7606_v21 = vld [vmem:[%s8263_s25 + $0xe4c] ss:$24 sps:$4 sm:$0xff]   ;;  %v7601_v60 = vld [vmem:[%s8263_s25 + $0xe20] ss:$24 sps:$4 sm:$0xff]  }
 0x24b   : > { %5275 = vmatprep.subr.bf16.mxu1 %v7534_v52  ;;  %v7609_v22 = vld [vmem:[%s8263_s25 + $0xe54] ss:$24 sps:$4 sm:$0xff]   ;;  %v7604_v59 = vld [vmem:[%s8263_s25 + $0xe48] ss:$24 sps:$4 sm:$0xff]  }
 0x24c   : > { %5661 = vmatpush1.bf16.msra.mxu0 %v7529_v51  ;;  %v7612_v52 = vld [vmem:[%s8263_s25 + $0xe7c] ss:$24 sps:$4 sm:$0xff]  }
 0x24d   : > { %5237 = vmatmul.mubr.bf16.vlgmr.msra.gmra.mrb[24].mxu1 %v8485_v27  ;;  %5701 = vmatprep.subr.bf16.mxu0 %v7537_v12 }
 0x24e   : > { %5276 = vmatpush1.bf16.msra.mxu1 %v7532_v39  ;;  %5246 = vmatprep.mubr.bf16.mxu1 %v8562_v56  ;;  %v7607_v39 = vld [vmem:[%s8263_s25 + $0xe50] ss:$24 sps:$4 sm:$0xff]  }
 0x24f   : > { %5663 = vmatmul.mubr.bf16.vlgmr.msra.gmra.mrb[24].mxu0 %v8485_v27  ;;  %5277 = vmatprep.subr.bf16.mxu1 %v7540_v13  ;;  %v7555_v27 = vld [vmem:[%s8263_s25 + $0xca4] ss:$24 sps:$4 sm:$0xff]  }
 0x250   : > { %5702 = vmatpush1.bf16.msra.mxu0 %v7535_v53  ;;  %5672 = vmatprep.mubr.bf16.mxu0 %v8562_v56  ;;  %v7550_v56 = vld [vmem:[%s8263_s25 + $0xc98] ss:$24 sps:$4 sm:$0xff]   ;;  %v7615_v53 = vld [vmem:[%s8263_s25 + $0xe84] ss:$24 sps:$4 sm:$0xff]  }
 0x251   : > { %5703 = vmatprep.subr.bf16.mxu0 %v7543_v49 }
 0x252   : > { %5278 = vmatpush1.bf16.msra.mxu1 %v7538_v40  ;;  %v7610_v40 = vld [vmem:[%s8263_s25 + $0xe78] ss:$24 sps:$4 sm:$0xff]  }
 0x253   : > { %5279 = vmatprep.subr.bf16.mxu1 %v7546_v26  ;;  %v7618_v26 = vld [vmem:[%s8263_s25 + $0xeac] ss:$24 sps:$4 sm:$0xff]  }
 0x254   : > { %5704 = vmatpush1.bf16.msra.mxu0 %v7541_v61  ;;  %v7613_v61 = vld [vmem:[%s8263_s25 + $0xe80] ss:$24 sps:$4 sm:$0xff]  }
 0x255   : > { %5247 = vmatmul.mubr.bf16.gmra.mrb[28].mxu1 %v8589_v63  ;;  %5705 = vmatprep.subr.bf16.mxu0 %v7549_v37  ;;  %v7621_v37 = vld [vmem:[%s8263_s25 + $0xeb4] ss:$24 sps:$4 sm:$0xff]  }
 0x256   : > { %5280 = vmatpush1.bf16.msra.mxu1 %v7544_v16  ;;  %5256 = vmatprep.mubr.bf16.mxu1 %v8619_v57  ;;  %v7616_v16 = vld [vmem:[%s8263_s25 + $0xea8] ss:$24 sps:$4 sm:$0xff]  }
 0x257   : > { %5673 = vmatmul.mubr.bf16.gmra.mrb[28].mxu0 %v8589_v63  ;;  %5281 = vmatprep.subr.bf16.mxu1 %v7552_v50  ;;  %v7567_v63 = vld [vmem:[%s8263_s25 + $0xd04] ss:$24 sps:$4 sm:$0xff]  }
 0x258   : > { %5706 = vmatpush1.bf16.msra.mxu0 %v7547_v54  ;;  %5682 = vmatprep.mubr.bf16.mxu0 %v8619_v57  ;;  %v7562_v57 = vld [vmem:[%s8263_s25 + $0xcf8] ss:$24 sps:$4 sm:$0xff]   ;;  %v7624_v50 = vld [vmem:[%s8263_s25 + $0xedc] ss:$24 sps:$4 sm:$0xff]  }
 0x259   : > { %5707 = vmatprep.subr.bf16.mxu0 %v7555_v27  ;;  %v7619_v54 = vld [vmem:[%s8263_s25 + $0xeb0] ss:$24 sps:$4 sm:$0xff]   ;;  %v7627_v27 = vld [vmem:[%s8263_s25 + $0xee4] ss:$24 sps:$4 sm:$0xff]  }
 0x25a   : > { %5282 = vmatpush1.bf16.msra.mxu1 %v7550_v56  ;;  %v7622_v56 = vld [vmem:[%s8263_s25 + $0xed8] ss:$24 sps:$4 sm:$0xff]  }
 0x25b   : > { %5283 = vmatprep.subr.bf16.mxu1 %v7558_v44  ;;  %v7630_v44 = vld [vmem:[%s8263_s25 + $0xf0c] ss:$24 sps:$4 sm:$0xff]  }
 0x25c   : > { %5708 = vmatpush1.bf16.msra.mxu0 %v7553_v42  ;;  %v7625_v42 = vld [vmem:[%s8263_s25 + $0xee0] ss:$24 sps:$4 sm:$0xff]  }
 0x25d   : > { %5257 = vmatmul.mubr.bf16.gmra.mrb[32].mxu1 %v8654_v33  ;;  %5709 = vmatprep.subr.bf16.mxu0 %v7561_v17  ;;  %v7633_v17 = vld [vmem:[%s8263_s25 + $0xf14] ss:$24 sps:$4 sm:$0xff]  }
 0x25e   : > { %5284 = vmatpush1.bf16.msra.mxu1 %v7556_v14  ;;  %5266 = vmatprep.mubr.bf16.mxu1 %v8677_v58  ;;  %v7628_v14 = vld [vmem:[%s8263_s25 + $0xf08] ss:$24 sps:$4 sm:$0xff]  }
 0x25f   : > { %5683 = vmatmul.mubr.bf16.gmra.mrb[32].mxu0 %v8654_v33  ;;  %5285 = vmatprep.subr.bf16.mxu1 %v7564_v30  ;;  %v7579_v33 = vld [vmem:[%s8263_s25 + $0xd64] ss:$24 sps:$4 sm:$0xff]  }
 0x260   : > { %5710 = vmatpush1.bf16.msra.mxu0 %v7559_v10  ;;  %5692 = vmatprep.mubr.bf16.mxu0 %v8677_v58  ;;  %v7574_v58 = vld [vmem:[%s8263_s25 + $0xd58] ss:$24 sps:$4 sm:$0xff]   ;;  %v7636_v30 = vld [vmem:[%s8263_s25 + $0xf3c] ss:$24 sps:$4 sm:$0xff]  }
 0x261   : > { %5711 = vmatprep.subr.bf16.mxu0 %v7567_v63  ;;  %v7631_v10 = vld [vmem:[%s8263_s25 + $0xf10] ss:$24 sps:$4 sm:$0xff]  }
 0x262   : > { %5286 = vmatpush1.bf16.msra.mxu1 %v7562_v57  ;;  %v9910_v63 = vld [vmem:[#allocation7_spill] sm:$0xff]  ;;  %v7639_v57 = vld [vmem:[%s8263_s25 + $0xf44] ss:$24 sps:$4 sm:$0xff]  }
 0x263   : > { %5287 = vmatprep.subr.bf16.mxu1 %v7570_v35  ;;  %v7634_v35 = vld [vmem:[%s8263_s25 + $0xf38] ss:$24 sps:$4 sm:$0xff]  }
 0x264   : > { %5712 = vmatpush1.bf16.msra.mxu0 %v7565_v41  ;;  %v9911_v41 = vld [vmem:[#allocation8_spill] sm:$0xff] }
 0x265   : > { %5267 = vmatmul.mubr.bf16.gmra.mrb[48].mxu1 %v8691_v18  ;;  %5713 = vmatprep.subr.bf16.mxu0 %v7573_v32  ;;  %v7642_v32 = vld [vmem:[%s8263_s25 + $0xf6c] ss:$24 sps:$4 sm:$0xff]  }
 0x266   : > { %5288 = vmatpush1.bf16.msra.mxu1 %v7568_v4  ;;  %5307 = vmatprep.mubr.bf16.mxu1 %v9909_v47  ;;  %v7637_v4 = vld [vmem:[%s8263_s25 + $0xf40] ss:$24 sps:$4 sm:$0xff]  }
 0x267   : > { %5693 = vmatmul.mubr.bf16.gmra.mrb[48].mxu0 %v8691_v18  ;;  %5289 = vmatprep.subr.bf16.mxu1 %v7576_v1  ;;  %v7583_v18 = vld [vmem:[%s8263_s25 + $0xd90] ss:$24 sps:$4 sm:$0xff]   ;;  %v7645_v1 = vld [vmem:[%s8263_s25 + $0xf74] ss:$24 sps:$4 sm:$0xff]  }
 0x268   : > { %5714 = vmatpush1.bf16.msra.mxu0 %v7571_v36  ;;  %5733 = vmatprep.mubr.bf16.mxu0 %v9909_v47  ;;  %v7640_v36 = vld [vmem:[%s8263_s25 + $0xf68] ss:$24 sps:$4 sm:$0xff]   ;;  %v9912_v47 = vld [vmem:[#allocation9_spill] sm:$0xff] }
 0x269   : > { %5715 = vmatprep.subr.bf16.mxu0 %v7579_v33  ;;  %v7648_v33 = vld [vmem:[%s8263_s25 + $0xf9c] ss:$24 sps:$4 sm:$0xff]  }
 0x26a   : > { %5290 = vmatpush1.bf16.msra.mxu1 %v7574_v58  ;;  %v7643_v58 = vld [vmem:[%s8263_s25 + $0xf70] ss:$24 sps:$4 sm:$0xff]  }
 0x26b   : > { %5291 = vmatprep.subr.bf16.mxu1 %v7582_v46  ;;  %v7651_v46 = vld [vmem:[%s8263_s25 + $0xfa4] ss:$24 sps:$4 sm:$0xff]  }
 0x26c   : > { %5716 = vmatpush1.bf16.msra.mxu0 %v7577_v45  ;;  %v7646_v45 = vld [vmem:[%s8263_s25 + $0xf98] ss:$24 sps:$4 sm:$0xff]  }
 0x26d   : > { %5717 = vmatprep.subr.bf16.mxu0 %v7585_v19  ;;  %v9913_v19 = vld [vmem:[#allocation10_spill] sm:$0xff] }
 0x26e   : > { %5292 = vmatpush1.bf16.msra.mxu1 %v7580_v38  ;;  %v7654_v38 = vld [vmem:[%s8263_s25 + $0xfcc] ss:$24 sps:$4 sm:$0xff]  }
 0x26f   : > { %5293 = vmatprep.subr.bf16.mxu1 %v7588_v28  ;;  %v7649_v28 = vld [vmem:[%s8263_s25 + $0xfa0] ss:$24 sps:$4 sm:$0xff]  }
 0x270   : > { %5718 = vmatpush1.bf16.msra.mxu0 %v7583_v18  ;;  %v7657_v18 = vld [vmem:[%s8263_s25 + $0xfd4] ss:$24 sps:$4 sm:$0xff]  }
 0x271   : > { %5719 = vmatprep.subr.bf16.mxu0 %v7591_v29  ;;  %v7652_v29 = vld [vmem:[%s8263_s25 + $0xfc8] ss:$24 sps:$4 sm:$0xff]  }
 0x272   : > { %5294 = vmatpush1.bf16.msra.mxu1 %v7586_v24  ;;  %v7660_v24 = vld [vmem:[%s8263_s25 + $0xffc] ss:$24 sps:$4 sm:$0xff]  }
 0x273   : > { %5295 = vmatprep.subr.bf16.mxu1 %v7594_v48  ;;  %v7655_v48 = vld [vmem:[%s8263_s25 + $0xfd0] ss:$24 sps:$4 sm:$0xff]  }
 0x274   : > { %5720 = vmatpush1.bf16.msra.mxu0 %v7589_v55  ;;  %v9914_v55 = vld [vmem:[#allocation11_spill] sm:$0xff] }
 0x275   : > { %5721 = vmatprep.subr.bf16.mxu0 %v7597_v3  ;;  %v7663_v3 = vld [vmem:[%s8263_s25 + $0x1004] ss:$24 sps:$4 sm:$0xff]  }
 0x276   : > { %5296 = vmatpush1.bf16.msra.mxu1 %v7592_v9  ;;  %v7658_v9 = vld [vmem:[%s8263_s25 + $0xff8] ss:$24 sps:$4 sm:$0xff]  }
 0x277   : > { %5297 = vmatprep.subr.bf16.mxu1 %v7600_v20  ;;  %v9915_v20 = vld [vmem:[#allocation12_spill] sm:$0xff] }
 0x278   : > { %5722 = vmatpush1.bf16.msra.mxu0 %v7595_v23  ;;  %v9557_v5 = vpop.f32.mrb[36].mxu1  ;;  %v7666_v23 = vld [vmem:[%s8263_s25 + $0x102c] ss:$24 sps:$4 sm:$0xff]  }
 0x279   : > { %5723 = vmatprep.subr.bf16.mxu0 %v7603_v31  ;;  %v9560_v0 = vpop.f32.mrb[37].mxu1  ;;  %v7661_v31 = vld [vmem:[%s8263_s25 + $0x1000] ss:$24 sps:$4 sm:$0xff]  }
 0x27a   : > { %5298 = vmatpush1.bf16.msra.mxu1 %v7598_v43  ;;  %v9563_v6 = vpop.f32.mrb[36].mxu0  ;;  %v5059_v15 = vpop.f32.mrb[38].mxu1  ;;  %v7669_v43 = vld [vmem:[%s8263_s25 + $0x1034] ss:$24 sps:$4 sm:$0xff]  }
 0x27b   : > { %5299 = vmatprep.subr.bf16.mxu1 %v7606_v21  ;;  %v9566_v51 = vpop.f32.mrb[37].mxu0  ;;  %v5060_v12 = vpop.f32.mrb[39].mxu1  ;;  %v7664_v21 = vld [vmem:[%s8263_s25 + $0x1028] ss:$24 sps:$4 sm:$0xff]   ;;  %v7675_v15 = vld [vmem:[%s8263_s25 + $0x1064] ss:$24 sps:$4 sm:$0xff]  }
 0x27c   : > { %5724 = vmatpush1.bf16.msra.mxu0 %v7601_v60  ;;  %v5485_v13 = vpop.f32.mrb[38].mxu0  ;;  %v7672_v60 = vld [vmem:[%s8263_s25 + $0x105c] ss:$24 sps:$4 sm:$0xff]   ;;  %v9917_v12 = vld [vmem:[#allocation14_spill] sm:$0xff] }
 0x27d   : > { %5725 = vmatprep.subr.bf16.mxu0 %v7609_v22  ;;  %v5486_v49 = vpop.f32.mrb[39].mxu0  ;;  %v7667_v22 = vld [vmem:[%s8263_s25 + $0x1030] ss:$24 sps:$4 sm:$0xff]   ;;  %v7673_v13 = vld [vmem:[%s8263_s25 + $0x1060] ss:$24 sps:$4 sm:$0xff]  }
 0x27e   : > { %5300 = vmatpush1.bf16.msra.mxu1 %v7604_v59  ;;  %v9916_v59 = vld [vmem:[#allocation13_spill] sm:$0xff]  ;;  %v7676_v49 = vld [vmem:[%s8263_s25 + $0x1088] ss:$24 sps:$4 sm:$0xff]  }
 0x27f   : > { %5301 = vmatprep.subr.bf16.mxu1 %v7612_v52  ;;  %v7670_v52 = vld [vmem:[%s8263_s25 + $0x1058] ss:$24 sps:$4 sm:$0xff]  }
 0x280   : > { %5726 = vmatpush1.bf16.msra.mxu0 %v7607_v39  ;;  %v7678_v39 = vld [vmem:[%s8263_s25 + $0x108c] ss:$24 sps:$4 sm:$0xff]  }
 0x281   : > { %5727 = vmatprep.subr.bf16.mxu0 %v7615_v53  ;;  %v7681_v53 = vld [vmem:[%s8263_s25 + $0x1094] ss:$24 sps:$4 sm:$0xff]  }
 0x282   : > { %5302 = vmatpush1.bf16.msra.mxu1 %v7610_v40  ;;  %v7684_v40 = vld [vmem:[%s8263_s25 + $0x10bc] ss:$24 sps:$4 sm:$0xff]  }
 0x283   : > { %5303 = vmatprep.subr.bf16.mxu1 %v7618_v26  ;;  %v7679_v26 = vld [vmem:[%s8263_s25 + $0x1090] ss:$24 sps:$4 sm:$0xff]  }
 0x284   : > { %5728 = vmatpush1.bf16.msra.mxu0 %v7613_v61  ;;  %v7687_v61 = vld [vmem:[%s8263_s25 + $0x10c4] ss:$24 sps:$4 sm:$0xff]  }
 0x285   : > { %5729 = vmatprep.subr.bf16.mxu0 %v7621_v37  ;;  %v7682_v37 = vld [vmem:[%s8263_s25 + $0x10b8] ss:$24 sps:$4 sm:$0xff]  }
 0x286   : > { %5304 = vmatpush1.bf16.msra.mxu1 %v7616_v16  ;;  %v7690_v16 = vld [vmem:[%s8263_s25 + $0x10ec] ss:$24 sps:$4 sm:$0xff]  }
 0x287   : > { %5305 = vmatprep.subr.bf16.mxu1 %v7624_v50  ;;  %v7685_v50 = vld [vmem:[%s8263_s25 + $0x10c0] ss:$24 sps:$4 sm:$0xff]  }
 0x288   : > { %5730 = vmatpush1.bf16.msra.mxu0 %v7619_v54  ;;  %v7693_v54 = vld [vmem:[%s8263_s25 + $0x10f4] ss:$24 sps:$4 sm:$0xff]  }
 0x289   : > { %5731 = vmatprep.subr.bf16.mxu0 %v7627_v27  ;;  %v7688_v27 = vld [vmem:[%s8263_s25 + $0x10e8] ss:$24 sps:$4 sm:$0xff]  }
 0x28a   : > { %5306 = vmatpush1.bf16.msra.mxu1 %v7622_v56  ;;  %v7696_v56 = vld [vmem:[%s8263_s25 + $0x111c] ss:$24 sps:$4 sm:$0xff]  }
 0x28b   : > { %5346 = vmatprep.subr.bf16.mxu1 %v7630_v44  ;;  %v7691_v44 = vld [vmem:[%s8263_s25 + $0x10f0] ss:$24 sps:$4 sm:$0xff]  }
 0x28c   : > { %5732 = vmatpush1.bf16.msra.mxu0 %v7625_v42  ;;  %v7699_v42 = vld [vmem:[%s8263_s25 + $0x1124] ss:$24 sps:$4 sm:$0xff]  }
 0x28d   : > { %5308 = vmatmul.mubr.bf16.vlgmr.msra.gmra.mrb[24].mxu1 %v9910_v63  ;;  %5772 = vmatprep.subr.bf16.mxu0 %v7633_v17  ;;  %v7694_v17 = vld [vmem:[%s8263_s25 + $0x1118] ss:$24 sps:$4 sm:$0xff]  }
 0x28e   : > { %5347 = vmatpush1.bf16.msra.mxu1 %v7628_v14  ;;  %5317 = vmatprep.mubr.bf16.mxu1 %v9911_v41  ;;  %v7702_v14 = vld [vmem:[%s8263_s25 + $0x114c] ss:$24 sps:$4 sm:$0xff]  }
 0x28f   : > { %5734 = vmatmul.mubr.bf16.vlgmr.msra.gmra.mrb[24].mxu0 %v9910_v63  ;;  %5348 = vmatprep.subr.bf16.mxu1 %v7636_v30 }
 0x290   : > { %5773 = vmatpush1.bf16.msra.mxu0 %v7631_v10  ;;  %5743 = vmatprep.mubr.bf16.mxu0 %v9911_v41  ;;  %v7697_v10 = vld [vmem:[%s8263_s25 + $0x1120] ss:$24 sps:$4 sm:$0xff]  }
 0x291   : > { %5774 = vmatprep.subr.bf16.mxu0 %v7639_v57 }
 0x292   : > { %5349 = vmatpush1.bf16.msra.mxu1 %v7634_v35  ;;  %v7705_v35 = vld [vmem:[%s8263_s25 + $0x1154] ss:$24 sps:$4 sm:$0xff]  }
 0x293   : > { %5350 = vmatprep.subr.bf16.mxu1 %v7642_v32 }
 0x294   : > { %5775 = vmatpush1.bf16.msra.mxu0 %v7637_v4  ;;  %v7700_v4 = vld [vmem:[%s8263_s25 + $0x1148] ss:$24 sps:$4 sm:$0xff]  }
 0x295   : > { %5318 = vmatmul.mubr.bf16.gmra.mrb[28].mxu1 %v9912_v47  ;;  %5776 = vmatprep.subr.bf16.mxu0 %v7645_v1 }
 0x296   : > { %5351 = vmatpush1.bf16.msra.mxu1 %v7640_v36  ;;  %5327 = vmatprep.mubr.bf16.mxu1 %v9913_v19 }
 0x297   : > { %5744 = vmatmul.mubr.bf16.gmra.mrb[28].mxu0 %v9912_v47  ;;  %5352 = vmatprep.subr.bf16.mxu1 %v7648_v33 }
 0x298   : > { %5777 = vmatpush1.bf16.msra.mxu0 %v7643_v58  ;;  %5753 = vmatprep.mubr.bf16.mxu0 %v9913_v19  ;;  %v7708_v58 = vld [vmem:[%s8263_s25 + $0x117c] ss:$24 sps:$4 sm:$0xff]  }
 0x299   : > { %5778 = vmatprep.subr.bf16.mxu0 %v7651_v46  ;;  %v7703_v46 = vld [vmem:[%s8263_s25 + $0x1150] ss:$24 sps:$4 sm:$0xff]  }
 0x29a   : > { %5353 = vmatpush1.bf16.msra.mxu1 %v7646_v45  ;;  %v7711_v45 = vld [vmem:[%s8263_s25 + $0x1184] ss:$24 sps:$4 sm:$0xff]  }
 0x29b   : > { %5354 = vmatprep.subr.bf16.mxu1 %v7654_v38  ;;  %v7714_v38 = vld [vmem:[%s8263_s25 + $0x11ac] ss:$24 sps:$4 sm:$0xff]  }
 0x29c   : > { %5779 = vmatpush1.bf16.msra.mxu0 %v7649_v28  ;;  %v7709_v28 = vld [vmem:[%s8263_s25 + $0x1180] ss:$24 sps:$4 sm:$0xff]  }
 0x29d   : > { %5328 = vmatmul.mubr.bf16.gmra.mrb[32].mxu1 %v9914_v55  ;;  %5780 = vmatprep.subr.bf16.mxu0 %v7657_v18  ;;  %v7712_v18 = vld [vmem:[%s8263_s25 + $0x11a8] ss:$24 sps:$4 sm:$0xff]  }
 0x29e   : > { %5355 = vmatpush1.bf16.msra.mxu1 %v7652_v29  ;;  %5337 = vmatprep.mubr.bf16.mxu1 %v9915_v20  ;;  %v7720_v29 = vld [vmem:[%s8263_s25 + $0x11dc] ss:$24 sps:$4 sm:$0xff]  }
 0x29f   : > { %5754 = vmatmul.mubr.bf16.gmra.mrb[32].mxu0 %v9914_v55  ;;  %5356 = vmatprep.subr.bf16.mxu1 %v7660_v24  ;;  %v7715_v24 = vld [vmem:[%s8263_s25 + $0x11b0] ss:$24 sps:$4 sm:$0xff]  }
 0x2a0   : > { %5781 = vmatpush1.bf16.msra.mxu0 %v7655_v48  ;;  %5763 = vmatprep.mubr.bf16.mxu0 %v9915_v20  ;;  %v7723_v48 = vld [vmem:[%s8263_s25 + $0x11e4] ss:$24 sps:$4 sm:$0xff]   ;;  %v7718_v55 = vld [vmem:[%s8263_s25 + $0x11d8] ss:$24 sps:$4 sm:$0xff]  }
 0x2a1   : > { %5782 = vmatprep.subr.bf16.mxu0 %v7663_v3  ;;  %v7721_v3 = vld [vmem:[%s8263_s25 + $0x11e0] ss:$24 sps:$4 sm:$0xff]  }
 0x2a2   : > { %5357 = vmatpush1.bf16.msra.mxu1 %v7658_v9 }
 0x2a3   : > { %5358 = vmatprep.subr.bf16.mxu1 %v7666_v23 }
 0x2a4   : > { %5783 = vmatpush1.bf16.msra.mxu0 %v7661_v31 }
 0x2a5   : > { %5338 = vmatmul.mubr.bf16.gmra.mrb[52].mxu1 %v9916_v59  ;;  %5784 = vmatprep.subr.bf16.mxu0 %v7669_v43 }
 0x2a6   : > { %5359 = vmatpush1.bf16.msra.mxu1 %v7664_v21  ;;  %5378 = vmatprep.mubr.bf16.mxu1 %v9917_v12 }
 0x2a7   : > { %5764 = vmatmul.mubr.bf16.gmra.mrb[52].mxu0 %v9916_v59  ;;  %5360 = vmatprep.subr.bf16.mxu1 %v7672_v60 }
 0x2a8   : > { %5785 = vmatpush1.bf16.msra.mxu0 %v7667_v22  ;;  %5804 = vmatprep.mubr.bf16.mxu0 %v9917_v12 }
 0x2a9   : > { %5786 = vmatprep.subr.bf16.mxu0 %v7675_v15 }
 0x2aa   : > { %5361 = vmatpush1.bf16.msra.mxu1 %v7670_v52 }
 0x2ab   : > { %5362 = vmatprep.subr.bf16.mxu1 %v7678_v39 }
 0x2ac   : > { %5787 = vmatpush1.bf16.msra.mxu0 %v7673_v13 }
 0x2ad   : > { %5788 = vmatprep.subr.bf16.mxu0 %v7681_v53 }
 0x2ae   : > { %5363 = vmatpush1.bf16.msra.mxu1 %v7676_v49 }
 0x2af   : > { %5364 = vmatprep.subr.bf16.mxu1 %v7684_v40 }
 0x2b0   : > { %5789 = vmatpush1.bf16.msra.mxu0 %v7679_v26 }
 0x2b1   : > { %5790 = vmatprep.subr.bf16.mxu0 %v7687_v61 }
 0x2b2   : > { %5365 = vmatpush1.bf16.msra.mxu1 %v7682_v37 }
 0x2b3   : > { %5366 = vmatprep.subr.bf16.mxu1 %v7690_v16 }
 0x2b4   : > { %5791 = vmatpush1.bf16.msra.mxu0 %v7685_v50 }
 0x2b5   : > { %5792 = vmatprep.subr.bf16.mxu0 %v7693_v54 }
 0x2b6   : > { %5367 = vmatpush1.bf16.msra.mxu1 %v7688_v27 }
 0x2b7   : > { %5368 = vmatprep.subr.bf16.mxu1 %v7696_v56 }
 0x2b8   : > { %5793 = vmatpush1.bf16.msra.mxu0 %v7691_v44  ;;  %v5126_v30 = vpop.f32.mrb[40].mxu1 }
 0x2b9   : > { %v5127_v63 = vadd.f32 %v5126_v30, %v9557_v5  ;;  %v5128_v57 = vpop.f32.mrb[41].mxu1  ;;  %5794 = vmatprep.subr.bf16.mxu0 %v7699_v42  ;;  %v1021_v30 = vld [vmem:[%s9879_s3 + $0x10] sm:$0xff] }
 0x2ba   : > { %v5552_v41 = vpop.f32.mrb[40].mxu0  ;;  %v5129_v32 = vadd.f32 %v5128_v57, %v9560_v0  ;;  %5369 = vmatpush1.bf16.msra.mxu1 %v7694_v17  ;;  %v5130_v1 = vpop.f32.mrb[42].mxu1  ;;  %v1023_v57 = vld [vmem:[%s9879_s3 + $0x20] sm:$0xff] }
 0x2bb   : > { %v5553_v36 = vadd.f32 %v5552_v41, %v9563_v6  ;;  %v5554_v33 = vpop.f32.mrb[41].mxu0  ;;  %5370 = vmatprep.subr.bf16.mxu1 %v7702_v14  ;;  %v5131_v5 = vpop.f32.mrb[43].mxu1  ;;  %v7706_v6 = vld [vmem:[%s8263_s25 + $0x1178] ss:$24 sps:$4 sm:$0xff]   ;;  %v1028_v1 = vld [vmem:[%s9879_s3 + $0x48] sm:$0xff] }
 0x2bc   : > { %v5555_v47 = vadd.f32 %v5554_v33, %v9566_v51  ;;  %5795 = vmatpush1.bf16.msra.mxu0 %v7697_v10  ;;  %v5556_v0 = vpop.f32.mrb[42].mxu0  ;;  %v7717_v51 = vld [vmem:[%s8263_s25 + $0x11b4] ss:$24 sps:$4 sm:$0xff]   ;;  %v1022_v10 = vld [vmem:[%s9879_s3 + $0x18] sm:$0xff] }
 0x2bd   : > { %5796 = vmatprep.subr.bf16.mxu0 %v7705_v35  ;;  %v5557_v19 = vpop.f32.mrb[43].mxu0  ;;  %v1027_v35 = vld [vmem:[%s9879_s3 + $0x40] sm:$0xff]  ;;  %v1029_v5 = vld [vmem:[%s9879_s3 + $0x50] sm:$0xff] }
 0x2be   : > { %5371 = vmatpush1.bf16.msra.mxu1 %v7700_v4  ;;  %v1024_v4 = vld [vmem:[%s9879_s3 + $0x28] sm:$0xff]  ;;  %v1030_v19 = vld [vmem:[%s9879_s3 + $0x58] sm:$0xff] }
 0x2bf   : > { %5372 = vmatprep.subr.bf16.mxu1 %v7708_v58 }
 0x2c0   : > { %5797 = vmatpush1.bf16.msra.mxu0 %v7703_v46 }
 0x2c1   : > { %5798 = vmatprep.subr.bf16.mxu0 %v7711_v45 }
 0x2c2   : > { %5373 = vmatpush1.bf16.msra.mxu1 %v7706_v6 }
 0x2c3   : > { %5374 = vmatprep.subr.bf16.mxu1 %v7714_v38 }
 0x2c4   : > { %5799 = vmatpush1.bf16.msra.mxu0 %v7709_v28 }
 0x2c5   : > { %5800 = vmatprep.subr.bf16.mxu0 %v7717_v51 }
 0x2c6   : > { %5375 = vmatpush1.bf16.msra.mxu1 %v7712_v18 }
 0x2c7   : > { %5376 = vmatprep.subr.bf16.mxu1 %v7720_v29 }
 0x2c8   : > { %5801 = vmatpush1.bf16.msra.mxu0 %v7715_v24  ;;  %v1033_v24 = vld [vmem:[%s9879_s3 + $0x70] sm:$0xff] }
 0x2c9   : > { %5802 = vmatprep.subr.bf16.mxu0 %v7723_v48  ;;  %v1034_v48 = vld [vmem:[%s9879_s3 + $0x78] sm:$0xff] }
 0x2ca   : > { %5377 = vmatpush1.bf16.msra.mxu1 %v7718_v55 }
 0x2cc   : > { %5803 = vmatpush1.bf16.msra.mxu0 %v7721_v3  ;;  %v1035_v3 = vld [vmem:[%s9879_s3 + $0x80] sm:$0xff] }
 0x2cd   : > { %5379 = vmatmul.mubr.bf16.vlgmr.msra.gmra.mrb[24].mxu1 %v9005_v7 }
 0x2ce   : > { %5388 = vmatprep.mubr.bf16.mxu1 %v9022_v62 }
 0x2cf   : > { %5805 = vmatmul.mubr.bf16.vlgmr.msra.gmra.mrb[24].mxu0 %v9005_v7 }
 0x2d0   : > { %5814 = vmatprep.mubr.bf16.mxu0 %v9022_v62 }
 0x2d5   : > { %5389 = vmatmul.mubr.bf16.gmra.mrb[28].mxu1 %v9043_v8 }
 0x2d6   : > { %5398 = vmatprep.mubr.bf16.mxu1 %v9069_v34 }
 0x2d7   : > { %5815 = vmatmul.mubr.bf16.gmra.mrb[28].mxu0 %v9043_v8 }
 0x2d8   : > { %5824 = vmatprep.mubr.bf16.mxu0 %v9069_v34 }
 0x2dd   : > { %5399 = vmatmul.mubr.bf16.gmra.mrb[32].mxu1 %v9086_v11 }
 0x2de   : > { %5408 = vmatprep.mubr.bf16.mxu1 %v9105_v25 }
 0x2df   : > { %5825 = vmatmul.mubr.bf16.gmra.mrb[32].mxu0 %v9086_v11 }
 0x2e0   : > { %5834 = vmatprep.mubr.bf16.mxu0 %v9105_v25 }
 0x2e5   : > { %5409 = vmatmul.mubr.bf16.gmra.mrb[56].mxu1 %v9107_v2 }
 0x2e7   : > { %5835 = vmatmul.mubr.bf16.gmra.mrb[56].mxu0 %v9107_v2 }
 0x2f8   : > { %v5197_v7 = vpop.f32.mrb[44].mxu1 }
 0x2f9   : > { %v5198_v62 = vadd.f32 %v5197_v7, %v5127_v63  ;;  %v5199_v9 = vpop.f32.mrb[45].mxu1  ;;  %v1039_v7 = vld [vmem:[%s9879_s3 + $0xa0] sm:$0xff] }
 0x2fa   : > { %v5623_v20 = vpop.f32.mrb[44].mxu0  ;;  %v5200_v23 = vadd.f32 %v5199_v9, %v5129_v32  ;;  %v5201_v8 = vpop.f32.mrb[46].mxu1 }
 0x2fb   : > { %v5624_v31 = vadd.f32 %v5623_v20, %v5553_v36  ;;  %v5625_v34 = vpop.f32.mrb[45].mxu0  ;;  %v5202_v43 = vpop.f32.mrb[47].mxu1  ;;  %v1036_v20 = vld [vmem:[%s9879_s3 + $0x88] sm:$0xff] }
 0x2fc   : > { %v5626_v21 = vadd.f32 %v5625_v34, %v5555_v47  ;;  %v5627_v60 = vpop.f32.mrb[46].mxu0  ;;  %v1041_v43 = vld [vmem:[%s9879_s3 + $0xb0] sm:$0xff] }
 0x2fd   : > { %v5628_v22 = vpop.f32.mrb[47].mxu0 }
 0x338   : > { %v5268_v59 = vpop.f32.mrb[48].mxu1 }
 0x339   : > { %v5269_v11 = vadd.f32 %v5268_v59, %v5198_v62  ;;  %v5270_v15 = vpop.f32.mrb[49].mxu1 }
 0x33a   : > { %v5694_v25 = vpop.f32.mrb[48].mxu0  ;;  %v5271_v52 = vadd.f32 %v5270_v15, %v5200_v23  ;;  %v5272_v12 = vpop.f32.mrb[50].mxu1  ;;  %v1040_v23 = vld [vmem:[%s9879_s3 + $0xa8] sm:$0xff] }
 0x33b   : > { %v5695_v39 = vadd.f32 %v5694_v25, %v5624_v31  ;;  %v5696_v2 = vpop.f32.mrb[49].mxu0  ;;  %v5273_v13 = vpop.f32.mrb[51].mxu1 }
 0x33c   : > { %v5697_v53 = vadd.f32 %v5696_v2, %v5626_v21  ;;  %v5698_v49 = vpop.f32.mrb[50].mxu0  ;;  %v1045_v13 = vld [vmem:[%s9879_s3 + $0xd0] sm:$0xff] }
 0x33d   : > { %v5699_v40 = vpop.f32.mrb[51].mxu0 }
 0x33e   : > { %v1047_v40 = vld [vmem:[%s9879_s3 + $0xe0] sm:$0xff] }
 0x378   : > { %v5339_v26 = vpop.f32.mrb[52].mxu1 }
 0x379   : > { %v9678_v61 = vadd.f32 %v5339_v26, %v5269_v11  ;;  %v5341_v37 = vpop.f32.mrb[53].mxu1  ;;  %v1042_v11 = vld [vmem:[%s9879_s3 + $0xb8] sm:$0xff]  ;;  %v1051_v26 = vld [vmem:[%s9879_s3 + $0x100] sm:$0xff] }
 0x37a   : > { %v5765_v16 = vpop.f32.mrb[52].mxu0  ;;  %v9680_v50 = vadd.f32 %v5341_v37, %v5271_v52  ;;  %v5343_v54 = vpop.f32.mrb[54].mxu1 }
 0x37b   : > { %v9682_v27 = vadd.f32 %v5765_v16, %v5695_v39  ;;  %v5767_v56 = vpop.f32.mrb[53].mxu0  ;;  %v5344_v44 = vpop.f32.mrb[55].mxu1  ;;  %v1048_v54 = vld [vmem:[%s9879_s3 + $0xe8] sm:$0xff] }
 0x37c   : > { %v9684_v42 = vadd.f32 %v5767_v56, %v5697_v53  ;;  %v5769_v17 = vpop.f32.mrb[54].mxu0  ;;  %v1046_v53 = vld [vmem:[%s9879_s3 + $0xd8] sm:$0xff]  ;;  %v1052_v56 = vld [vmem:[%s9879_s3 + $0x108] sm:$0xff] }
 0x37d   : > { %v5770_v14 = vpop.f32.mrb[55].mxu0 }
 0x3a0   : > { %v5380_v63 = vpop.f32.mrb[24].mxu1 }
 0x3a1   : > { %v5845_v41 = vadd.f32 %v5380_v63, %v1021_v30  ;;  %v5382_v32 = vpop.f32.mrb[25].mxu1  ;;  %v1053_v30 = vld [vmem:[%s9879_s3 + $0x110] sm:$0xff] }
 0x3a2   : > { %v5806_v36 = vpop.f32.mrb[24].mxu0  ;;  %v5846_v33 = vadd.f32 %v5382_v32, %v1022_v10  ;;  %v5384_v58 = vpop.f32.mrb[26].mxu1 }
 0x3a3   : > { %5887 = vst [vmem:[%s9879_s3 + $0x10] sm:$0xff] %v5845_v41  ;;  %v5847_v47 = vadd.f32 %v5806_v36, %v1023_v57  ;;  %v5808_v46 = vpop.f32.mrb[25].mxu0  ;;  %v5851_v0 = vadd.f32 %v5384_v58, %v1027_v35  ;;  %v5386_v45 = vpop.f32.mrb[27].mxu1  ;;  %v1054_v41 = vld [vmem:[%s9879_s3 + $0x118] sm:$0xff] }
 0x3a4   : > { %5888 = vst [vmem:[%s9879_s3 + $0x18] sm:$0xff] %v5846_v33  ;;  %v5848_v6 = vadd.f32 %v5808_v46, %v1024_v4  ;;  %v5810_v38 = vpop.f32.mrb[26].mxu0  ;;  %v5852_v28 = vadd.f32 %v5386_v45, %v1028_v1 }
 0x3a5   : > { %5889 = vst [vmem:[%s9879_s3 + $0x20] sm:$0xff] %v5847_v47  ;;  %5893 = vst [vmem:[%s9879_s3 + $0x40] sm:$0xff] %v5851_v0  ;;  %v5853_v51 = vadd.f32 %v5810_v38, %v1029_v5  ;;  %v5812_v18 = vpop.f32.mrb[27].mxu0  ;;  %v1057_v5 = vld [vmem:[%s9879_s3 + $0x130] sm:$0x1] }
 0x3a6   : > { %5890 = vst [vmem:[%s9879_s3 + $0x28] sm:$0xff] %v5848_v6  ;;  %5894 = vst [vmem:[%s9879_s3 + $0x48] sm:$0xff] %v5852_v28  ;;  %v5854_v29 = vadd.f32 %v5812_v18, %v1030_v19  ;;  %v1058_v0 = vld [vmem:[%s9879_s3 + $0x138] sm:$0x1]  ;;  %v1059_v19 = vld [vmem:[%s9879_s3 + $0x140] sm:$0x1] }
 0x3a7   : > { %5895 = vst [vmem:[%s9879_s3 + $0x50] sm:$0xff] %v5853_v51 }
 0x3a8   : > { %5896 = vst [vmem:[%s9879_s3 + $0x58] sm:$0xff] %v5854_v29  ;;  %v5390_v55 = vpop.f32.mrb[28].mxu1 }
 0x3a9   : > { %v5857_v62 = vadd.f32 %v5390_v55, %v1033_v24  ;;  %v5392_v9 = vpop.f32.mrb[29].mxu1 }
 0x3aa   : > { %v5816_v8 = vpop.f32.mrb[28].mxu0  ;;  %v5858_v31 = vadd.f32 %v5392_v9, %v1034_v48  ;;  %v5394_v34 = vpop.f32.mrb[30].mxu1 }
 0x3ab   : > { %5899 = vst [vmem:[%s9879_s3 + $0x70] sm:$0xff] %v5857_v62  ;;  %v5859_v21 = vadd.f32 %v5816_v8, %v1035_v3  ;;  %v5818_v60 = vpop.f32.mrb[29].mxu0  ;;  %v5863_v22 = vadd.f32 %v5394_v34, %v1039_v7  ;;  %v5396_v59 = vpop.f32.mrb[31].mxu1 }
 0x3ac   : > { %5900 = vst [vmem:[%s9879_s3 + $0x78] sm:$0xff] %v5858_v31  ;;  %v5860_v15 = vadd.f32 %v5818_v60, %v1036_v20  ;;  %v5820_v25 = vpop.f32.mrb[30].mxu0  ;;  %v5864_v52 = vadd.f32 %v5396_v59, %v1040_v23 }
 0x3ad   : > { %5901 = vst [vmem:[%s9879_s3 + $0x80] sm:$0xff] %v5859_v21  ;;  %5905 = vst [vmem:[%s9879_s3 + $0xa0] sm:$0xff] %v5863_v22  ;;  %v5865_v12 = vadd.f32 %v5820_v25, %v1041_v43  ;;  %v5822_v39 = vpop.f32.mrb[31].mxu0 }
 0x3ae   : > { %5902 = vst [vmem:[%s9879_s3 + $0x88] sm:$0xff] %v5860_v15  ;;  %5906 = vst [vmem:[%s9879_s3 + $0xa8] sm:$0xff] %v5864_v52  ;;  %v5866_v2 = vadd.f32 %v5822_v39, %v1042_v11 }
 0x3af   : > { %5907 = vst [vmem:[%s9879_s3 + $0xb0] sm:$0xff] %v5865_v12 }
 0x3b0   : > { %5908 = vst [vmem:[%s9879_s3 + $0xb8] sm:$0xff] %v5866_v2  ;;  %v5400_v49 = vpop.f32.mrb[32].mxu1 }
 0x3b1   : > { %v5869_v37 = vadd.f32 %v5400_v49, %v1045_v13  ;;  %v5402_v16 = vpop.f32.mrb[33].mxu1 }
 0x3b2   : > { %v5826_v44 = vpop.f32.mrb[32].mxu0  ;;  %v5870_v17 = vadd.f32 %v5402_v16, %v1046_v53  ;;  %v5404_v14 = vpop.f32.mrb[34].mxu1 }
 0x3b3   : > { %5911 = vst [vmem:[%s9879_s3 + $0xd0] sm:$0xff] %v5869_v37  ;;  %v5871_v10 = vadd.f32 %v5826_v44, %v1047_v40  ;;  %v5828_v63 = vpop.f32.mrb[33].mxu0  ;;  %v5875_v57 = vadd.f32 %v5404_v14, %v1051_v26  ;;  %v5406_v35 = vpop.f32.mrb[35].mxu1 }
 0x3b4   : > { %5912 = vst [vmem:[%s9879_s3 + $0xd8] sm:$0xff] %v5870_v17  ;;  %v5872_v32 = vadd.f32 %v5828_v63, %v1048_v54  ;;  %v5830_v4 = vpop.f32.mrb[34].mxu0  ;;  %v5876_v1 = vadd.f32 %v5406_v35, %v1052_v56 }
 0x3b5   : > { %5913 = vst [vmem:[%s9879_s3 + $0xe0] sm:$0xff] %v5871_v10  ;;  %5917 = vst [vmem:[%s9879_s3 + $0x100] sm:$0xff] %v5875_v57  ;;  %v5877_v36 = vadd.f32 %v5830_v4, %v1053_v30  ;;  %v5832_v33 = vpop.f32.mrb[35].mxu0 }
 0x3b6   : > { %5914 = vst [vmem:[%s9879_s3 + $0xe8] sm:$0xff] %v5872_v32  ;;  %5918 = vst [vmem:[%s9879_s3 + $0x108] sm:$0xff] %v5876_v1  ;;  %v5878_v58 = vadd.f32 %v5832_v33, %v1054_v41 }
 0x3b7   : > { %5919 = vst [vmem:[%s9879_s3 + $0x110] sm:$0xff] %v5877_v36 }
 0x3b8   : > { %5920 = vst [vmem:[%s9879_s3 + $0x118] sm:$0xff] %v5878_v58  ;;  %v5410_v47 = vpop.f32.mrb[56].mxu1 }
 0x3b9   : > { %v5411_v46 = vadd.f32 %v5410_v47, %v9678_v61  ;;  %v5412_v45 = vpop.f32.mrb[57].mxu1  ;;  %v1060_v61 = vld [vmem:[%s9879_s3 + $0x148] sm:$0x1] }
 0x3ba   : > { %v5836_v6 = vpop.f32.mrb[56].mxu0  ;;  %v5413_v38 = vadd.f32 %v5412_v45, %v9680_v50  ;;  %v5414_v28 = vpop.f32.mrb[58].mxu1 }
 0x3bb   : > { %v5881_v51 = vadd.f32 %v5411_v46, %v1057_v5  ;;  %v5837_v18 = vadd.f32 %v5836_v6, %v9682_v27  ;;  %v5838_v29 = vpop.f32.mrb[57].mxu0  ;;  %v5415_v24 = vpop.f32.mrb[59].mxu1 }
 0x3bc   : > { %v5882_v48 = vadd.f32 %v5413_v38, %v1058_v0  ;;  %v5839_v55 = vadd.f32 %v5838_v29, %v9684_v42  ;;  %v5840_v3 = vpop.f32.mrb[58].mxu0 }
 0x3bd   : > { %5923 = vst [vmem:[%s9879_s3 + $0x130] sm:$0x1] %v5881_v51  ;;  %v5883_v7 = vadd.f32 %v5837_v18, %v1059_v19  ;;  %v5841_v50 = vpop.f32.mrb[59].mxu0 }
 0x3be   : > { %5924 = vst [vmem:[%s9879_s3 + $0x138] sm:$0x1] %v5882_v48  ;;  %v5884_v27 = vadd.f32 %v5839_v55, %v1060_v61 }
 0x3bf   : > { %5925 = vst [vmem:[%s9879_s3 + $0x140] sm:$0x1] %v5883_v7 }
 0x3c0   : > { %5926 = vst [vmem:[%s9879_s3 + $0x148] sm:$0x1] %v5884_v27 }
 0x3c1 PF: > { %s16_s17 = sadd.s32 1, %s7970_s17   ;;  %s9918_s12 = smov %s7954_s13 }
 0x3c2   : > { %p13_p7 = scmp.ge.s32.totalorder %s16_s17, 4   ;;  %s9919_s13 = smov %s7958_s14 }
 0x3c3   : > { %s9920_s14 = smov %s8043_s24  ;;  %s9921_s15 = smov %s7966_s16 }
 0x3c4   : > { %s9922_s16 = smov %s9924_s19  ;;  %15 = sbr.rel (!%p13_p7) target bundleno = 4 (0x4), region = 110 }
 0x3cb   :  { %5949 = vsyncpa [#allocation4], 1 }
 0x3cc   :  { %5951 = vsyncpa [#allocation4 + $0x1], 1 }

</bundles_post_ra>
